<compile_context>
chip_gen: v7x
topology: tpu7x:2x2x1
jax: 0.10.0
libtpu: 0.0.40
codegen_flags: <defaults>
</compile_context>

<pallas_src>
import math

import jax
import jax.numpy as jnp
from jax.experimental import pallas as pl
from jax.experimental.pallas import tpu as pltpu

_PREC = jax.lax.Precision.HIGHEST  # per-dot precision (see header note)


# ----------------------------- small math helpers ----------------------------
def _ln(x, axis, eps=1e-5):
    """layer_norm_process: biased variance, gamma=1, beta=0."""
    m = jnp.mean(x, axis=axis, keepdims=True)
    v = jnp.mean((x - m) ** 2, axis=axis, keepdims=True)
    return (x - m) * jax.lax.rsqrt(v + eps)


def _gelu_exact(x):
    return 0.5 * x * (1.0 + jax.lax.erf(x * (1.0 / math.sqrt(2.0))))


# --------------------------------- the kernel --------------------------------
def grid_gmlp_pairs_kernel(x_ref, w1_ref, b1_ref, wfc_ref, bfc_ref,
                           wsfc_ref, bsfc_ref, wsfc2_ref, bsfc2_ref,
                           w2_ref, b2_ref, o_ref):
    """PB (g, g + Gh) grid-position pairs; block shape (1, 2, PB, C, P)."""
    PB = x_ref.shape[2]
    P = x_ref.shape[-1]

    # Weights read once per grid step.
    w1 = w1_ref[...]
    wfc = wfc_ref[...]
    wsfc = wsfc_ref[...]
    wsfc2 = wsfc2_ref[...]
    w2 = w2_ref[...]
    n1 = wfc.shape[0]

    # Biases pre-broadcast ONCE per grid step (hoisted out of the pair loop).
    def bcast(b_ref, cout):
        return jnp.broadcast_to(b_ref[...], (cout, P))

    b1 = bcast(b1_ref, w1.shape[0])
    bfc = bcast(bfc_ref, wfc.shape[0])
    bsfc = bcast(bsfc_ref, wsfc.shape[0])
    bsfc2 = bcast(bsfc2_ref, wsfc2.shape[0])
    b2 = bcast(b2_ref, w2.shape[0])

    def conv(w, b, t):  # 1x1 conv == (Cout, Cin) @ (Cin, P); lanes stay on P
        return jnp.dot(w, t, preferred_element_type=jnp.float32,
                       precision=_PREC) + b

    def head(x):
        # LN over channels (axis 0), fc1, exact GELU; then the patch-axis LN
        # is computed ONCE and shared by the v / su / sv branches.
        y = _gelu_exact(conv(w1, b1, _ln(x, axis=0)))       # (C2, P)
        return y, _ln(y, axis=1)

    def gate_fc2_residual(x, y, ln_self, s_other):
        # channel-split branch: LN(v) over P is just a slice of the shared LN.
        catt = y[:n1] * (conv(wfc, bfc, ln_self[n1:]) + 1.0)
        # grid-split branch: (g, g+Gh) coupling; sfc2 per half (no concat).
        satt = conv(wsfc2, bsfc2, ln_self * (s_other + 1.0))
        return x + conv(w2, b2, catt + satt)                # fc2 + residual

    # Static unroll over the PB pairs in this block (PB is a small Python int).
    for p in range(PB):
        xa = x_ref[0, 0, p].astype(jnp.float32)   # (C, P)  grid position g
        xb = x_ref[0, 1, p].astype(jnp.float32)   # (C, P)  grid position g + Gh

        ya, ln_a = head(xa)
        yb, ln_b = head(xb)

        # sfc applied once per grid position (covers both su1 and sv1).
        s_a = conv(wsfc, bsfc, ln_a)
        s_b = conv(wsfc, bsfc, ln_b)

        o_ref[0, 0, p] = gate_fc2_residual(xa, ya, ln_a, s_b).astype(o_ref.dtype)
        o_ref[0, 1, p] = gate_fc2_residual(xb, yb, ln_b, s_a).astype(o_ref.dtype)


# --------------------------------- wrapper ------------------------------------
def grid_gmlp_layer(x_nchw, params, grid_size, *, pairs_per_step=None):
    """Pallas implementation.  Input NCHW (like PyTorch), output NHWC
    (identical to the PyTorch module's return value)."""
    N, C, H, W = x_nchw.shape
    gh, gw = grid_size
    fh, fw = H // gh, W // gw
    G, P = gh * gw, fh * fw
    assert G % 2 == 0, "grid-split branch needs an even number of grid cells"
    Gh = G // 2

    # Pairs processed per grid step: amortizes per-step overhead; keeps VMEM tiny.
    if pairs_per_step is None:
        pairs_per_step = next(pb for pb in (4, 2, 1) if Gh % pb == 0)
    PB = pairs_per_step
    assert Gh % PB == 0, "pairs_per_step must divide Gh"

    # block_images_einops in channel-first form:
    # NCHW -> (N, gh, gw, C, fh, fw) -> (N, G, C, P) -> (N, 2, Gh, C, P)
    # TODO(synk): fold this blocking into the BlockSpec index_map once
    # fh/fw/C are (8,128)-compliant; at small C the per-patch block is rejected.
    xb = x_nchw.reshape(N, C, gh, fh, gw, fw)
    xb = xb.transpose(0, 2, 4, 1, 3, 5).reshape(N, G, C, P)
    xb = xb.reshape(N, 2, Gh, C, P)

    w1, b1, wfc, bfc, wsfc, bsfc, wsfc2, bsfc2, w2, b2 = params
    col = lambda b: b[:, None]                     # biases as (Cout, 1) columns
    wargs = (w1, col(b1), wfc, col(bfc), wsfc, col(bsfc),
             wsfc2, col(bsfc2), w2, col(b2))

    def wspec(a):
        nd = a.ndim
        return pl.BlockSpec(a.shape, lambda n, j, _nd=nd: (0,) * _nd)

    pair_spec = pl.BlockSpec((1, 2, PB, C, P), lambda n, j: (n, 0, j, 0, 0))

    out_blocked = pl.pallas_call(
        grid_gmlp_pairs_kernel,
        out_shape=jax.ShapeDtypeStruct((N, 2, Gh, C, P), x_nchw.dtype),
        grid=(N, Gh // PB),
        in_specs=[pair_spec] + [wspec(a) for a in wargs],
        out_specs=pair_spec,
        compiler_params=pltpu.CompilerParams(
            dimension_semantics=("parallel", "parallel")),
    )(xb, *wargs)

    # unblock_images_einops: (N, 2, Gh, C, P) -> NHWC
    out = out_blocked.reshape(N, G, C, P).reshape(N, gh, gw, C, fh, fw)
    out = out.transpose(0, 1, 4, 2, 5, 3).reshape(N, H, W, C)
    return out


# ------------------------- pure-JAX reference (for check) ---------------------
def grid_gmlp_reference(x_nchw, params, grid_size):
    N, C, H, W = x_nchw.shape
    gh, gw = grid_size
    fh, fw = H // gh, W // gw
    w1, b1, wfc, bfc, wsfc, bsfc, wsfc2, bsfc2, w2, b2 = params

    def conv1x1(t, w, b):  # t: (N, Cin, G, P); w: (Cout, Cin)
        return (jnp.einsum('nigp,oi->nogp', t, w, precision=_PREC)
                + b[None, :, None, None])

    x = jnp.transpose(x_nchw, (0, 2, 3, 1))
    x = x.reshape(N, gh, fh, gw, fw, C).transpose(0, 1, 3, 2, 4, 5)
    x = x.reshape(N, gh * gw, fh * fw, C)
    y = _ln(x, axis=-1)
    y = jnp.transpose(y, (0, 3, 1, 2))                 # (N, C, G, P)
    y = _gelu_exact(conv1x1(y, w1, b1))
    C2, G = y.shape[1], y.shape[2]
    n1, Gh = C2 // 2, G // 2
    u, v = y[:, :n1], y[:, n1:]
    v = conv1x1(_ln(v, axis=-1), wfc, bfc)
    catt = u * (v + 1.0)
    su = _ln(y[:, :, :Gh], axis=-1)
    sv = _ln(y[:, :, Gh:], axis=-1)
    su1 = conv1x1(su, wsfc, bsfc)
    sv1 = conv1x1(sv, wsfc, bsfc)
    satt = jnp.concatenate([su * (sv1 + 1.0), sv * (su1 + 1.0)], axis=2)
    satt = conv1x1(satt, wsfc2, bsfc2)
    yg = conv1x1(catt + satt, w2, b2)
    yg = jnp.transpose(yg, (0, 2, 3, 1))
    x = x + yg
    x = x.reshape(N, gh, gw, fh, fw, C).transpose(0, 1, 3, 2, 4, 5)
    return x.reshape(N, H, W, C)


# ----------------------------------- main --------------------------------------
if __name__ == "__main__":
    # Small shapes consistent with the module:
    N, C, H, W = 2, 4, 16, 16
    grid_size = (4, 4)            # gh, gw -> G = 16 (even, required by grid split)
    factor = 2
    C2 = C * factor
    n1 = C2 // 2                  # must equal num_channels*factor/2 for the convs

    key = jax.random.PRNGKey(0)
    ks = jax.random.split(key, 11)
    s = 0.1
    params = (
        s * jax.random.normal(ks[0], (C2, C), jnp.float32),          # fc1.weight (out,in)
        s * jax.random.normal(ks[1], (C2,), jnp.float32),            # fc1.bias
        s * jax.random.normal(ks[2], (n1, n1), jnp.float32),         # ggu.fc.weight
        s * jax.random.normal(ks[3], (n1,), jnp.float32),            # ggu.fc.bias
        s * jax.random.normal(ks[4], (2 * n1, 2 * n1), jnp.float32), # ggu.sfc.weight
        s * jax.random.normal(ks[5], (2 * n1,), jnp.float32),        # ggu.sfc.bias
        s * jax.random.normal(ks[6], (n1, 2 * n1), jnp.float32),     # ggu.sfc2.weight
        s * jax.random.normal(ks[7], (n1,), jnp.float32),            # ggu.sfc2.bias
        s * jax.random.normal(ks[8], (C, C), jnp.float32),           # fc2.weight
        s * jax.random.normal(ks[9], (C,), jnp.float32),             # fc2.bias
    )
    x = jax.random.normal(ks[10], (N, C, H, W), jnp.float32)

    out = jax.block_until_ready(grid_gmlp_layer(x, params, grid_size))
    ref = jax.block_until_ready(grid_gmlp_reference(x, params, grid_size))

    assert out.shape == (N, H, W, C), out.shape
    err = float(jnp.max(jnp.abs(out - ref)))
    assert jnp.allclose(out, ref, atol=1e-4, rtol=1e-4), err
    print("KERNEL_OK")
</pallas_src>

<mosaic_0001>
module attributes {stable_mosaic.version = 11 : i64} {
  func.func @grid_gmlp_pairs_kernel(%arg0: i32, %arg1: i32, %arg2: memref<1x2x4x4x16xf32, #tpu.memory_space<vmem>>, %arg3: memref<8x4xf32, #tpu.memory_space<vmem>>, %arg4: memref<8x1xf32, #tpu.memory_space<vmem>>, %arg5: memref<4x4xf32, #tpu.memory_space<vmem>>, %arg6: memref<4x1xf32, #tpu.memory_space<vmem>>, %arg7: memref<8x8xf32, #tpu.memory_space<vmem>>, %arg8: memref<8x1xf32, #tpu.memory_space<vmem>>, %arg9: memref<4x8xf32, #tpu.memory_space<vmem>>, %arg10: memref<4x1xf32, #tpu.memory_space<vmem>>, %arg11: memref<4x4xf32, #tpu.memory_space<vmem>>, %arg12: memref<4x1xf32, #tpu.memory_space<vmem>>, %arg13: memref<1x2x4x4x16xf32, #tpu.memory_space<vmem>>) attributes {dimension_semantics = [#tpu.dimension_semantics<parallel>, #tpu.dimension_semantics<parallel>], iteration_bounds = array<i64: 2, 2>, scalar_prefetch = 0 : i64, scratch_operands = 0 : i64, tpu.core_type = #tpu.core_type<tc>, window_params = [{transform_indices = @transform_0, window_bounds = array<i64: 1, 2, 4, 4, 16>}, {pipeline_mode = #tpu.pipeline_mode<synchronous>, transform_indices = @transform_1, window_bounds = array<i64: 8, 4>}, {pipeline_mode = #tpu.pipeline_mode<synchronous>, transform_indices = @transform_2, window_bounds = array<i64: 8, 1>}, {pipeline_mode = #tpu.pipeline_mode<synchronous>, transform_indices = @transform_3, window_bounds = array<i64: 4, 4>}, {pipeline_mode = #tpu.pipeline_mode<synchronous>, transform_indices = @transform_4, window_bounds = array<i64: 4, 1>}, {pipeline_mode = #tpu.pipeline_mode<synchronous>, transform_indices = @transform_5, window_bounds = array<i64: 8, 8>}, {pipeline_mode = #tpu.pipeline_mode<synchronous>, transform_indices = @transform_6, window_bounds = array<i64: 8, 1>}, {pipeline_mode = #tpu.pipeline_mode<synchronous>, transform_indices = @transform_7, window_bounds = array<i64: 4, 8>}, {pipeline_mode = #tpu.pipeline_mode<synchronous>, transform_indices = @transform_8, window_bounds = array<i64: 4, 1>}, {pipeline_mode = #tpu.pipeline_mode<synchronous>, transform_indices = @transform_9, window_bounds = array<i64: 4, 4>}, {pipeline_mode = #tpu.pipeline_mode<synchronous>, transform_indices = @transform_10, window_bounds = array<i64: 4, 1>}, {transform_indices = @transform_11, window_bounds = array<i64: 1, 2, 4, 4, 16>}]} {
    %c0 = arith.constant 0 : index
    %c0_0 = arith.constant 0 : index
    %0 = vector.load %arg3[%c0, %c0_0] : memref<8x4xf32, #tpu.memory_space<vmem>>, vector<8x4xf32>
    %c0_1 = arith.constant 0 : index
    %c0_2 = arith.constant 0 : index
    %1 = vector.load %arg5[%c0_1, %c0_2] : memref<4x4xf32, #tpu.memory_space<vmem>>, vector<4x4xf32>
    %c0_3 = arith.constant 0 : index
    %c0_4 = arith.constant 0 : index
    %2 = vector.load %arg7[%c0_3, %c0_4] : memref<8x8xf32, #tpu.memory_space<vmem>>, vector<8x8xf32>
    %c0_5 = arith.constant 0 : index
    %c0_6 = arith.constant 0 : index
    %3 = vector.load %arg9[%c0_5, %c0_6] : memref<4x8xf32, #tpu.memory_space<vmem>>, vector<4x8xf32>
    %c0_7 = arith.constant 0 : index
    %c0_8 = arith.constant 0 : index
    %4 = vector.load %arg11[%c0_7, %c0_8] : memref<4x4xf32, #tpu.memory_space<vmem>>, vector<4x4xf32>
    %c0_9 = arith.constant 0 : index
    %c0_10 = arith.constant 0 : index
    %5 = vector.load %arg4[%c0_9, %c0_10] : memref<8x1xf32, #tpu.memory_space<vmem>>, vector<8x1xf32>
    %6 = vector.shape_cast %5 : vector<8x1xf32> to vector<8x1xf32>
    %7 = vector.broadcast %6 : vector<8x1xf32> to vector<8x16xf32>
    %c0_11 = arith.constant 0 : index
    %c0_12 = arith.constant 0 : index
    %8 = vector.load %arg6[%c0_11, %c0_12] : memref<4x1xf32, #tpu.memory_space<vmem>>, vector<4x1xf32>
    %9 = vector.shape_cast %8 : vector<4x1xf32> to vector<4x1xf32>
    %10 = vector.broadcast %9 : vector<4x1xf32> to vector<4x16xf32>
    %c0_13 = arith.constant 0 : index
    %c0_14 = arith.constant 0 : index
    %11 = vector.load %arg8[%c0_13, %c0_14] : memref<8x1xf32, #tpu.memory_space<vmem>>, vector<8x1xf32>
    %12 = vector.shape_cast %11 : vector<8x1xf32> to vector<8x1xf32>
    %13 = vector.broadcast %12 : vector<8x1xf32> to vector<8x16xf32>
    %c0_15 = arith.constant 0 : index
    %c0_16 = arith.constant 0 : index
    %14 = vector.load %arg10[%c0_15, %c0_16] : memref<4x1xf32, #tpu.memory_space<vmem>>, vector<4x1xf32>
    %15 = vector.shape_cast %14 : vector<4x1xf32> to vector<4x1xf32>
    %16 = vector.broadcast %15 : vector<4x1xf32> to vector<4x16xf32>
    %c0_17 = arith.constant 0 : index
    %c0_18 = arith.constant 0 : index
    %17 = vector.load %arg12[%c0_17, %c0_18] : memref<4x1xf32, #tpu.memory_space<vmem>>, vector<4x1xf32>
    %18 = vector.shape_cast %17 : vector<4x1xf32> to vector<4x1xf32>
    %19 = vector.broadcast %18 : vector<4x1xf32> to vector<4x16xf32>
    %c0_19 = arith.constant 0 : index
    %c0_20 = arith.constant 0 : index
    %c0_21 = arith.constant 0 : index
    %c0_22 = arith.constant 0 : index
    %c0_23 = arith.constant 0 : index
    %20 = vector.load %arg2[%c0_19, %c0_20, %c0_21, %c0_22, %c0_23] : memref<1x2x4x4x16xf32, #tpu.memory_space<vmem>>, vector<1x1x1x4x16xf32>
    %21 = vector.shape_cast %20 : vector<1x1x1x4x16xf32> to vector<4x16xf32>
    %c0_24 = arith.constant 0 : index
    %c1 = arith.constant 1 : index
    %c0_25 = arith.constant 0 : index
    %c0_26 = arith.constant 0 : index
    %c0_27 = arith.constant 0 : index
    %22 = vector.load %arg2[%c0_24, %c1, %c0_25, %c0_26, %c0_27] : memref<1x2x4x4x16xf32, #tpu.memory_space<vmem>>, vector<1x1x1x4x16xf32>
    %23 = vector.shape_cast %22 : vector<1x1x1x4x16xf32> to vector<4x16xf32>
    %cst = arith.constant dense<0.000000e+00> : vector<16xf32>
    %24 = vector.multi_reduction <add>, %21, %cst [0] : vector<4x16xf32> to vector<16xf32>
    %25 = vector.shape_cast %24 : vector<16xf32> to vector<1x16xf32>
    %cst_28 = arith.constant 4.000000e+00 : f32
    %26 = vector.broadcast %cst_28 : f32 to vector<1x16xf32>
    %27 = arith.divf %25, %26 : vector<1x16xf32>
    %28 = vector.broadcast %27 : vector<1x16xf32> to vector<4x16xf32>
    %29 = arith.subf %21, %28 : vector<4x16xf32>
    %30 = arith.mulf %29, %29 : vector<4x16xf32>
    %cst_29 = arith.constant dense<0.000000e+00> : vector<16xf32>
    %31 = vector.multi_reduction <add>, %30, %cst_29 [0] : vector<4x16xf32> to vector<16xf32>
    %32 = vector.shape_cast %31 : vector<16xf32> to vector<1x16xf32>
    %cst_30 = arith.constant 4.000000e+00 : f32
    %33 = vector.broadcast %cst_30 : f32 to vector<1x16xf32>
    %34 = arith.divf %32, %33 : vector<1x16xf32>
    %35 = vector.broadcast %27 : vector<1x16xf32> to vector<4x16xf32>
    %36 = arith.subf %21, %35 : vector<4x16xf32>
    %cst_31 = arith.constant 9.99999974E-6 : f32
    %37 = vector.broadcast %cst_31 : f32 to vector<1x16xf32>
    %38 = arith.addf %34, %37 : vector<1x16xf32>
    %39 = math.rsqrt %38 : vector<1x16xf32>
    %40 = vector.broadcast %39 : vector<1x16xf32> to vector<4x16xf32>
    %41 = arith.mulf %36, %40 : vector<4x16xf32>
    %cst_32 = arith.constant dense<0.000000e+00> : vector<8x16xf32>
    %42 = tpu.matmul %0, %41, %cst_32 {dimension_numbers = #tpu.dot_dimension_numbers<[1], [0], [0], [1], [0, 0, 1, 1], [], []>, precision = #tpu.contract_precision<fp32>} : vector<8x4xf32>, vector<4x16xf32>, vector<8x16xf32> -> vector<8x16xf32>
    %43 = arith.addf %42, %7 : vector<8x16xf32>
    %cst_33 = arith.constant 5.000000e-01 : f32
    %44 = vector.broadcast %cst_33 : f32 to vector<8x16xf32>
    %45 = arith.mulf %44, %43 : vector<8x16xf32>
    %cst_34 = arith.constant 0.707106769 : f32
    %46 = vector.broadcast %cst_34 : f32 to vector<8x16xf32>
    %47 = arith.mulf %43, %46 : vector<8x16xf32>
    %48 = math.erf %47 : vector<8x16xf32>
    %cst_35 = arith.constant 1.000000e+00 : f32
    %49 = vector.broadcast %cst_35 : f32 to vector<8x16xf32>
    %50 = arith.addf %49, %48 : vector<8x16xf32>
    %51 = arith.mulf %45, %50 : vector<8x16xf32>
    %cst_36 = arith.constant dense<0.000000e+00> : vector<8xf32>
    %52 = vector.multi_reduction <add>, %51, %cst_36 [1] : vector<8x16xf32> to vector<8xf32>
    %53 = vector.shape_cast %52 : vector<8xf32> to vector<8x1xf32>
    %cst_37 = arith.constant 1.600000e+01 : f32
    %54 = vector.broadcast %cst_37 : f32 to vector<8x1xf32>
    %55 = arith.divf %53, %54 : vector<8x1xf32>
    %56 = vector.broadcast %55 : vector<8x1xf32> to vector<8x16xf32>
    %57 = arith.subf %51, %56 : vector<8x16xf32>
    %58 = arith.mulf %57, %57 : vector<8x16xf32>
    %cst_38 = arith.constant dense<0.000000e+00> : vector<8xf32>
    %59 = vector.multi_reduction <add>, %58, %cst_38 [1] : vector<8x16xf32> to vector<8xf32>
    %60 = vector.shape_cast %59 : vector<8xf32> to vector<8x1xf32>
    %cst_39 = arith.constant 1.600000e+01 : f32
    %61 = vector.broadcast %cst_39 : f32 to vector<8x1xf32>
    %62 = arith.divf %60, %61 : vector<8x1xf32>
    %63 = vector.broadcast %55 : vector<8x1xf32> to vector<8x16xf32>
    %64 = arith.subf %51, %63 : vector<8x16xf32>
    %cst_40 = arith.constant 9.99999974E-6 : f32
    %65 = vector.broadcast %cst_40 : f32 to vector<8x1xf32>
    %66 = arith.addf %62, %65 : vector<8x1xf32>
    %67 = math.rsqrt %66 : vector<8x1xf32>
    %68 = vector.broadcast %67 : vector<8x1xf32> to vector<8x16xf32>
    %69 = arith.mulf %64, %68 : vector<8x16xf32>
    %cst_41 = arith.constant dense<0.000000e+00> : vector<16xf32>
    %70 = vector.multi_reduction <add>, %23, %cst_41 [0] : vector<4x16xf32> to vector<16xf32>
    %71 = vector.shape_cast %70 : vector<16xf32> to vector<1x16xf32>
    %cst_42 = arith.constant 4.000000e+00 : f32
    %72 = vector.broadcast %cst_42 : f32 to vector<1x16xf32>
    %73 = arith.divf %71, %72 : vector<1x16xf32>
    %74 = vector.broadcast %73 : vector<1x16xf32> to vector<4x16xf32>
    %75 = arith.subf %23, %74 : vector<4x16xf32>
    %76 = arith.mulf %75, %75 : vector<4x16xf32>
    %cst_43 = arith.constant dense<0.000000e+00> : vector<16xf32>
    %77 = vector.multi_reduction <add>, %76, %cst_43 [0] : vector<4x16xf32> to vector<16xf32>
    %78 = vector.shape_cast %77 : vector<16xf32> to vector<1x16xf32>
    %cst_44 = arith.constant 4.000000e+00 : f32
    %79 = vector.broadcast %cst_44 : f32 to vector<1x16xf32>
    %80 = arith.divf %78, %79 : vector<1x16xf32>
    %81 = vector.broadcast %73 : vector<1x16xf32> to vector<4x16xf32>
    %82 = arith.subf %23, %81 : vector<4x16xf32>
    %cst_45 = arith.constant 9.99999974E-6 : f32
    %83 = vector.broadcast %cst_45 : f32 to vector<1x16xf32>
    %84 = arith.addf %80, %83 : vector<1x16xf32>
    %85 = math.rsqrt %84 : vector<1x16xf32>
    %86 = vector.broadcast %85 : vector<1x16xf32> to vector<4x16xf32>
    %87 = arith.mulf %82, %86 : vector<4x16xf32>
    %cst_46 = arith.constant dense<0.000000e+00> : vector<8x16xf32>
    %88 = tpu.matmul %0, %87, %cst_46 {dimension_numbers = #tpu.dot_dimension_numbers<[1], [0], [0], [1], [0, 0, 1, 1], [], []>, precision = #tpu.contract_precision<fp32>} : vector<8x4xf32>, vector<4x16xf32>, vector<8x16xf32> -> vector<8x16xf32>
    %89 = arith.addf %88, %7 : vector<8x16xf32>
    %cst_47 = arith.constant 5.000000e-01 : f32
    %90 = vector.broadcast %cst_47 : f32 to vector<8x16xf32>
    %91 = arith.mulf %90, %89 : vector<8x16xf32>
    %cst_48 = arith.constant 0.707106769 : f32
    %92 = vector.broadcast %cst_48 : f32 to vector<8x16xf32>
    %93 = arith.mulf %89, %92 : vector<8x16xf32>
    %94 = math.erf %93 : vector<8x16xf32>
    %cst_49 = arith.constant 1.000000e+00 : f32
    %95 = vector.broadcast %cst_49 : f32 to vector<8x16xf32>
    %96 = arith.addf %95, %94 : vector<8x16xf32>
    %97 = arith.mulf %91, %96 : vector<8x16xf32>
    %cst_50 = arith.constant dense<0.000000e+00> : vector<8xf32>
    %98 = vector.multi_reduction <add>, %97, %cst_50 [1] : vector<8x16xf32> to vector<8xf32>
    %99 = vector.shape_cast %98 : vector<8xf32> to vector<8x1xf32>
    %cst_51 = arith.constant 1.600000e+01 : f32
    %100 = vector.broadcast %cst_51 : f32 to vector<8x1xf32>
    %101 = arith.divf %99, %100 : vector<8x1xf32>
    %102 = vector.broadcast %101 : vector<8x1xf32> to vector<8x16xf32>
    %103 = arith.subf %97, %102 : vector<8x16xf32>
    %104 = arith.mulf %103, %103 : vector<8x16xf32>
    %cst_52 = arith.constant dense<0.000000e+00> : vector<8xf32>
    %105 = vector.multi_reduction <add>, %104, %cst_52 [1] : vector<8x16xf32> to vector<8xf32>
    %106 = vector.shape_cast %105 : vector<8xf32> to vector<8x1xf32>
    %cst_53 = arith.constant 1.600000e+01 : f32
    %107 = vector.broadcast %cst_53 : f32 to vector<8x1xf32>
    %108 = arith.divf %106, %107 : vector<8x1xf32>
    %109 = vector.broadcast %101 : vector<8x1xf32> to vector<8x16xf32>
    %110 = arith.subf %97, %109 : vector<8x16xf32>
    %cst_54 = arith.constant 9.99999974E-6 : f32
    %111 = vector.broadcast %cst_54 : f32 to vector<8x1xf32>
    %112 = arith.addf %108, %111 : vector<8x1xf32>
    %113 = math.rsqrt %112 : vector<8x1xf32>
    %114 = vector.broadcast %113 : vector<8x1xf32> to vector<8x16xf32>
    %115 = arith.mulf %110, %114 : vector<8x16xf32>
    %cst_55 = arith.constant dense<0.000000e+00> : vector<8x16xf32>
    %116 = tpu.matmul %2, %69, %cst_55 {dimension_numbers = #tpu.dot_dimension_numbers<[1], [0], [0], [1], [0, 0, 1, 1], [], []>, precision = #tpu.contract_precision<fp32>} : vector<8x8xf32>, vector<8x16xf32>, vector<8x16xf32> -> vector<8x16xf32>
    %117 = arith.addf %116, %13 : vector<8x16xf32>
    %cst_56 = arith.constant dense<0.000000e+00> : vector<8x16xf32>
    %118 = tpu.matmul %2, %115, %cst_56 {dimension_numbers = #tpu.dot_dimension_numbers<[1], [0], [0], [1], [0, 0, 1, 1], [], []>, precision = #tpu.contract_precision<fp32>} : vector<8x8xf32>, vector<8x16xf32>, vector<8x16xf32> -> vector<8x16xf32>
    %119 = arith.addf %118, %13 : vector<8x16xf32>
    %120 = vector.extract_strided_slice %51 {offsets = [0, 0], sizes = [4, 16], strides = [1, 1]} : vector<8x16xf32> to vector<4x16xf32>
    %121 = vector.extract_strided_slice %69 {offsets = [4, 0], sizes = [4, 16], strides = [1, 1]} : vector<8x16xf32> to vector<4x16xf32>
    %cst_57 = arith.constant dense<0.000000e+00> : vector<4x16xf32>
    %122 = tpu.matmul %1, %121, %cst_57 {dimension_numbers = #tpu.dot_dimension_numbers<[1], [0], [0], [1], [0, 0, 1, 1], [], []>, precision = #tpu.contract_precision<fp32>} : vector<4x4xf32>, vector<4x16xf32>, vector<4x16xf32> -> vector<4x16xf32>
    %123 = arith.addf %122, %10 : vector<4x16xf32>
    %cst_58 = arith.constant 1.000000e+00 : f32
    %124 = vector.broadcast %cst_58 : f32 to vector<4x16xf32>
    %125 = arith.addf %123, %124 : vector<4x16xf32>
    %126 = arith.mulf %120, %125 : vector<4x16xf32>
    %cst_59 = arith.constant 1.000000e+00 : f32
    %127 = vector.broadcast %cst_59 : f32 to vector<8x16xf32>
    %128 = arith.addf %119, %127 : vector<8x16xf32>
    %129 = arith.mulf %69, %128 : vector<8x16xf32>
    %cst_60 = arith.constant dense<0.000000e+00> : vector<4x16xf32>
    %130 = tpu.matmul %3, %129, %cst_60 {dimension_numbers = #tpu.dot_dimension_numbers<[1], [0], [0], [1], [0, 0, 1, 1], [], []>, precision = #tpu.contract_precision<fp32>} : vector<4x8xf32>, vector<8x16xf32>, vector<4x16xf32> -> vector<4x16xf32>
    %131 = arith.addf %130, %16 : vector<4x16xf32>
    %132 = arith.addf %126, %131 : vector<4x16xf32>
    %cst_61 = arith.constant dense<0.000000e+00> : vector<4x16xf32>
    %133 = tpu.matmul %4, %132, %cst_61 {dimension_numbers = #tpu.dot_dimension_numbers<[1], [0], [0], [1], [0, 0, 1, 1], [], []>, precision = #tpu.contract_precision<fp32>} : vector<4x4xf32>, vector<4x16xf32>, vector<4x16xf32> -> vector<4x16xf32>
    %134 = arith.addf %133, %19 : vector<4x16xf32>
    %135 = arith.addf %21, %134 : vector<4x16xf32>
    %c0_62 = arith.constant 0 : index
    %c0_63 = arith.constant 0 : index
    %c0_64 = arith.constant 0 : index
    %c0_65 = arith.constant 0 : index
    %c0_66 = arith.constant 0 : index
    %136 = vector.load %arg13[%c0_62, %c0_63, %c0_64, %c0_65, %c0_66] : memref<1x2x4x4x16xf32, #tpu.memory_space<vmem>>, vector<1x1x1x4x16xf32>
    %137 = vector.shape_cast %136 : vector<1x1x1x4x16xf32> to vector<4x16xf32>
    %138 = vector.shape_cast %135 : vector<4x16xf32> to vector<1x1x1x4x16xf32>
    tpu.vector_store %arg13[%c0_62, %c0_63, %c0_64, %c0_65, %c0_66], %138 {strides = array<i32>} : memref<1x2x4x4x16xf32, #tpu.memory_space<vmem>>, vector<1x1x1x4x16xf32>,
    %139 = vector.extract_strided_slice %97 {offsets = [0, 0], sizes = [4, 16], strides = [1, 1]} : vector<8x16xf32> to vector<4x16xf32>
    %140 = vector.extract_strided_slice %115 {offsets = [4, 0], sizes = [4, 16], strides = [1, 1]} : vector<8x16xf32> to vector<4x16xf32>
    %cst_67 = arith.constant dense<0.000000e+00> : vector<4x16xf32>
    %141 = tpu.matmul %1, %140, %cst_67 {dimension_numbers = #tpu.dot_dimension_numbers<[1], [0], [0], [1], [0, 0, 1, 1], [], []>, precision = #tpu.contract_precision<fp32>} : vector<4x4xf32>, vector<4x16xf32>, vector<4x16xf32> -> vector<4x16xf32>
    %142 = arith.addf %141, %10 : vector<4x16xf32>
    %cst_68 = arith.constant 1.000000e+00 : f32
    %143 = vector.broadcast %cst_68 : f32 to vector<4x16xf32>
    %144 = arith.addf %142, %143 : vector<4x16xf32>
    %145 = arith.mulf %139, %144 : vector<4x16xf32>
    %cst_69 = arith.constant 1.000000e+00 : f32
    %146 = vector.broadcast %cst_69 : f32 to vector<8x16xf32>
    %147 = arith.addf %117, %146 : vector<8x16xf32>
    %148 = arith.mulf %115, %147 : vector<8x16xf32>
    %cst_70 = arith.constant dense<0.000000e+00> : vector<4x16xf32>
    %149 = tpu.matmul %3, %148, %cst_70 {dimension_numbers = #tpu.dot_dimension_numbers<[1], [0], [0], [1], [0, 0, 1, 1], [], []>, precision = #tpu.contract_precision<fp32>} : vector<4x8xf32>, vector<8x16xf32>, vector<4x16xf32> -> vector<4x16xf32>
    %150 = arith.addf %149, %16 : vector<4x16xf32>
    %151 = arith.addf %145, %150 : vector<4x16xf32>
    %cst_71 = arith.constant dense<0.000000e+00> : vector<4x16xf32>
    %152 = tpu.matmul %4, %151, %cst_71 {dimension_numbers = #tpu.dot_dimension_numbers<[1], [0], [0], [1], [0, 0, 1, 1], [], []>, precision = #tpu.contract_precision<fp32>} : vector<4x4xf32>, vector<4x16xf32>, vector<4x16xf32> -> vector<4x16xf32>
    %153 = arith.addf %152, %19 : vector<4x16xf32>
    %154 = arith.addf %23, %153 : vector<4x16xf32>
    %c0_72 = arith.constant 0 : index
    %c1_73 = arith.constant 1 : index
    %c0_74 = arith.constant 0 : index
    %c0_75 = arith.constant 0 : index
    %c0_76 = arith.constant 0 : index
    %155 = vector.load %arg13[%c0_72, %c1_73, %c0_74, %c0_75, %c0_76] : memref<1x2x4x4x16xf32, #tpu.memory_space<vmem>>, vector<1x1x1x4x16xf32>
    %156 = vector.shape_cast %155 : vector<1x1x1x4x16xf32> to vector<4x16xf32>
    %157 = vector.shape_cast %154 : vector<4x16xf32> to vector<1x1x1x4x16xf32>
    tpu.vector_store %arg13[%c0_72, %c1_73, %c0_74, %c0_75, %c0_76], %157 {strides = array<i32>} : memref<1x2x4x4x16xf32, #tpu.memory_space<vmem>>, vector<1x1x1x4x16xf32>,
    %c0_77 = arith.constant 0 : index
    %c0_78 = arith.constant 0 : index
    %c1_79 = arith.constant 1 : index
    %c0_80 = arith.constant 0 : index
    %c0_81 = arith.constant 0 : index
    %158 = vector.load %arg2[%c0_77, %c0_78, %c1_79, %c0_80, %c0_81] : memref<1x2x4x4x16xf32, #tpu.memory_space<vmem>>, vector<1x1x1x4x16xf32>
    %159 = vector.shape_cast %158 : vector<1x1x1x4x16xf32> to vector<4x16xf32>
    %c0_82 = arith.constant 0 : index
    %c1_83 = arith.constant 1 : index
    %c1_84 = arith.constant 1 : index
    %c0_85 = arith.constant 0 : index
    %c0_86 = arith.constant 0 : index
    %160 = vector.load %arg2[%c0_82, %c1_83, %c1_84, %c0_85, %c0_86] : memref<1x2x4x4x16xf32, #tpu.memory_space<vmem>>, vector<1x1x1x4x16xf32>
    %161 = vector.shape_cast %160 : vector<1x1x1x4x16xf32> to vector<4x16xf32>
    %cst_87 = arith.constant dense<0.000000e+00> : vector<16xf32>
    %162 = vector.multi_reduction <add>, %159, %cst_87 [0] : vector<4x16xf32> to vector<16xf32>
    %163 = vector.shape_cast %162 : vector<16xf32> to vector<1x16xf32>
    %cst_88 = arith.constant 4.000000e+00 : f32
    %164 = vector.broadcast %cst_88 : f32 to vector<1x16xf32>
    %165 = arith.divf %163, %164 : vector<1x16xf32>
    %166 = vector.broadcast %165 : vector<1x16xf32> to vector<4x16xf32>
    %167 = arith.subf %159, %166 : vector<4x16xf32>
    %168 = arith.mulf %167, %167 : vector<4x16xf32>
    %cst_89 = arith.constant dense<0.000000e+00> : vector<16xf32>
    %169 = vector.multi_reduction <add>, %168, %cst_89 [0] : vector<4x16xf32> to vector<16xf32>
    %170 = vector.shape_cast %169 : vector<16xf32> to vector<1x16xf32>
    %cst_90 = arith.constant 4.000000e+00 : f32
    %171 = vector.broadcast %cst_90 : f32 to vector<1x16xf32>
    %172 = arith.divf %170, %171 : vector<1x16xf32>
    %173 = vector.broadcast %165 : vector<1x16xf32> to vector<4x16xf32>
    %174 = arith.subf %159, %173 : vector<4x16xf32>
    %cst_91 = arith.constant 9.99999974E-6 : f32
    %175 = vector.broadcast %cst_91 : f32 to vector<1x16xf32>
    %176 = arith.addf %172, %175 : vector<1x16xf32>
    %177 = math.rsqrt %176 : vector<1x16xf32>
    %178 = vector.broadcast %177 : vector<1x16xf32> to vector<4x16xf32>
    %179 = arith.mulf %174, %178 : vector<4x16xf32>
    %cst_92 = arith.constant dense<0.000000e+00> : vector<8x16xf32>
    %180 = tpu.matmul %0, %179, %cst_92 {dimension_numbers = #tpu.dot_dimension_numbers<[1], [0], [0], [1], [0, 0, 1, 1], [], []>, precision = #tpu.contract_precision<fp32>} : vector<8x4xf32>, vector<4x16xf32>, vector<8x16xf32> -> vector<8x16xf32>
    %181 = arith.addf %180, %7 : vector<8x16xf32>
    %cst_93 = arith.constant 5.000000e-01 : f32
    %182 = vector.broadcast %cst_93 : f32 to vector<8x16xf32>
    %183 = arith.mulf %182, %181 : vector<8x16xf32>
    %cst_94 = arith.constant 0.707106769 : f32
    %184 = vector.broadcast %cst_94 : f32 to vector<8x16xf32>
    %185 = arith.mulf %181, %184 : vector<8x16xf32>
    %186 = math.erf %185 : vector<8x16xf32>
    %cst_95 = arith.constant 1.000000e+00 : f32
    %187 = vector.broadcast %cst_95 : f32 to vector<8x16xf32>
    %188 = arith.addf %187, %186 : vector<8x16xf32>
    %189 = arith.mulf %183, %188 : vector<8x16xf32>
    %cst_96 = arith.constant dense<0.000000e+00> : vector<8xf32>
    %190 = vector.multi_reduction <add>, %189, %cst_96 [1] : vector<8x16xf32> to vector<8xf32>
    %191 = vector.shape_cast %190 : vector<8xf32> to vector<8x1xf32>
    %cst_97 = arith.constant 1.600000e+01 : f32
    %192 = vector.broadcast %cst_97 : f32 to vector<8x1xf32>
    %193 = arith.divf %191, %192 : vector<8x1xf32>
    %194 = vector.broadcast %193 : vector<8x1xf32> to vector<8x16xf32>
    %195 = arith.subf %189, %194 : vector<8x16xf32>
    %196 = arith.mulf %195, %195 : vector<8x16xf32>
    %cst_98 = arith.constant dense<0.000000e+00> : vector<8xf32>
    %197 = vector.multi_reduction <add>, %196, %cst_98 [1] : vector<8x16xf32> to vector<8xf32>
    %198 = vector.shape_cast %197 : vector<8xf32> to vector<8x1xf32>
    %cst_99 = arith.constant 1.600000e+01 : f32
    %199 = vector.broadcast %cst_99 : f32 to vector<8x1xf32>
    %200 = arith.divf %198, %199 : vector<8x1xf32>
    %201 = vector.broadcast %193 : vector<8x1xf32> to vector<8x16xf32>
    %202 = arith.subf %189, %201 : vector<8x16xf32>
    %cst_100 = arith.constant 9.99999974E-6 : f32
    %203 = vector.broadcast %cst_100 : f32 to vector<8x1xf32>
    %204 = arith.addf %200, %203 : vector<8x1xf32>
    %205 = math.rsqrt %204 : vector<8x1xf32>
    %206 = vector.broadcast %205 : vector<8x1xf32> to vector<8x16xf32>
    %207 = arith.mulf %202, %206 : vector<8x16xf32>
    %cst_101 = arith.constant dense<0.000000e+00> : vector<16xf32>
    %208 = vector.multi_reduction <add>, %161, %cst_101 [0] : vector<4x16xf32> to vector<16xf32>
    %209 = vector.shape_cast %208 : vector<16xf32> to vector<1x16xf32>
    %cst_102 = arith.constant 4.000000e+00 : f32
    %210 = vector.broadcast %cst_102 : f32 to vector<1x16xf32>
    %211 = arith.divf %209, %210 : vector<1x16xf32>
    %212 = vector.broadcast %211 : vector<1x16xf32> to vector<4x16xf32>
    %213 = arith.subf %161, %212 : vector<4x16xf32>
    %214 = arith.mulf %213, %213 : vector<4x16xf32>
    %cst_103 = arith.constant dense<0.000000e+00> : vector<16xf32>
    %215 = vector.multi_reduction <add>, %214, %cst_103 [0] : vector<4x16xf32> to vector<16xf32>
    %216 = vector.shape_cast %215 : vector<16xf32> to vector<1x16xf32>
    %cst_104 = arith.constant 4.000000e+00 : f32
    %217 = vector.broadcast %cst_104 : f32 to vector<1x16xf32>
    %218 = arith.divf %216, %217 : vector<1x16xf32>
    %219 = vector.broadcast %211 : vector<1x16xf32> to vector<4x16xf32>
    %220 = arith.subf %161, %219 : vector<4x16xf32>
    %cst_105 = arith.constant 9.99999974E-6 : f32
    %221 = vector.broadcast %cst_105 : f32 to vector<1x16xf32>
    %222 = arith.addf %218, %221 : vector<1x16xf32>
    %223 = math.rsqrt %222 : vector<1x16xf32>
    %224 = vector.broadcast %223 : vector<1x16xf32> to vector<4x16xf32>
    %225 = arith.mulf %220, %224 : vector<4x16xf32>
    %cst_106 = arith.constant dense<0.000000e+00> : vector<8x16xf32>
    %226 = tpu.matmul %0, %225, %cst_106 {dimension_numbers = #tpu.dot_dimension_numbers<[1], [0], [0], [1], [0, 0, 1, 1], [], []>, precision = #tpu.contract_precision<fp32>} : vector<8x4xf32>, vector<4x16xf32>, vector<8x16xf32> -> vector<8x16xf32>
    %227 = arith.addf %226, %7 : vector<8x16xf32>
    %cst_107 = arith.constant 5.000000e-01 : f32
    %228 = vector.broadcast %cst_107 : f32 to vector<8x16xf32>
    %229 = arith.mulf %228, %227 : vector<8x16xf32>
    %cst_108 = arith.constant 0.707106769 : f32
    %230 = vector.broadcast %cst_108 : f32 to vector<8x16xf32>
    %231 = arith.mulf %227, %230 : vector<8x16xf32>
    %232 = math.erf %231 : vector<8x16xf32>
    %cst_109 = arith.constant 1.000000e+00 : f32
    %233 = vector.broadcast %cst_109 : f32 to vector<8x16xf32>
    %234 = arith.addf %233, %232 : vector<8x16xf32>
    %235 = arith.mulf %229, %234 : vector<8x16xf32>
    %cst_110 = arith.constant dense<0.000000e+00> : vector<8xf32>
    %236 = vector.multi_reduction <add>, %235, %cst_110 [1] : vector<8x16xf32> to vector<8xf32>
    %237 = vector.shape_cast %236 : vector<8xf32> to vector<8x1xf32>
    %cst_111 = arith.constant 1.600000e+01 : f32
    %238 = vector.broadcast %cst_111 : f32 to vector<8x1xf32>
    %239 = arith.divf %237, %238 : vector<8x1xf32>
    %240 = vector.broadcast %239 : vector<8x1xf32> to vector<8x16xf32>
    %241 = arith.subf %235, %240 : vector<8x16xf32>
    %242 = arith.mulf %241, %241 : vector<8x16xf32>
    %cst_112 = arith.constant dense<0.000000e+00> : vector<8xf32>
    %243 = vector.multi_reduction <add>, %242, %cst_112 [1] : vector<8x16xf32> to vector<8xf32>
    %244 = vector.shape_cast %243 : vector<8xf32> to vector<8x1xf32>
    %cst_113 = arith.constant 1.600000e+01 : f32
    %245 = vector.broadcast %cst_113 : f32 to vector<8x1xf32>
    %246 = arith.divf %244, %245 : vector<8x1xf32>
    %247 = vector.broadcast %239 : vector<8x1xf32> to vector<8x16xf32>
    %248 = arith.subf %235, %247 : vector<8x16xf32>
    %cst_114 = arith.constant 9.99999974E-6 : f32
    %249 = vector.broadcast %cst_114 : f32 to vector<8x1xf32>
    %250 = arith.addf %246, %249 : vector<8x1xf32>
    %251 = math.rsqrt %250 : vector<8x1xf32>
    %252 = vector.broadcast %251 : vector<8x1xf32> to vector<8x16xf32>
    %253 = arith.mulf %248, %252 : vector<8x16xf32>
    %cst_115 = arith.constant dense<0.000000e+00> : vector<8x16xf32>
    %254 = tpu.matmul %2, %207, %cst_115 {dimension_numbers = #tpu.dot_dimension_numbers<[1], [0], [0], [1], [0, 0, 1, 1], [], []>, precision = #tpu.contract_precision<fp32>} : vector<8x8xf32>, vector<8x16xf32>, vector<8x16xf32> -> vector<8x16xf32>
    %255 = arith.addf %254, %13 : vector<8x16xf32>
    %cst_116 = arith.constant dense<0.000000e+00> : vector<8x16xf32>
    %256 = tpu.matmul %2, %253, %cst_116 {dimension_numbers = #tpu.dot_dimension_numbers<[1], [0], [0], [1], [0, 0, 1, 1], [], []>, precision = #tpu.contract_precision<fp32>} : vector<8x8xf32>, vector<8x16xf32>, vector<8x16xf32> -> vector<8x16xf32>
    %257 = arith.addf %256, %13 : vector<8x16xf32>
    %258 = vector.extract_strided_slice %189 {offsets = [0, 0], sizes = [4, 16], strides = [1, 1]} : vector<8x16xf32> to vector<4x16xf32>
    %259 = vector.extract_strided_slice %207 {offsets = [4, 0], sizes = [4, 16], strides = [1, 1]} : vector<8x16xf32> to vector<4x16xf32>
    %cst_117 = arith.constant dense<0.000000e+00> : vector<4x16xf32>
    %260 = tpu.matmul %1, %259, %cst_117 {dimension_numbers = #tpu.dot_dimension_numbers<[1], [0], [0], [1], [0, 0, 1, 1], [], []>, precision = #tpu.contract_precision<fp32>} : vector<4x4xf32>, vector<4x16xf32>, vector<4x16xf32> -> vector<4x16xf32>
    %261 = arith.addf %260, %10 : vector<4x16xf32>
    %cst_118 = arith.constant 1.000000e+00 : f32
    %262 = vector.broadcast %cst_118 : f32 to vector<4x16xf32>
    %263 = arith.addf %261, %262 : vector<4x16xf32>
    %264 = arith.mulf %258, %263 : vector<4x16xf32>
    %cst_119 = arith.constant 1.000000e+00 : f32
    %265 = vector.broadcast %cst_119 : f32 to vector<8x16xf32>
    %266 = arith.addf %257, %265 : vector<8x16xf32>
    %267 = arith.mulf %207, %266 : vector<8x16xf32>
    %cst_120 = arith.constant dense<0.000000e+00> : vector<4x16xf32>
    %268 = tpu.matmul %3, %267, %cst_120 {dimension_numbers = #tpu.dot_dimension_numbers<[1], [0], [0], [1], [0, 0, 1, 1], [], []>, precision = #tpu.contract_precision<fp32>} : vector<4x8xf32>, vector<8x16xf32>, vector<4x16xf32> -> vector<4x16xf32>
    %269 = arith.addf %268, %16 : vector<4x16xf32>
    %270 = arith.addf %264, %269 : vector<4x16xf32>
    %cst_121 = arith.constant dense<0.000000e+00> : vector<4x16xf32>
    %271 = tpu.matmul %4, %270, %cst_121 {dimension_numbers = #tpu.dot_dimension_numbers<[1], [0], [0], [1], [0, 0, 1, 1], [], []>, precision = #tpu.contract_precision<fp32>} : vector<4x4xf32>, vector<4x16xf32>, vector<4x16xf32> -> vector<4x16xf32>
    %272 = arith.addf %271, %19 : vector<4x16xf32>
    %273 = arith.addf %159, %272 : vector<4x16xf32>
    %c0_122 = arith.constant 0 : index
    %c0_123 = arith.constant 0 : index
    %c1_124 = arith.constant 1 : index
    %c0_125 = arith.constant 0 : index
    %c0_126 = arith.constant 0 : index
    %274 = vector.load %arg13[%c0_122, %c0_123, %c1_124, %c0_125, %c0_126] : memref<1x2x4x4x16xf32, #tpu.memory_space<vmem>>, vector<1x1x1x4x16xf32>
    %275 = vector.shape_cast %274 : vector<1x1x1x4x16xf32> to vector<4x16xf32>
    %276 = vector.shape_cast %273 : vector<4x16xf32> to vector<1x1x1x4x16xf32>
    tpu.vector_store %arg13[%c0_122, %c0_123, %c1_124, %c0_125, %c0_126], %276 {strides = array<i32>} : memref<1x2x4x4x16xf32, #tpu.memory_space<vmem>>, vector<1x1x1x4x16xf32>,
    %277 = vector.extract_strided_slice %235 {offsets = [0, 0], sizes = [4, 16], strides = [1, 1]} : vector<8x16xf32> to vector<4x16xf32>
    %278 = vector.extract_strided_slice %253 {offsets = [4, 0], sizes = [4, 16], strides = [1, 1]} : vector<8x16xf32> to vector<4x16xf32>
    %cst_127 = arith.constant dense<0.000000e+00> : vector<4x16xf32>
    %279 = tpu.matmul %1, %278, %cst_127 {dimension_numbers = #tpu.dot_dimension_numbers<[1], [0], [0], [1], [0, 0, 1, 1], [], []>, precision = #tpu.contract_precision<fp32>} : vector<4x4xf32>, vector<4x16xf32>, vector<4x16xf32> -> vector<4x16xf32>
    %280 = arith.addf %279, %10 : vector<4x16xf32>
    %cst_128 = arith.constant 1.000000e+00 : f32
    %281 = vector.broadcast %cst_128 : f32 to vector<4x16xf32>
    %282 = arith.addf %280, %281 : vector<4x16xf32>
    %283 = arith.mulf %277, %282 : vector<4x16xf32>
    %cst_129 = arith.constant 1.000000e+00 : f32
    %284 = vector.broadcast %cst_129 : f32 to vector<8x16xf32>
    %285 = arith.addf %255, %284 : vector<8x16xf32>
    %286 = arith.mulf %253, %285 : vector<8x16xf32>
    %cst_130 = arith.constant dense<0.000000e+00> : vector<4x16xf32>
    %287 = tpu.matmul %3, %286, %cst_130 {dimension_numbers = #tpu.dot_dimension_numbers<[1], [0], [0], [1], [0, 0, 1, 1], [], []>, precision = #tpu.contract_precision<fp32>} : vector<4x8xf32>, vector<8x16xf32>, vector<4x16xf32> -> vector<4x16xf32>
    %288 = arith.addf %287, %16 : vector<4x16xf32>
    %289 = arith.addf %283, %288 : vector<4x16xf32>
    %cst_131 = arith.constant dense<0.000000e+00> : vector<4x16xf32>
    %290 = tpu.matmul %4, %289, %cst_131 {dimension_numbers = #tpu.dot_dimension_numbers<[1], [0], [0], [1], [0, 0, 1, 1], [], []>, precision = #tpu.contract_precision<fp32>} : vector<4x4xf32>, vector<4x16xf32>, vector<4x16xf32> -> vector<4x16xf32>
    %291 = arith.addf %290, %19 : vector<4x16xf32>
    %292 = arith.addf %161, %291 : vector<4x16xf32>
    %c0_132 = arith.constant 0 : index
    %c1_133 = arith.constant 1 : index
    %c1_134 = arith.constant 1 : index
    %c0_135 = arith.constant 0 : index
    %c0_136 = arith.constant 0 : index
    %293 = vector.load %arg13[%c0_132, %c1_133, %c1_134, %c0_135, %c0_136] : memref<1x2x4x4x16xf32, #tpu.memory_space<vmem>>, vector<1x1x1x4x16xf32>
    %294 = vector.shape_cast %293 : vector<1x1x1x4x16xf32> to vector<4x16xf32>
    %295 = vector.shape_cast %292 : vector<4x16xf32> to vector<1x1x1x4x16xf32>
    tpu.vector_store %arg13[%c0_132, %c1_133, %c1_134, %c0_135, %c0_136], %295 {strides = array<i32>} : memref<1x2x4x4x16xf32, #tpu.memory_space<vmem>>, vector<1x1x1x4x16xf32>,
    %c0_137 = arith.constant 0 : index
    %c0_138 = arith.constant 0 : index
    %c2 = arith.constant 2 : index
    %c0_139 = arith.constant 0 : index
    %c0_140 = arith.constant 0 : index
    %296 = vector.load %arg2[%c0_137, %c0_138, %c2, %c0_139, %c0_140] : memref<1x2x4x4x16xf32, #tpu.memory_space<vmem>>, vector<1x1x1x4x16xf32>
    %297 = vector.shape_cast %296 : vector<1x1x1x4x16xf32> to vector<4x16xf32>
    %c0_141 = arith.constant 0 : index
    %c1_142 = arith.constant 1 : index
    %c2_143 = arith.constant 2 : index
    %c0_144 = arith.constant 0 : index
    %c0_145 = arith.constant 0 : index
    %298 = vector.load %arg2[%c0_141, %c1_142, %c2_143, %c0_144, %c0_145] : memref<1x2x4x4x16xf32, #tpu.memory_space<vmem>>, vector<1x1x1x4x16xf32>
    %299 = vector.shape_cast %298 : vector<1x1x1x4x16xf32> to vector<4x16xf32>
    %cst_146 = arith.constant dense<0.000000e+00> : vector<16xf32>
    %300 = vector.multi_reduction <add>, %297, %cst_146 [0] : vector<4x16xf32> to vector<16xf32>
    %301 = vector.shape_cast %300 : vector<16xf32> to vector<1x16xf32>
    %cst_147 = arith.constant 4.000000e+00 : f32
    %302 = vector.broadcast %cst_147 : f32 to vector<1x16xf32>
    %303 = arith.divf %301, %302 : vector<1x16xf32>
    %304 = vector.broadcast %303 : vector<1x16xf32> to vector<4x16xf32>
    %305 = arith.subf %297, %304 : vector<4x16xf32>
    %306 = arith.mulf %305, %305 : vector<4x16xf32>
    %cst_148 = arith.constant dense<0.000000e+00> : vector<16xf32>
    %307 = vector.multi_reduction <add>, %306, %cst_148 [0] : vector<4x16xf32> to vector<16xf32>
    %308 = vector.shape_cast %307 : vector<16xf32> to vector<1x16xf32>
    %cst_149 = arith.constant 4.000000e+00 : f32
    %309 = vector.broadcast %cst_149 : f32 to vector<1x16xf32>
    %310 = arith.divf %308, %309 : vector<1x16xf32>
    %311 = vector.broadcast %303 : vector<1x16xf32> to vector<4x16xf32>
    %312 = arith.subf %297, %311 : vector<4x16xf32>
    %cst_150 = arith.constant 9.99999974E-6 : f32
    %313 = vector.broadcast %cst_150 : f32 to vector<1x16xf32>
    %314 = arith.addf %310, %313 : vector<1x16xf32>
    %315 = math.rsqrt %314 : vector<1x16xf32>
    %316 = vector.broadcast %315 : vector<1x16xf32> to vector<4x16xf32>
    %317 = arith.mulf %312, %316 : vector<4x16xf32>
    %cst_151 = arith.constant dense<0.000000e+00> : vector<8x16xf32>
    %318 = tpu.matmul %0, %317, %cst_151 {dimension_numbers = #tpu.dot_dimension_numbers<[1], [0], [0], [1], [0, 0, 1, 1], [], []>, precision = #tpu.contract_precision<fp32>} : vector<8x4xf32>, vector<4x16xf32>, vector<8x16xf32> -> vector<8x16xf32>
    %319 = arith.addf %318, %7 : vector<8x16xf32>
    %cst_152 = arith.constant 5.000000e-01 : f32
    %320 = vector.broadcast %cst_152 : f32 to vector<8x16xf32>
    %321 = arith.mulf %320, %319 : vector<8x16xf32>
    %cst_153 = arith.constant 0.707106769 : f32
    %322 = vector.broadcast %cst_153 : f32 to vector<8x16xf32>
    %323 = arith.mulf %319, %322 : vector<8x16xf32>
    %324 = math.erf %323 : vector<8x16xf32>
    %cst_154 = arith.constant 1.000000e+00 : f32
    %325 = vector.broadcast %cst_154 : f32 to vector<8x16xf32>
    %326 = arith.addf %325, %324 : vector<8x16xf32>
    %327 = arith.mulf %321, %326 : vector<8x16xf32>
    %cst_155 = arith.constant dense<0.000000e+00> : vector<8xf32>
    %328 = vector.multi_reduction <add>, %327, %cst_155 [1] : vector<8x16xf32> to vector<8xf32>
    %329 = vector.shape_cast %328 : vector<8xf32> to vector<8x1xf32>
    %cst_156 = arith.constant 1.600000e+01 : f32
    %330 = vector.broadcast %cst_156 : f32 to vector<8x1xf32>
    %331 = arith.divf %329, %330 : vector<8x1xf32>
    %332 = vector.broadcast %331 : vector<8x1xf32> to vector<8x16xf32>
    %333 = arith.subf %327, %332 : vector<8x16xf32>
    %334 = arith.mulf %333, %333 : vector<8x16xf32>
    %cst_157 = arith.constant dense<0.000000e+00> : vector<8xf32>
    %335 = vector.multi_reduction <add>, %334, %cst_157 [1] : vector<8x16xf32> to vector<8xf32>
    %336 = vector.shape_cast %335 : vector<8xf32> to vector<8x1xf32>
    %cst_158 = arith.constant 1.600000e+01 : f32
    %337 = vector.broadcast %cst_158 : f32 to vector<8x1xf32>
    %338 = arith.divf %336, %337 : vector<8x1xf32>
    %339 = vector.broadcast %331 : vector<8x1xf32> to vector<8x16xf32>
    %340 = arith.subf %327, %339 : vector<8x16xf32>
    %cst_159 = arith.constant 9.99999974E-6 : f32
    %341 = vector.broadcast %cst_159 : f32 to vector<8x1xf32>
    %342 = arith.addf %338, %341 : vector<8x1xf32>
    %343 = math.rsqrt %342 : vector<8x1xf32>
    %344 = vector.broadcast %343 : vector<8x1xf32> to vector<8x16xf32>
    %345 = arith.mulf %340, %344 : vector<8x16xf32>
    %cst_160 = arith.constant dense<0.000000e+00> : vector<16xf32>
    %346 = vector.multi_reduction <add>, %299, %cst_160 [0] : vector<4x16xf32> to vector<16xf32>
    %347 = vector.shape_cast %346 : vector<16xf32> to vector<1x16xf32>
    %cst_161 = arith.constant 4.000000e+00 : f32
    %348 = vector.broadcast %cst_161 : f32 to vector<1x16xf32>
    %349 = arith.divf %347, %348 : vector<1x16xf32>
    %350 = vector.broadcast %349 : vector<1x16xf32> to vector<4x16xf32>
    %351 = arith.subf %299, %350 : vector<4x16xf32>
    %352 = arith.mulf %351, %351 : vector<4x16xf32>
    %cst_162 = arith.constant dense<0.000000e+00> : vector<16xf32>
    %353 = vector.multi_reduction <add>, %352, %cst_162 [0] : vector<4x16xf32> to vector<16xf32>
    %354 = vector.shape_cast %353 : vector<16xf32> to vector<1x16xf32>
    %cst_163 = arith.constant 4.000000e+00 : f32
    %355 = vector.broadcast %cst_163 : f32 to vector<1x16xf32>
    %356 = arith.divf %354, %355 : vector<1x16xf32>
    %357 = vector.broadcast %349 : vector<1x16xf32> to vector<4x16xf32>
    %358 = arith.subf %299, %357 : vector<4x16xf32>
    %cst_164 = arith.constant 9.99999974E-6 : f32
    %359 = vector.broadcast %cst_164 : f32 to vector<1x16xf32>
    %360 = arith.addf %356, %359 : vector<1x16xf32>
    %361 = math.rsqrt %360 : vector<1x16xf32>
    %362 = vector.broadcast %361 : vector<1x16xf32> to vector<4x16xf32>
    %363 = arith.mulf %358, %362 : vector<4x16xf32>
    %cst_165 = arith.constant dense<0.000000e+00> : vector<8x16xf32>
    %364 = tpu.matmul %0, %363, %cst_165 {dimension_numbers = #tpu.dot_dimension_numbers<[1], [0], [0], [1], [0, 0, 1, 1], [], []>, precision = #tpu.contract_precision<fp32>} : vector<8x4xf32>, vector<4x16xf32>, vector<8x16xf32> -> vector<8x16xf32>
    %365 = arith.addf %364, %7 : vector<8x16xf32>
    %cst_166 = arith.constant 5.000000e-01 : f32
    %366 = vector.broadcast %cst_166 : f32 to vector<8x16xf32>
    %367 = arith.mulf %366, %365 : vector<8x16xf32>
    %cst_167 = arith.constant 0.707106769 : f32
    %368 = vector.broadcast %cst_167 : f32 to vector<8x16xf32>
    %369 = arith.mulf %365, %368 : vector<8x16xf32>
    %370 = math.erf %369 : vector<8x16xf32>
    %cst_168 = arith.constant 1.000000e+00 : f32
    %371 = vector.broadcast %cst_168 : f32 to vector<8x16xf32>
    %372 = arith.addf %371, %370 : vector<8x16xf32>
    %373 = arith.mulf %367, %372 : vector<8x16xf32>
    %cst_169 = arith.constant dense<0.000000e+00> : vector<8xf32>
    %374 = vector.multi_reduction <add>, %373, %cst_169 [1] : vector<8x16xf32> to vector<8xf32>
    %375 = vector.shape_cast %374 : vector<8xf32> to vector<8x1xf32>
    %cst_170 = arith.constant 1.600000e+01 : f32
    %376 = vector.broadcast %cst_170 : f32 to vector<8x1xf32>
    %377 = arith.divf %375, %376 : vector<8x1xf32>
    %378 = vector.broadcast %377 : vector<8x1xf32> to vector<8x16xf32>
    %379 = arith.subf %373, %378 : vector<8x16xf32>
    %380 = arith.mulf %379, %379 : vector<8x16xf32>
    %cst_171 = arith.constant dense<0.000000e+00> : vector<8xf32>
    %381 = vector.multi_reduction <add>, %380, %cst_171 [1] : vector<8x16xf32> to vector<8xf32>
    %382 = vector.shape_cast %381 : vector<8xf32> to vector<8x1xf32>
    %cst_172 = arith.constant 1.600000e+01 : f32
    %383 = vector.broadcast %cst_172 : f32 to vector<8x1xf32>
    %384 = arith.divf %382, %383 : vector<8x1xf32>
    %385 = vector.broadcast %377 : vector<8x1xf32> to vector<8x16xf32>
    %386 = arith.subf %373, %385 : vector<8x16xf32>
    %cst_173 = arith.constant 9.99999974E-6 : f32
    %387 = vector.broadcast %cst_173 : f32 to vector<8x1xf32>
    %388 = arith.addf %384, %387 : vector<8x1xf32>
    %389 = math.rsqrt %388 : vector<8x1xf32>
    %390 = vector.broadcast %389 : vector<8x1xf32> to vector<8x16xf32>
    %391 = arith.mulf %386, %390 : vector<8x16xf32>
    %cst_174 = arith.constant dense<0.000000e+00> : vector<8x16xf32>
    %392 = tpu.matmul %2, %345, %cst_174 {dimension_numbers = #tpu.dot_dimension_numbers<[1], [0], [0], [1], [0, 0, 1, 1], [], []>, precision = #tpu.contract_precision<fp32>} : vector<8x8xf32>, vector<8x16xf32>, vector<8x16xf32> -> vector<8x16xf32>
    %393 = arith.addf %392, %13 : vector<8x16xf32>
    %cst_175 = arith.constant dense<0.000000e+00> : vector<8x16xf32>
    %394 = tpu.matmul %2, %391, %cst_175 {dimension_numbers = #tpu.dot_dimension_numbers<[1], [0], [0], [1], [0, 0, 1, 1], [], []>, precision = #tpu.contract_precision<fp32>} : vector<8x8xf32>, vector<8x16xf32>, vector<8x16xf32> -> vector<8x16xf32>
    %395 = arith.addf %394, %13 : vector<8x16xf32>
    %396 = vector.extract_strided_slice %327 {offsets = [0, 0], sizes = [4, 16], strides = [1, 1]} : vector<8x16xf32> to vector<4x16xf32>
    %397 = vector.extract_strided_slice %345 {offsets = [4, 0], sizes = [4, 16], strides = [1, 1]} : vector<8x16xf32> to vector<4x16xf32>
    %cst_176 = arith.constant dense<0.000000e+00> : vector<4x16xf32>
    %398 = tpu.matmul %1, %397, %cst_176 {dimension_numbers = #tpu.dot_dimension_numbers<[1], [0], [0], [1], [0, 0, 1, 1], [], []>, precision = #tpu.contract_precision<fp32>} : vector<4x4xf32>, vector<4x16xf32>, vector<4x16xf32> -> vector<4x16xf32>
    %399 = arith.addf %398, %10 : vector<4x16xf32>
    %cst_177 = arith.constant 1.000000e+00 : f32
    %400 = vector.broadcast %cst_177 : f32 to vector<4x16xf32>
    %401 = arith.addf %399, %400 : vector<4x16xf32>
    %402 = arith.mulf %396, %401 : vector<4x16xf32>
    %cst_178 = arith.constant 1.000000e+00 : f32
    %403 = vector.broadcast %cst_178 : f32 to vector<8x16xf32>
    %404 = arith.addf %395, %403 : vector<8x16xf32>
    %405 = arith.mulf %345, %404 : vector<8x16xf32>
    %cst_179 = arith.constant dense<0.000000e+00> : vector<4x16xf32>
    %406 = tpu.matmul %3, %405, %cst_179 {dimension_numbers = #tpu.dot_dimension_numbers<[1], [0], [0], [1], [0, 0, 1, 1], [], []>, precision = #tpu.contract_precision<fp32>} : vector<4x8xf32>, vector<8x16xf32>, vector<4x16xf32> -> vector<4x16xf32>
    %407 = arith.addf %406, %16 : vector<4x16xf32>
    %408 = arith.addf %402, %407 : vector<4x16xf32>
    %cst_180 = arith.constant dense<0.000000e+00> : vector<4x16xf32>
    %409 = tpu.matmul %4, %408, %cst_180 {dimension_numbers = #tpu.dot_dimension_numbers<[1], [0], [0], [1], [0, 0, 1, 1], [], []>, precision = #tpu.contract_precision<fp32>} : vector<4x4xf32>, vector<4x16xf32>, vector<4x16xf32> -> vector<4x16xf32>
    %410 = arith.addf %409, %19 : vector<4x16xf32>
    %411 = arith.addf %297, %410 : vector<4x16xf32>
    %c0_181 = arith.constant 0 : index
    %c0_182 = arith.constant 0 : index
    %c2_183 = arith.constant 2 : index
    %c0_184 = arith.constant 0 : index
    %c0_185 = arith.constant 0 : index
    %412 = vector.load %arg13[%c0_181, %c0_182, %c2_183, %c0_184, %c0_185] : memref<1x2x4x4x16xf32, #tpu.memory_space<vmem>>, vector<1x1x1x4x16xf32>
    %413 = vector.shape_cast %412 : vector<1x1x1x4x16xf32> to vector<4x16xf32>
    %414 = vector.shape_cast %411 : vector<4x16xf32> to vector<1x1x1x4x16xf32>
    tpu.vector_store %arg13[%c0_181, %c0_182, %c2_183, %c0_184, %c0_185], %414 {strides = array<i32>} : memref<1x2x4x4x16xf32, #tpu.memory_space<vmem>>, vector<1x1x1x4x16xf32>,
    %415 = vector.extract_strided_slice %373 {offsets = [0, 0], sizes = [4, 16], strides = [1, 1]} : vector<8x16xf32> to vector<4x16xf32>
    %416 = vector.extract_strided_slice %391 {offsets = [4, 0], sizes = [4, 16], strides = [1, 1]} : vector<8x16xf32> to vector<4x16xf32>
    %cst_186 = arith.constant dense<0.000000e+00> : vector<4x16xf32>
    %417 = tpu.matmul %1, %416, %cst_186 {dimension_numbers = #tpu.dot_dimension_numbers<[1], [0], [0], [1], [0, 0, 1, 1], [], []>, precision = #tpu.contract_precision<fp32>} : vector<4x4xf32>, vector<4x16xf32>, vector<4x16xf32> -> vector<4x16xf32>
    %418 = arith.addf %417, %10 : vector<4x16xf32>
    %cst_187 = arith.constant 1.000000e+00 : f32
    %419 = vector.broadcast %cst_187 : f32 to vector<4x16xf32>
    %420 = arith.addf %418, %419 : vector<4x16xf32>
    %421 = arith.mulf %415, %420 : vector<4x16xf32>
    %cst_188 = arith.constant 1.000000e+00 : f32
    %422 = vector.broadcast %cst_188 : f32 to vector<8x16xf32>
    %423 = arith.addf %393, %422 : vector<8x16xf32>
    %424 = arith.mulf %391, %423 : vector<8x16xf32>
    %cst_189 = arith.constant dense<0.000000e+00> : vector<4x16xf32>
    %425 = tpu.matmul %3, %424, %cst_189 {dimension_numbers = #tpu.dot_dimension_numbers<[1], [0], [0], [1], [0, 0, 1, 1], [], []>, precision = #tpu.contract_precision<fp32>} : vector<4x8xf32>, vector<8x16xf32>, vector<4x16xf32> -> vector<4x16xf32>
    %426 = arith.addf %425, %16 : vector<4x16xf32>
    %427 = arith.addf %421, %426 : vector<4x16xf32>
    %cst_190 = arith.constant dense<0.000000e+00> : vector<4x16xf32>
    %428 = tpu.matmul %4, %427, %cst_190 {dimension_numbers = #tpu.dot_dimension_numbers<[1], [0], [0], [1], [0, 0, 1, 1], [], []>, precision = #tpu.contract_precision<fp32>} : vector<4x4xf32>, vector<4x16xf32>, vector<4x16xf32> -> vector<4x16xf32>
    %429 = arith.addf %428, %19 : vector<4x16xf32>
    %430 = arith.addf %299, %429 : vector<4x16xf32>
    %c0_191 = arith.constant 0 : index
    %c1_192 = arith.constant 1 : index
    %c2_193 = arith.constant 2 : index
    %c0_194 = arith.constant 0 : index
    %c0_195 = arith.constant 0 : index
    %431 = vector.load %arg13[%c0_191, %c1_192, %c2_193, %c0_194, %c0_195] : memref<1x2x4x4x16xf32, #tpu.memory_space<vmem>>, vector<1x1x1x4x16xf32>
    %432 = vector.shape_cast %431 : vector<1x1x1x4x16xf32> to vector<4x16xf32>
    %433 = vector.shape_cast %430 : vector<4x16xf32> to vector<1x1x1x4x16xf32>
    tpu.vector_store %arg13[%c0_191, %c1_192, %c2_193, %c0_194, %c0_195], %433 {strides = array<i32>} : memref<1x2x4x4x16xf32, #tpu.memory_space<vmem>>, vector<1x1x1x4x16xf32>,
    %c0_196 = arith.constant 0 : index
    %c0_197 = arith.constant 0 : index
    %c3 = arith.constant 3 : index
    %c0_198 = arith.constant 0 : index
    %c0_199 = arith.constant 0 : index
    %434 = vector.load %arg2[%c0_196, %c0_197, %c3, %c0_198, %c0_199] : memref<1x2x4x4x16xf32, #tpu.memory_space<vmem>>, vector<1x1x1x4x16xf32>
    %435 = vector.shape_cast %434 : vector<1x1x1x4x16xf32> to vector<4x16xf32>
    %c0_200 = arith.constant 0 : index
    %c1_201 = arith.constant 1 : index
    %c3_202 = arith.constant 3 : index
    %c0_203 = arith.constant 0 : index
    %c0_204 = arith.constant 0 : index
    %436 = vector.load %arg2[%c0_200, %c1_201, %c3_202, %c0_203, %c0_204] : memref<1x2x4x4x16xf32, #tpu.memory_space<vmem>>, vector<1x1x1x4x16xf32>
    %437 = vector.shape_cast %436 : vector<1x1x1x4x16xf32> to vector<4x16xf32>
    %cst_205 = arith.constant dense<0.000000e+00> : vector<16xf32>
    %438 = vector.multi_reduction <add>, %435, %cst_205 [0] : vector<4x16xf32> to vector<16xf32>
    %439 = vector.shape_cast %438 : vector<16xf32> to vector<1x16xf32>
    %cst_206 = arith.constant 4.000000e+00 : f32
    %440 = vector.broadcast %cst_206 : f32 to vector<1x16xf32>
    %441 = arith.divf %439, %440 : vector<1x16xf32>
    %442 = vector.broadcast %441 : vector<1x16xf32> to vector<4x16xf32>
    %443 = arith.subf %435, %442 : vector<4x16xf32>
    %444 = arith.mulf %443, %443 : vector<4x16xf32>
    %cst_207 = arith.constant dense<0.000000e+00> : vector<16xf32>
    %445 = vector.multi_reduction <add>, %444, %cst_207 [0] : vector<4x16xf32> to vector<16xf32>
    %446 = vector.shape_cast %445 : vector<16xf32> to vector<1x16xf32>
    %cst_208 = arith.constant 4.000000e+00 : f32
    %447 = vector.broadcast %cst_208 : f32 to vector<1x16xf32>
    %448 = arith.divf %446, %447 : vector<1x16xf32>
    %449 = vector.broadcast %441 : vector<1x16xf32> to vector<4x16xf32>
    %450 = arith.subf %435, %449 : vector<4x16xf32>
    %cst_209 = arith.constant 9.99999974E-6 : f32
    %451 = vector.broadcast %cst_209 : f32 to vector<1x16xf32>
    %452 = arith.addf %448, %451 : vector<1x16xf32>
    %453 = math.rsqrt %452 : vector<1x16xf32>
    %454 = vector.broadcast %453 : vector<1x16xf32> to vector<4x16xf32>
    %455 = arith.mulf %450, %454 : vector<4x16xf32>
    %cst_210 = arith.constant dense<0.000000e+00> : vector<8x16xf32>
    %456 = tpu.matmul %0, %455, %cst_210 {dimension_numbers = #tpu.dot_dimension_numbers<[1], [0], [0], [1], [0, 0, 1, 1], [], []>, precision = #tpu.contract_precision<fp32>} : vector<8x4xf32>, vector<4x16xf32>, vector<8x16xf32> -> vector<8x16xf32>
    %457 = arith.addf %456, %7 : vector<8x16xf32>
    %cst_211 = arith.constant 5.000000e-01 : f32
    %458 = vector.broadcast %cst_211 : f32 to vector<8x16xf32>
    %459 = arith.mulf %458, %457 : vector<8x16xf32>
    %cst_212 = arith.constant 0.707106769 : f32
    %460 = vector.broadcast %cst_212 : f32 to vector<8x16xf32>
    %461 = arith.mulf %457, %460 : vector<8x16xf32>
    %462 = math.erf %461 : vector<8x16xf32>
    %cst_213 = arith.constant 1.000000e+00 : f32
    %463 = vector.broadcast %cst_213 : f32 to vector<8x16xf32>
    %464 = arith.addf %463, %462 : vector<8x16xf32>
    %465 = arith.mulf %459, %464 : vector<8x16xf32>
    %cst_214 = arith.constant dense<0.000000e+00> : vector<8xf32>
    %466 = vector.multi_reduction <add>, %465, %cst_214 [1] : vector<8x16xf32> to vector<8xf32>
    %467 = vector.shape_cast %466 : vector<8xf32> to vector<8x1xf32>
    %cst_215 = arith.constant 1.600000e+01 : f32
    %468 = vector.broadcast %cst_215 : f32 to vector<8x1xf32>
    %469 = arith.divf %467, %468 : vector<8x1xf32>
    %470 = vector.broadcast %469 : vector<8x1xf32> to vector<8x16xf32>
    %471 = arith.subf %465, %470 : vector<8x16xf32>
    %472 = arith.mulf %471, %471 : vector<8x16xf32>
    %cst_216 = arith.constant dense<0.000000e+00> : vector<8xf32>
    %473 = vector.multi_reduction <add>, %472, %cst_216 [1] : vector<8x16xf32> to vector<8xf32>
    %474 = vector.shape_cast %473 : vector<8xf32> to vector<8x1xf32>
    %cst_217 = arith.constant 1.600000e+01 : f32
    %475 = vector.broadcast %cst_217 : f32 to vector<8x1xf32>
    %476 = arith.divf %474, %475 : vector<8x1xf32>
    %477 = vector.broadcast %469 : vector<8x1xf32> to vector<8x16xf32>
    %478 = arith.subf %465, %477 : vector<8x16xf32>
    %cst_218 = arith.constant 9.99999974E-6 : f32
    %479 = vector.broadcast %cst_218 : f32 to vector<8x1xf32>
    %480 = arith.addf %476, %479 : vector<8x1xf32>
    %481 = math.rsqrt %480 : vector<8x1xf32>
    %482 = vector.broadcast %481 : vector<8x1xf32> to vector<8x16xf32>
    %483 = arith.mulf %478, %482 : vector<8x16xf32>
    %cst_219 = arith.constant dense<0.000000e+00> : vector<16xf32>
    %484 = vector.multi_reduction <add>, %437, %cst_219 [0] : vector<4x16xf32> to vector<16xf32>
    %485 = vector.shape_cast %484 : vector<16xf32> to vector<1x16xf32>
    %cst_220 = arith.constant 4.000000e+00 : f32
    %486 = vector.broadcast %cst_220 : f32 to vector<1x16xf32>
    %487 = arith.divf %485, %486 : vector<1x16xf32>
    %488 = vector.broadcast %487 : vector<1x16xf32> to vector<4x16xf32>
    %489 = arith.subf %437, %488 : vector<4x16xf32>
    %490 = arith.mulf %489, %489 : vector<4x16xf32>
    %cst_221 = arith.constant dense<0.000000e+00> : vector<16xf32>
    %491 = vector.multi_reduction <add>, %490, %cst_221 [0] : vector<4x16xf32> to vector<16xf32>
    %492 = vector.shape_cast %491 : vector<16xf32> to vector<1x16xf32>
    %cst_222 = arith.constant 4.000000e+00 : f32
    %493 = vector.broadcast %cst_222 : f32 to vector<1x16xf32>
    %494 = arith.divf %492, %493 : vector<1x16xf32>
    %495 = vector.broadcast %487 : vector<1x16xf32> to vector<4x16xf32>
    %496 = arith.subf %437, %495 : vector<4x16xf32>
    %cst_223 = arith.constant 9.99999974E-6 : f32
    %497 = vector.broadcast %cst_223 : f32 to vector<1x16xf32>
    %498 = arith.addf %494, %497 : vector<1x16xf32>
    %499 = math.rsqrt %498 : vector<1x16xf32>
    %500 = vector.broadcast %499 : vector<1x16xf32> to vector<4x16xf32>
    %501 = arith.mulf %496, %500 : vector<4x16xf32>
    %cst_224 = arith.constant dense<0.000000e+00> : vector<8x16xf32>
    %502 = tpu.matmul %0, %501, %cst_224 {dimension_numbers = #tpu.dot_dimension_numbers<[1], [0], [0], [1], [0, 0, 1, 1], [], []>, precision = #tpu.contract_precision<fp32>} : vector<8x4xf32>, vector<4x16xf32>, vector<8x16xf32> -> vector<8x16xf32>
    %503 = arith.addf %502, %7 : vector<8x16xf32>
    %cst_225 = arith.constant 5.000000e-01 : f32
    %504 = vector.broadcast %cst_225 : f32 to vector<8x16xf32>
    %505 = arith.mulf %504, %503 : vector<8x16xf32>
    %cst_226 = arith.constant 0.707106769 : f32
    %506 = vector.broadcast %cst_226 : f32 to vector<8x16xf32>
    %507 = arith.mulf %503, %506 : vector<8x16xf32>
    %508 = math.erf %507 : vector<8x16xf32>
    %cst_227 = arith.constant 1.000000e+00 : f32
    %509 = vector.broadcast %cst_227 : f32 to vector<8x16xf32>
    %510 = arith.addf %509, %508 : vector<8x16xf32>
    %511 = arith.mulf %505, %510 : vector<8x16xf32>
    %cst_228 = arith.constant dense<0.000000e+00> : vector<8xf32>
    %512 = vector.multi_reduction <add>, %511, %cst_228 [1] : vector<8x16xf32> to vector<8xf32>
    %513 = vector.shape_cast %512 : vector<8xf32> to vector<8x1xf32>
    %cst_229 = arith.constant 1.600000e+01 : f32
    %514 = vector.broadcast %cst_229 : f32 to vector<8x1xf32>
    %515 = arith.divf %513, %514 : vector<8x1xf32>
    %516 = vector.broadcast %515 : vector<8x1xf32> to vector<8x16xf32>
    %517 = arith.subf %511, %516 : vector<8x16xf32>
    %518 = arith.mulf %517, %517 : vector<8x16xf32>
    %cst_230 = arith.constant dense<0.000000e+00> : vector<8xf32>
    %519 = vector.multi_reduction <add>, %518, %cst_230 [1] : vector<8x16xf32> to vector<8xf32>
    %520 = vector.shape_cast %519 : vector<8xf32> to vector<8x1xf32>
    %cst_231 = arith.constant 1.600000e+01 : f32
    %521 = vector.broadcast %cst_231 : f32 to vector<8x1xf32>
    %522 = arith.divf %520, %521 : vector<8x1xf32>
    %523 = vector.broadcast %515 : vector<8x1xf32> to vector<8x16xf32>
    %524 = arith.subf %511, %523 : vector<8x16xf32>
    %cst_232 = arith.constant 9.99999974E-6 : f32
    %525 = vector.broadcast %cst_232 : f32 to vector<8x1xf32>
    %526 = arith.addf %522, %525 : vector<8x1xf32>
    %527 = math.rsqrt %526 : vector<8x1xf32>
    %528 = vector.broadcast %527 : vector<8x1xf32> to vector<8x16xf32>
    %529 = arith.mulf %524, %528 : vector<8x16xf32>
    %cst_233 = arith.constant dense<0.000000e+00> : vector<8x16xf32>
    %530 = tpu.matmul %2, %483, %cst_233 {dimension_numbers = #tpu.dot_dimension_numbers<[1], [0], [0], [1], [0, 0, 1, 1], [], []>, precision = #tpu.contract_precision<fp32>} : vector<8x8xf32>, vector<8x16xf32>, vector<8x16xf32> -> vector<8x16xf32>
    %531 = arith.addf %530, %13 : vector<8x16xf32>
    %cst_234 = arith.constant dense<0.000000e+00> : vector<8x16xf32>
    %532 = tpu.matmul %2, %529, %cst_234 {dimension_numbers = #tpu.dot_dimension_numbers<[1], [0], [0], [1], [0, 0, 1, 1], [], []>, precision = #tpu.contract_precision<fp32>} : vector<8x8xf32>, vector<8x16xf32>, vector<8x16xf32> -> vector<8x16xf32>
    %533 = arith.addf %532, %13 : vector<8x16xf32>
    %534 = vector.extract_strided_slice %465 {offsets = [0, 0], sizes = [4, 16], strides = [1, 1]} : vector<8x16xf32> to vector<4x16xf32>
    %535 = vector.extract_strided_slice %483 {offsets = [4, 0], sizes = [4, 16], strides = [1, 1]} : vector<8x16xf32> to vector<4x16xf32>
    %cst_235 = arith.constant dense<0.000000e+00> : vector<4x16xf32>
    %536 = tpu.matmul %1, %535, %cst_235 {dimension_numbers = #tpu.dot_dimension_numbers<[1], [0], [0], [1], [0, 0, 1, 1], [], []>, precision = #tpu.contract_precision<fp32>} : vector<4x4xf32>, vector<4x16xf32>, vector<4x16xf32> -> vector<4x16xf32>
    %537 = arith.addf %536, %10 : vector<4x16xf32>
    %cst_236 = arith.constant 1.000000e+00 : f32
    %538 = vector.broadcast %cst_236 : f32 to vector<4x16xf32>
    %539 = arith.addf %537, %538 : vector<4x16xf32>
    %540 = arith.mulf %534, %539 : vector<4x16xf32>
    %cst_237 = arith.constant 1.000000e+00 : f32
    %541 = vector.broadcast %cst_237 : f32 to vector<8x16xf32>
    %542 = arith.addf %533, %541 : vector<8x16xf32>
    %543 = arith.mulf %483, %542 : vector<8x16xf32>
    %cst_238 = arith.constant dense<0.000000e+00> : vector<4x16xf32>
    %544 = tpu.matmul %3, %543, %cst_238 {dimension_numbers = #tpu.dot_dimension_numbers<[1], [0], [0], [1], [0, 0, 1, 1], [], []>, precision = #tpu.contract_precision<fp32>} : vector<4x8xf32>, vector<8x16xf32>, vector<4x16xf32> -> vector<4x16xf32>
    %545 = arith.addf %544, %16 : vector<4x16xf32>
    %546 = arith.addf %540, %545 : vector<4x16xf32>
    %cst_239 = arith.constant dense<0.000000e+00> : vector<4x16xf32>
    %547 = tpu.matmul %4, %546, %cst_239 {dimension_numbers = #tpu.dot_dimension_numbers<[1], [0], [0], [1], [0, 0, 1, 1], [], []>, precision = #tpu.contract_precision<fp32>} : vector<4x4xf32>, vector<4x16xf32>, vector<4x16xf32> -> vector<4x16xf32>
    %548 = arith.addf %547, %19 : vector<4x16xf32>
    %549 = arith.addf %435, %548 : vector<4x16xf32>
    %c0_240 = arith.constant 0 : index
    %c0_241 = arith.constant 0 : index
    %c3_242 = arith.constant 3 : index
    %c0_243 = arith.constant 0 : index
    %c0_244 = arith.constant 0 : index
    %550 = vector.load %arg13[%c0_240, %c0_241, %c3_242, %c0_243, %c0_244] : memref<1x2x4x4x16xf32, #tpu.memory_space<vmem>>, vector<1x1x1x4x16xf32>
    %551 = vector.shape_cast %550 : vector<1x1x1x4x16xf32> to vector<4x16xf32>
    %552 = vector.shape_cast %549 : vector<4x16xf32> to vector<1x1x1x4x16xf32>
    tpu.vector_store %arg13[%c0_240, %c0_241, %c3_242, %c0_243, %c0_244], %552 {strides = array<i32>} : memref<1x2x4x4x16xf32, #tpu.memory_space<vmem>>, vector<1x1x1x4x16xf32>,
    %553 = vector.extract_strided_slice %511 {offsets = [0, 0], sizes = [4, 16], strides = [1, 1]} : vector<8x16xf32> to vector<4x16xf32>
    %554 = vector.extract_strided_slice %529 {offsets = [4, 0], sizes = [4, 16], strides = [1, 1]} : vector<8x16xf32> to vector<4x16xf32>
    %cst_245 = arith.constant dense<0.000000e+00> : vector<4x16xf32>
    %555 = tpu.matmul %1, %554, %cst_245 {dimension_numbers = #tpu.dot_dimension_numbers<[1], [0], [0], [1], [0, 0, 1, 1], [], []>, precision = #tpu.contract_precision<fp32>} : vector<4x4xf32>, vector<4x16xf32>, vector<4x16xf32> -> vector<4x16xf32>
    %556 = arith.addf %555, %10 : vector<4x16xf32>
    %cst_246 = arith.constant 1.000000e+00 : f32
    %557 = vector.broadcast %cst_246 : f32 to vector<4x16xf32>
    %558 = arith.addf %556, %557 : vector<4x16xf32>
    %559 = arith.mulf %553, %558 : vector<4x16xf32>
    %cst_247 = arith.constant 1.000000e+00 : f32
    %560 = vector.broadcast %cst_247 : f32 to vector<8x16xf32>
    %561 = arith.addf %531, %560 : vector<8x16xf32>
    %562 = arith.mulf %529, %561 : vector<8x16xf32>
    %cst_248 = arith.constant dense<0.000000e+00> : vector<4x16xf32>
    %563 = tpu.matmul %3, %562, %cst_248 {dimension_numbers = #tpu.dot_dimension_numbers<[1], [0], [0], [1], [0, 0, 1, 1], [], []>, precision = #tpu.contract_precision<fp32>} : vector<4x8xf32>, vector<8x16xf32>, vector<4x16xf32> -> vector<4x16xf32>
    %564 = arith.addf %563, %16 : vector<4x16xf32>
    %565 = arith.addf %559, %564 : vector<4x16xf32>
    %cst_249 = arith.constant dense<0.000000e+00> : vector<4x16xf32>
    %566 = tpu.matmul %4, %565, %cst_249 {dimension_numbers = #tpu.dot_dimension_numbers<[1], [0], [0], [1], [0, 0, 1, 1], [], []>, precision = #tpu.contract_precision<fp32>} : vector<4x4xf32>, vector<4x16xf32>, vector<4x16xf32> -> vector<4x16xf32>
    %567 = arith.addf %566, %19 : vector<4x16xf32>
    %568 = arith.addf %437, %567 : vector<4x16xf32>
    %c0_250 = arith.constant 0 : index
    %c1_251 = arith.constant 1 : index
    %c3_252 = arith.constant 3 : index
    %c0_253 = arith.constant 0 : index
    %c0_254 = arith.constant 0 : index
    %569 = vector.load %arg13[%c0_250, %c1_251, %c3_252, %c0_253, %c0_254] : memref<1x2x4x4x16xf32, #tpu.memory_space<vmem>>, vector<1x1x1x4x16xf32>
    %570 = vector.shape_cast %569 : vector<1x1x1x4x16xf32> to vector<4x16xf32>
    %571 = vector.shape_cast %568 : vector<4x16xf32> to vector<1x1x1x4x16xf32>
    tpu.vector_store %arg13[%c0_250, %c1_251, %c3_252, %c0_253, %c0_254], %571 {strides = array<i32>} : memref<1x2x4x4x16xf32, #tpu.memory_space<vmem>>, vector<1x1x1x4x16xf32>,
    return
  }
  func.func @transform_0(%arg0: i32, %arg1: i32) -> (i32, i32, i32, i32, i32) {
    %c0_i32 = arith.constant 0 : i32
    %c0_i32_0 = arith.constant 0 : i32
    %c0_i32_1 = arith.constant 0 : i32
    %c0_i32_2 = arith.constant 0 : i32
    return %arg0, %c0_i32, %arg1, %c0_i32_0, %c0_i32_1 : i32, i32, i32, i32, i32
  }
  func.func @transform_1(%arg0: i32, %arg1: i32) -> (i32, i32) {
    %c0_i32 = arith.constant 0 : i32
    %c0_i32_0 = arith.constant 0 : i32
    %c0_i32_1 = arith.constant 0 : i32
    return %c0_i32, %c0_i32_0 : i32, i32
  }
  func.func @transform_2(%arg0: i32, %arg1: i32) -> (i32, i32) {
    %c0_i32 = arith.constant 0 : i32
    %c0_i32_0 = arith.constant 0 : i32
    %c0_i32_1 = arith.constant 0 : i32
    return %c0_i32, %c0_i32_0 : i32, i32
  }
  func.func @transform_3(%arg0: i32, %arg1: i32) -> (i32, i32) {
    %c0_i32 = arith.constant 0 : i32
    %c0_i32_0 = arith.constant 0 : i32
    %c0_i32_1 = arith.constant 0 : i32
    return %c0_i32, %c0_i32_0 : i32, i32
  }
  func.func @transform_4(%arg0: i32, %arg1: i32) -> (i32, i32) {
    %c0_i32 = arith.constant 0 : i32
    %c0_i32_0 = arith.constant 0 : i32
    %c0_i32_1 = arith.constant 0 : i32
    return %c0_i32, %c0_i32_0 : i32, i32
  }
  func.func @transform_5(%arg0: i32, %arg1: i32) -> (i32, i32) {
    %c0_i32 = arith.constant 0 : i32
    %c0_i32_0 = arith.constant 0 : i32
    %c0_i32_1 = arith.constant 0 : i32
    return %c0_i32, %c0_i32_0 : i32, i32
  }
  func.func @transform_6(%arg0: i32, %arg1: i32) -> (i32, i32) {
    %c0_i32 = arith.constant 0 : i32
    %c0_i32_0 = arith.constant 0 : i32
    %c0_i32_1 = arith.constant 0 : i32
    return %c0_i32, %c0_i32_0 : i32, i32
  }
  func.func @transform_7(%arg0: i32, %arg1: i32) -> (i32, i32) {
    %c0_i32 = arith.constant 0 : i32
    %c0_i32_0 = arith.constant 0 : i32
    %c0_i32_1 = arith.constant 0 : i32
    return %c0_i32, %c0_i32_0 : i32, i32
  }
  func.func @transform_8(%arg0: i32, %arg1: i32) -> (i32, i32) {
    %c0_i32 = arith.constant 0 : i32
    %c0_i32_0 = arith.constant 0 : i32
    %c0_i32_1 = arith.constant 0 : i32
    return %c0_i32, %c0_i32_0 : i32, i32
  }
  func.func @transform_9(%arg0: i32, %arg1: i32) -> (i32, i32) {
    %c0_i32 = arith.constant 0 : i32
    %c0_i32_0 = arith.constant 0 : i32
    %c0_i32_1 = arith.constant 0 : i32
    return %c0_i32, %c0_i32_0 : i32, i32
  }
  func.func @transform_10(%arg0: i32, %arg1: i32) -> (i32, i32) {
    %c0_i32 = arith.constant 0 : i32
    %c0_i32_0 = arith.constant 0 : i32
    %c0_i32_1 = arith.constant 0 : i32
    return %c0_i32, %c0_i32_0 : i32, i32
  }
  func.func @transform_11(%arg0: i32, %arg1: i32) -> (i32, i32, i32, i32, i32) {
    %c0_i32 = arith.constant 0 : i32
    %c0_i32_0 = arith.constant 0 : i32
    %c0_i32_1 = arith.constant 0 : i32
    %c0_i32_2 = arith.constant 0 : i32
    return %arg0, %c0_i32, %arg1, %c0_i32_0, %c0_i32_1 : i32, i32, i32, i32, i32
  }
}

</mosaic_0001>

<bundles_post_ra>
// kernel: tpu_custom_call.1
= control target key start
LH: loop header
LB: loop body
LE: loop exit
PB: predicated region body
PF: predicated region fallthrough
CT: control target
= control target key end

     0   :  { %s22695_s0 = inlined_call_operand.hbm [shape: f32[2,2,8,4,16], index: 0, kind: input, shape index: {}]   ;;  %s22696_s1 = inlined_call_operand.vmem [shape: f32[8,4], index: 1, kind: input, shape index: {}]   ;;  %s22697_s2 = inlined_call_operand.vmem [shape: f32[8,1], index: 2, kind: input, shape index: {}]   ;;  %s22698_s3 = inlined_call_operand.vmem [shape: f32[4,4], index: 3, kind: input, shape index: {}]   ;;  %s22699_s4 = inlined_call_operand.vmem [shape: f32[4,1], index: 4, kind: input, shape index: {}]   ;;  %s22700_s5 = inlined_call_operand.vmem [shape: f32[8,8], index: 5, kind: input, shape index: {}]   ;;  %s22701_s6 = inlined_call_operand.vmem [shape: f32[8,1], index: 6, kind: input, shape index: {}]   ;;  %s22702_s7 = inlined_call_operand.vmem [shape: f32[4,8], index: 7, kind: input, shape index: {}]   ;;  %s22703_s8 = inlined_call_operand.vmem [shape: f32[4,1], index: 8, kind: input, shape index: {}]   ;;  %s22704_s9 = inlined_call_operand.vmem [shape: f32[4,4], index: 9, kind: input, shape index: {}]   ;;  %s22705_s10 = inlined_call_operand.vmem [shape: f32[4,1], index: 10, kind: input, shape index: {}]   ;;  %s22706_s11 = inlined_call_operand.hbm [shape: f32[2,2,8,4,16], index: 11, kind: output, shape index: {}]  }
   0x1   :  { %22739 = sst [smem:[#allocation40_spill]] %s22706_s11 }
   0x2   :  { %16 = vsyncpa [#allocation3], 0 }
   0x3   :  { %18 = vsyncpa [#allocation3 + $0x1], 0 }
   0x4   :  { %19 = vsyncpa [#allocation4], 0 }
   0x5   :  { %21 = vsyncpa [#allocation4 + $0x1], 0  ;;  %s21057_s17 = smov 0   ;;  %s21059_s18 = smov 0  }
   0x6   :  { %s21061_s19 = smov 0   ;;  %s21063_s20 = smov 0  }
   0x7   :  { %s21065_s21 = smov 0   ;;  %s21067_s22 = smov 0  }
   0x8   :  { %s21069_s23 = smov 0   ;;  %s21071_s24 = smov 0  }
   0x9 LB: > { %22740 = sst [smem:[#allocation13_spill]] %s20953_s17  ;;  %s18952_s25 = sadd.s32 4294967295, %s20981_s24   ;;  %s20981_s24 = sphi %s21071_s24, %s27_s24   ;;  %s20977_s23 = sphi %s21069_s23, %s22799_s23   ;;  %s20973_s22 = sphi %s21067_s22, %s22798_s22   ;;  %s20969_s21 = sphi %s21065_s21, %s22797_s21   ;;  %s20965_s20 = sphi %s21063_s20, %s22796_s20   ;;  %s20961_s19 = sphi %s21061_s19, %s22802_s19   ;;  %s20957_s18 = sphi %s21059_s18, %s22801_s18   ;;  %s20953_s17 = sphi %s21057_s17, %s22800_s17  }
   0xa   : > { %22741 = sst [smem:[#allocation14_spill]] %s20969_s21  ;;  %s18953_s26 = sadd.s32 4294967294, %s20981_s24  }
   0xb   : > { %22742 = sst [smem:[#allocation15_spill]] %s20973_s22  ;;  %s36_s27 = sadd.s32 1, %s20973_s22 }
   0xc   : > { %22743 = sst [smem:[#allocation16_spill]] %s20977_s23  ;;  %p37_p0 = scmp.ge.s32.totalorder %s36_s27, 2 }
   0xd   : > { %s39_s28 = sadd.s32 1, %s20977_s23  ;;  %p55_p1 = scmp.ne.s32.totalorder %s20961_s19, %s20957_s18 }
   0xe   : > { %p56_p2 = scmp.eq.s32.totalorder %s20981_s24, 0  ;;  %s22804_s27 = smov (%p37_p0, %s36_s27), 0 }
   0xf   : > { %22744 = sst [smem:[#allocation17_spill]] %s22804_s27  ;;  %s22806_s28 = smov (!%p37_p0, %s39_s28), %s20977_s23 }
  0x10   : > { %s44_s29 = ssub.s32 %s20973_s22, %s22804_s27  ;;  %p21109_p3 = por %p56_p2, %p55_p1 }
  0x11   : > { %p41_p4 = scmp.ge.s32.totalorder %s22806_s28, 2  ;;  %p61_p5 = scmp.ne.s32.totalorder %s20957_s18, %s20953_s17 }
  0x12   : > { %p62_p6 = scmp.eq.s32.totalorder %s18952_s25, 0  ;;  %p297_p7 = scmp.eq.s32.totalorder %s18952_s25, 3 }
  0x13   : > { %s22808_s28 = smov (%p41_p4, %s22806_s28), 0  ;;  %p303_p10 = scmp.eq.s32.totalorder %s18953_s26, 3 }
  0x14   : > { %22746 = sst [smem:[#allocation18_spill]] %s22808_s28  ;;  %p21117_p8 = por %p62_p6, %p61_p5 }
  0x15   : > { %p21121_p9 = por %p297_p7, %p55_p1  ;;  %s43_s14 = ssub.s32 %s20977_s23, %s22808_s28 }
  0x16   : > { %s45_s15 = sor.u32 %s44_s29, %s43_s14  ;;  %s48_s16 = sadd.s32 1, %s20961_s19 }
  0x17   : > { %s22748_s13 = scalar_select %p21121_p9, 1, 0 }
  0x18   : > { %p46_p11 = scmp.eq.s32.totalorder %s45_s15, 0  ;;  %p21128_p12 = por %p303_p10, %p61_p5 }
  0x19   : > { %22749 = sst [smem:[#allocation19_spill]] %s22748_s13  ;;  %p18955_p13 = scmp.ge.s32.totalorder %s20981_s24, 4 }
  0x1a   : > { %s22750_s27 = scalar_select %p21128_p12, 1, 0 }
  0x1b   : > { %s21133_s25 = scalar_select %p46_p11, %s20961_s19, %s48_s16  }
  0x1c   : > { %22751 = sst [smem:[#allocation20_spill]] %s22750_s27  ;;  %349 = sbr.rel (%p18955_p13) target bundleno = 51 (0x33), region = 56 }
  0x1d   : > { %22752 = sst [smem:[#allocation21_spill]] %s21133_s25 }
  0x23   : > { %s353_s26 = sand.u32 1, %s20961_s19   ;;  %s18957_s29 = sshll.u32 %s20973_s22, 2 }
  0x24   : > { %s18956_s14 = sshll.u32 %s353_s26, 5  ;;  %s18958_s15 = sshll.u32 %s20977_s23, 4 }
  0x25   : > { %s363_s28 = sadd.s32 %s18958_s15, %s18957_s29  ;;  %s357_s27 = scalar_lea.vmem [#allocation2], %s18956_s14 }
  0x26   : > { %s378_s16 = sshll.u32 %s357_s27, 4  ;;  %s18959_s25 = sshll.u32 %s363_s28, 6  ;;  %s379_s16 = int_to_ptr.vmem [resolvable:$true] %s378_s16 }
  0x27   : > { %s20753_s17 = scalar_select %p21109_p3, [#allocation0], [#allocation10] }
  0x28   : > { %s20983_s11 = smov 512   ;;  %s20984_s21 = smov 256  }
  0x29   : > { %20754 = sst [smem:[#allocation7]] (%p21109_p3), %s20983_s11  ;;  %s20985_s22 = smov 4  }
  0x2a   : > { %s370_s13 = sld [smem:[%s20753_s17]]   ;;  %s20986_s29 = smov 64  }
  0x2b   : > { %20755 = sst [smem:[#allocation7 + $0x1]] (%p21109_p3), %s20984_s21  ;;  %s365_s28 = scalar_lea.hbm %s22695_s0, %s18959_s25 }
  0x2c   : > { %20756 = sst [smem:[#allocation7 + $0x2]] (%p21109_p3), %s20985_s22  ;;  %s354_s15 = scalar_lea.sflag [#allocation3], %s353_s26 }
  0x2d   : > { %20757 = sst [smem:[#allocation7 + $0x3]] (%p21109_p3), %s20986_s29  ;;  %s20987_s23 = smov [#allocation6]  }
  0x2e   : > { %20758 = sst [smem:[#allocation7 + $0x4]] (%p21109_p3), %s20986_s29 }
  0x2f   : > { %20759 = sst [smem:[#allocation7 + $0x5]] (%p21109_p3), %s20985_s22 }
  0x30   : > { %s18960_s11 = sshll.u32 %s370_s13, 26 }
  0x31   : > { %s18961_s17 = sadd.s32 134217728, %s18960_s11 }
  0x32   : > { %20760 = dma.general (%p21109_p3), %s365_s28, 512, %s379_s16, %s354_s15, %s20987_s23, [#allocation7], %s18961_s17, 0  }
  0x33 PF: > { %p18962_p0 = scmp.ge.s32.totalorder %s20981_s24, 1  ;;  %p399_p1 = scmp.lt.s32.totalorder %s20981_s24, 5 }
  0x35   : > { %p400_p2 = pnand %p18962_p0, %p399_p1 }
  0x37   : > { %403 = sbr.rel (%p400_p2) target bundleno = 5716 (0x1654), region = 64 }
  0x3e   : > { %s21161_s21 = sand.u32 1, %s20957_s18  }
  0x3f   : > { %s18963_s22 = sshll.u32 %s21161_s21, 5  ;;  %s406_s13 = scalar_lea.sflag [#allocation3], %s21161_s21 }
  0x40   : > { %s21167_s25 = scalar_lea.vmem [#allocation2], %s18963_s22 }
  0x41   : > { %20944 = dma.done.wait (%p21117_p8), %s406_s13, 512  }
  0x42   : > { %20946 = vsyncadd (%p21117_p8), %s406_s13, 4294966784  ;;  %v22715_v0 = vmov 0.0   ;;  %vm20989_vm0 = vmmov 0   ;;  %v20990_v1 = vmov 0   ;;  %vm488_vm1 = vcmask 125952   ;;  %v455_v6 = vld [vmem:[%s22697_s2] sm:$0xff] }
  0x43   : > { %19465 = vmatprep.subr.mxu0 %v22715_v0  ;;  %19495 = vmatprep.subr.mxu1 %v22715_v0  ;;  %v485_v2 = vld [vmem:[%s21167_s25] sm:$0xf]  ;;  %v18965_v3 = vld [vmem:[%s21167_s25 + $0x10] sm:$0xf]  ;;  %vm511_vm2 = vcmask 31744   ;;  %vm515_vm3 = vcmask 1043456  }
  0x44   : > { %19467 = vmatprep.mubr.msk.f32.mxu0 %vm20989_vm0, %v22715_v0  ;;  %19497 = vmatprep.mubr.msk.f32.mxu1 %vm20989_vm0, %v22715_v0  ;;  %v489_v4 = vsel %vm488_vm1, %v485_v2, 0.0  ;;  %v985_v5 = vsel %vm488_vm1, %v18965_v3, 0.0  ;;  %v450_v35 = vld [vmem:[%s22696_s1] sm:$0xff]  ;;  %vm970_vm4 = vcmask 130048   ;;  %vm1473_vm5 = vcmask 64512   ;;  %s22421_s27 = scalar_lea.vmem [#allocation5], %s18963_s22 }
  0x45   : > { %20853 = vset.pattern.permute.xlu0 %v20990_v1  ;;  %20854 = vset.pattern.permute.xlu1 %v20990_v1  ;;  %v490_v7 = vrot.slane %v489_v4, 4  ;;  %v986_v8 = vrot.slane %v985_v5, 4  ;;  %v513_v40 = vsel %vm511_vm2, %v450_v35, 0  ;;  %v452_v35 = vld [vmem:[%s22700_s5] sm:$0xff]  ;;  %s18818_s22 = scalar_lea.sflag [#allocation4], %s21161_s21 }
  0x46   : > { %458 = vperm.xlu0 %20853, %v455_v6   ;;  %v21192_v43 = vand.u32 4294901760, %v513_v40 }
  0x47   : > { %v491_v9 = vadd.f32 %v490_v7, %v489_v4  ;;  %v987_v10 = vadd.f32 %v986_v8, %v985_v5 }
  0x48   : > { %v21195_v46 = vsub.f32 %v513_v40, %v21192_v43 }
  0x49   : > { %v492_v11 = vrot.slane %v491_v9, 2  ;;  %v988_v12 = vrot.slane %v987_v10, 2 }
  0x4a   : > { %v21198_v47 = vand.u32 4294901760, %v21195_v46 }
  0x4b   : > { %v493_v13 = vadd.f32 %v492_v11, %v491_v9  ;;  %v989_v14 = vadd.f32 %v988_v12, %v987_v10 }
  0x4c   : > { %v588_v48 = vsub.f32 %v21195_v46, %v21198_v47 }
  0x4d   : > { %v494_v15 = vrot.slane %v493_v13, 1  ;;  %v990_v16 = vrot.slane %v989_v14, 1 }
  0x4e   : > { %v21203_v54 = vand.u32 4294901760, %v588_v48 }
  0x4f   : > { %v495_v17 = vadd.f32 %v494_v15, %v493_v13  ;;  %v991_v18 = vadd.f32 %v990_v16, %v989_v14 }
  0x51   : > { %v497_v19 = vmul.f32 0.25, %v495_v17  ;;  %v992_v20 = vmul.f32 0.25, %v991_v18 }
  0x53   : > { %v498_v21 = vsub.f32 %v485_v2, %v497_v19  ;;  %v993_v22 = vsub.f32 %v18965_v3, %v992_v20 }
  0x55   : > { %v499_v23 = vmul.f32 %v498_v21, %v498_v21  ;;  %v994_v24 = vmul.f32 %v993_v22, %v993_v22 }
  0x57   : > { %v500_v25 = vsel %vm488_vm1, %v499_v23, 0.0  ;;  %v995_v26 = vsel %vm488_vm1, %v994_v24, 0.0 }
  0x58   : > { %v501_v27 = vrot.slane %v500_v25, 4  ;;  %v996_v28 = vrot.slane %v995_v26, 4 }
  0x5a   : > { %v502_v29 = vadd.f32 %v501_v27, %v500_v25  ;;  %v997_v30 = vadd.f32 %v996_v28, %v995_v26 }
  0x5c   : > { %v503_v31 = vrot.slane %v502_v29, 2  ;;  %v998_v32 = vrot.slane %v997_v30, 2 }
  0x5e   : > { %v504_v33 = vadd.f32 %v503_v31, %v502_v29  ;;  %v999_v34 = vadd.f32 %v998_v32, %v997_v30  ;;  %v467_v32 = vld [vmem:[%s22701_s6] sm:$0xff] }
  0x60   : > { %v505_v36 = vrot.slane %v504_v33, 1  ;;  %v1000_v37 = vrot.slane %v999_v34, 1 }
  0x62   : > { %v506_v38 = vadd.f32 %v505_v36, %v504_v33  ;;  %v1001_v39 = vadd.f32 %v1000_v37, %v999_v34  ;;  %v461_v33 = vld [vmem:[%s22699_s4] sm:$0xf]  ;;  %v1475_v36 = vsel %vm1473_vm5, %v452_v35, 0 }
  0x63   : > { %v473_v34 = vld [vmem:[%s22703_s8] sm:$0xf] }
  0x64   : > { %v507_v41 = vmul.f32 0.25, %v506_v38  ;;  %v1002_v42 = vmul.f32 0.25, %v1001_v39  ;;  %v21283_v39 = vand.u32 4294901760, %v1475_v36 }
  0x66   : > { %v508_v44 = vadd.f32 1e-05, %v507_v41  ;;  %v1003_v45 = vadd.f32 1e-05, %v1002_v42  ;;  %22753 = vst [vmem:[#allocation22_spill] sm:$0xff] %v21283_v39 }
  0x68   : > { %20855 = vrsqrt.f32 %v508_v44  ;;  %v21286_v44 = vsub.f32 %v1475_v36, %v21283_v39 }
  0x69   : > { %20857 = vrsqrt.f32 %v1003_v45 }
  0x6a   : > { %22754 = vst [vmem:[#allocation23_spill] sm:$0xff] %v21286_v44  ;;  %v21289_v48 = vand.u32 4294901760, %v21286_v44 }
  0x6c   : > { %22755 = vst [vmem:[#allocation24_spill] sm:$0xff] %v21289_v48 }
  0x72   : > { %v20856_v49 = vpop.eup %20855 }
  0x73   : > { %v20858_v50 = vpop.eup %20857  ;;  %v510_v51 = vmul.f32 %v20856_v49, %v498_v21  ;;  %v1546_v49 = vsub.f32 %v21286_v44, %v21289_v48 }
  0x74   : > { %v1005_v52 = vmul.f32 %v20858_v50, %v993_v22 }
  0x75   : > { %v517_v53 = vsel %vm515_vm3, %v510_v51, 0 }
  0x76   : > { %v520_v55 = vand.u32 4294901760, %v517_v53  ;;  %v1007_v56 = vsel %vm515_vm3, %v1005_v52, 0  ;;  %v21295_v52 = vand.u32 4294901760, %v1546_v49 }
  0x77   : > { %v1010_v57 = vand.u32 4294901760, %v1007_v56 }
  0x78   : > { %19466 = vmatpush3.msra.mxu0 %v520_v55  ;;  %v597_v58 = vsub.f32 %v517_v53, %v520_v55  ;;  %22756 = vst [vmem:[#allocation25_spill] sm:$0xff] %v21295_v52 }
  0x79   : > { %19496 = vmatpush3.msra.mxu1 %v1010_v57  ;;  %v1087_v59 = vsub.f32 %v1007_v56, %v1010_v57  ;;  %19468 = vmatmul.mubr.f32.vlgmr.msra.gmra.mrb[0].mxu0 %v21203_v54 }
  0x7a   : > { %19498 = vmatmul.mubr.f32.vlgmr.msra.gmra.mrb[0].mxu1 %v21203_v54  ;;  %19470 = vmatprep.subr.mxu0 %v22715_v0  ;;  %v598_v60 = vand.u32 4294901760, %v597_v58 }
  0x7b   : > { %19500 = vmatprep.subr.mxu1 %v22715_v0  ;;  %19472 = vmatprep.mubr.msk.f32.mxu0 %vm20989_vm0, %v22715_v0  ;;  %v1088_v61 = vand.u32 4294901760, %v1087_v59 }
  0x7c   : > { %v599_v62 = vsub.f32 %v597_v58, %v598_v60  ;;  %19502 = vmatprep.mubr.msk.f32.mxu1 %vm20989_vm0, %v22715_v0 }
  0x7d   : > { %v1089_v63 = vsub.f32 %v1087_v59, %v1088_v61 }
  0x7e   : > { %v600_v1 = vand.u32 4294901760, %v599_v62 }
  0x7f   : > { %v1090_v2 = vand.u32 4294901760, %v1089_v63 }
  0x80   : > { %19471 = vmatpush3.msra.mxu0 %v600_v1 }
  0x81   : > { %19501 = vmatpush3.msra.mxu1 %v1090_v2  ;;  %19473 = vmatmul.mubr.f32.vlgmr.msra.gmra.mrb[0].mxu0 %v21192_v43 }
  0x82   : > { %19503 = vmatmul.mubr.f32.vlgmr.msra.gmra.mrb[0].mxu1 %v21192_v43  ;;  %19475 = vmatprep.subr.mxu0 %v22715_v0 }
  0x83   : > { %19505 = vmatprep.subr.mxu1 %v22715_v0  ;;  %19476 = vmatpush3.msra.mxu0 %v597_v58  ;;  %v451_v58 = vld [vmem:[%s22698_s3] sm:$0xf] }
  0x84   : > { %19477 = vmatprep.mubr.msk.f32.mxu0 %vm20989_vm0, %v22715_v0  ;;  %19506 = vmatpush3.msra.mxu1 %v1087_v59 }
  0x85   : > { %19507 = vmatprep.mubr.msk.f32.mxu1 %vm20989_vm0, %v22715_v0  ;;  %19480 = vmatprep.subr.mxu0 %v22715_v0 }
  0x86   : > { %19510 = vmatprep.subr.mxu1 %v22715_v0 }
  0x89   : > { %19478 = vmatmul.mubr.f32.vlgmr.msra.gmra.mrb[0].mxu0 %v21195_v46 }
  0x8a   : > { %19508 = vmatmul.mubr.f32.vlgmr.msra.gmra.mrb[0].mxu1 %v21195_v46  ;;  %19481 = vmatpush3.msra.mxu0 %v520_v55 }
  0x8b   : > { %19482 = vmatprep.mubr.msk.f32.mxu0 %vm20989_vm0, %v22715_v0  ;;  %19511 = vmatpush3.msra.mxu1 %v1010_v57 }
  0x8c   : > { %19512 = vmatprep.mubr.msk.f32.mxu1 %vm20989_vm0, %v22715_v0  ;;  %19485 = vmatprep.subr.mxu0 %v22715_v0 }
  0x8d   : > { %19515 = vmatprep.subr.mxu1 %v22715_v0 }
  0x91   : > { %19483 = vmatmul.mubr.f32.vlgmr.msra.gmra.mrb[0].mxu0 %v21198_v47 }
  0x92   : > { %19513 = vmatmul.mubr.f32.vlgmr.msra.gmra.mrb[0].mxu1 %v21198_v47  ;;  %19486 = vmatpush3.msra.mxu0 %v598_v60 }
  0x93   : > { %19487 = vmatprep.mubr.msk.f32.mxu0 %vm20989_vm0, %v22715_v0  ;;  %19516 = vmatpush3.msra.mxu1 %v1088_v61  ;;  %v2372_v61 = vsel %vm511_vm2, %v451_v58, 0 }
  0x94   : > { %19517 = vmatprep.mubr.msk.f32.mxu1 %vm20989_vm0, %v22715_v0  ;;  %19490 = vmatprep.subr.mxu0 %v22715_v0 }
  0x95   : > { %19520 = vmatprep.subr.mxu1 %v22715_v0 }
  0x99   : > { %19488 = vmatmul.mubr.f32.vlgmr.msra.gmra.mrb[0].mxu0 %v21192_v43 }
  0x9a   : > { %19518 = vmatmul.mubr.f32.vlgmr.msra.gmra.mrb[0].mxu1 %v21192_v43  ;;  %19491 = vmatpush3.msra.mxu0 %v520_v55 }
  0x9b   : > { %19492 = vmatprep.mubr.msk.f32.mxu0 %vm20989_vm0, %v22715_v0  ;;  %19521 = vmatpush3.msra.mxu1 %v1010_v57 }
  0x9c   : > { %19522 = vmatprep.mubr.msk.f32.mxu1 %vm20989_vm0, %v22715_v0  ;;  %19525 = vmatprep.subr.mxu0 %v22715_v0 }
  0x9d   : > { %19530 = vmatprep.subr.mxu1 %v22715_v0 }
  0xa1   : > { %19493 = vmatmul.mubr.f32.vlgmr.msra.gmra.mrb[0].mxu0 %v21192_v43 }
  0xa2   : > { %19523 = vmatmul.mubr.f32.vlgmr.msra.gmra.mrb[0].mxu1 %v21192_v43  ;;  %19527 = vmatprep.mubr.msk.f32.mxu0 %vm20989_vm0, %v22715_v0 }
  0xa3   : > { %19532 = vmatprep.mubr.msk.f32.mxu1 %vm20989_vm0, %v22715_v0 }
  0xc5   : > { %v21254_v3 = vpop.permute.xlu0 %458 }
 0x174   : > { %v961_v4 = vpop.f32.mrb[0].mxu0 }
 0x175   : > { %v20665_v5 = vadd.f32 %v961_v4, %v21254_v3  ;;  %v1451_v6 = vpop.f32.mrb[0].mxu1  ;;  %v19494_v7 = vpop.f32.mrb[1].mxu0  ;;  %v21316_v4 = vand.u32 4294901760, %v2372_v61 }
 0x176   : > { %v20666_v8 = vadd.f32 %v1451_v6, %v21254_v3  ;;  %v19524_v9 = vpop.f32.mrb[1].mxu1 }
 0x177   : > { %v966_v10 = vmul.f32 0.70710677, %v20665_v5  ;;  %v965_v14 = vmul.f32 0.5, %v20665_v5  ;;  %v21324_v7 = vsub.f32 %v2372_v61, %v21316_v4 }
 0x178   : > { %v1456_v11 = vmul.f32 0.70710677, %v20666_v8  ;;  %v1455_v16 = vmul.f32 0.5, %v20666_v8 }
 0x179   : > { %20859 = verf.f32 %v966_v10  ;;  %v21335_v10 = vand.u32 4294901760, %v21324_v7 }
 0x17a   : > { %20861 = verf.f32 %v1456_v11 }
 0x17b   : > { %22757 = vst [vmem:[#allocation26_spill] sm:$0xff] %v21335_v10 }
 0x183   : > { %v20860_v12 = vpop.eup %20859 }
 0x184   : > { %v20862_v13 = vpop.eup %20861  ;;  %v968_v15 = vadd.f32 1.0, %v20860_v12 }
 0x185   : > { %v1458_v17 = vadd.f32 1.0, %v20862_v13  ;;  %v2445_v13 = vsub.f32 %v21324_v7, %v21335_v10 }
 0x186   : > { %v21258_v18 = vmul.f32 %v968_v15, %v965_v14 }
 0x187   : > { %v21260_v19 = vmul.f32 %v1458_v17, %v1455_v16  ;;  %v21355_v15 = vand.u32 4294901760, %v2445_v13 }
 0x188   : > { %v971_v20 = vsel %vm970_vm4, %v21258_v18, 0.0 }
 0x189   : > { %v1460_v21 = vsel %vm970_vm4, %v21260_v19, 0.0  ;;  %972 = vadd.xlane.f32.xlu0 %v971_v20 }
 0x18a   : > { %1461 = vadd.xlane.f32.xlu1 %v1460_v21 }
 0x216   : > { %v973_v22 = vpop.xlane.xlu0 %972 }
 0x217   : > { %v1462_v23 = vpop.xlane.xlu1 %1461  ;;  %v975_v24 = vmul.f32 0.0625, %v973_v22 }
 0x218   : > { %v1463_v25 = vmul.f32 0.0625, %v1462_v23 }
 0x219   : > { %v976_v26 = vsub.f32 %v21258_v18, %v975_v24 }
 0x21a   : > { %v1464_v27 = vsub.f32 %v21260_v19, %v1463_v25 }
 0x21b   : > { %v977_v28 = vmul.f32 %v976_v26, %v976_v26 }
 0x21c   : > { %v1465_v30 = vmul.f32 %v1464_v27, %v1464_v27 }
 0x21d   : > { %v978_v29 = vsel %vm970_vm4, %v977_v28, 0.0 }
 0x21e   : > { %979 = vadd.xlane.f32.xlu1 %v978_v29  ;;  %v1466_v31 = vsel %vm970_vm4, %v1465_v30, 0.0 }
 0x222   : > { %1467 = vadd.xlane.f32.xlu1 %v1466_v31 }
 0x233   : > { %470 = vperm.xlu1 %20854, %v467_v32  }
 0x237   : > { %464 = vperm.xlu1 %20854, %v461_v33   ;;  %v453_v33 = vld [vmem:[%s22702_s7] sm:$0xf] }
 0x23b   : > { %476 = vperm.xlu1 %20854, %v473_v34  }
 0x2ab   : > { %v980_v37 = vpop.xlane.xlu1 %979 }
 0x2ac   : > { %v981_v38 = vmul.f32 0.0625, %v980_v37 }
 0x2ae   : > { %v982_v40 = vadd.f32 1e-05, %v981_v38 }
 0x2af   : > { %v1468_v41 = vpop.xlane.xlu1 %1467 }
 0x2b0   : > { %20863 = vrsqrt.f32 %v982_v40  ;;  %v1469_v42 = vmul.f32 0.0625, %v1468_v41  ;;  %v2827_v40 = vsel %vm1473_vm5, %v453_v33, 0 }
 0x2b2   : > { %v1470_v45 = vadd.f32 1e-05, %v1469_v42 }
 0x2b3   : > { %v21393_v22 = vpop.permute.xlu1 %470 }
 0x2b4   : > { %20865 = vrsqrt.f32 %v1470_v45  ;;  %22758 = vst [vmem:[#allocation27_spill] sm:$0xff] %v21393_v22 }
 0x2ba   : > { %v20864_v50 = vpop.eup %20863 }
 0x2bb   : > { %v21293_v51 = vmul.f32 %v20864_v50, %v976_v26 }
 0x2bd   : > { %v1478_v53 = vand.u32 4294901760, %v21293_v51  ;;  %v2370_v1 = vrot.slane %v21293_v51, 4 }
 0x2be   : > { %v20866_v55 = vpop.eup %20865 }
 0x2bf   : > { %v21298_v56 = vmul.f32 %v20866_v55, %v1464_v27  ;;  %19526 = vmatpush3.msra.mxu0 %v1478_v53  ;;  %v1555_v57 = vsub.f32 %v21293_v51, %v1478_v53  ;;  %v2374_v6 = vsel %vm515_vm3, %v2370_v1, 0  ;;  %v21403_v55 = vand.u32 4294901760, %v2827_v40 }
 0x2c0   : > { %19528 = vmatmul.mubr.f32.vlgmr.msra.gmra.mrb[2].mxu0 %v21295_v52  ;;  %19535 = vmatprep.subr.mxu0 %v22715_v0  ;;  %v2377_v9 = vand.u32 4294901760, %v2374_v6 }
 0x2c1   : > { %19536 = vmatpush3.msra.mxu0 %v1555_v57  ;;  %19537 = vmatprep.mubr.msk.f32.mxu0 %vm20989_vm0, %v22715_v0  ;;  %v1556_v59 = vand.u32 4294901760, %v1555_v57  ;;  %v1924_v60 = vand.u32 4294901760, %v21298_v56  ;;  %22759 = vst [vmem:[#allocation28_spill] sm:$0xff] %v21403_v55 }
 0x2c2   : > { %19545 = vmatprep.subr.mxu0 %v22715_v0  ;;  %v2454_v12 = vsub.f32 %v2374_v6, %v2377_v9 }
 0x2c3   : > { %v1557_v62 = vsub.f32 %v1555_v57, %v1556_v59  ;;  %v2001_v63 = vsub.f32 %v21298_v56, %v1924_v60 }
 0x2c4   : > { %19538 = vmatmul.mubr.f32.vlgmr.msra.gmra.mrb[4].mxu0 %v21286_v44  ;;  %v2455_v14 = vand.u32 4294901760, %v2454_v12 }
 0x2c5   : > { %19546 = vmatpush3.msra.mxu0 %v1556_v59  ;;  %v1558_v2 = vand.u32 4294901760, %v1557_v62  ;;  %19547 = vmatprep.mubr.msk.f32.mxu0 %vm20989_vm0, %v22715_v0  ;;  %v2002_v5 = vand.u32 4294901760, %v2001_v63  ;;  %v21406_v62 = vsub.f32 %v2827_v40, %v21403_v55 }
 0x2c6   : > { %19555 = vmatprep.subr.mxu0 %v22715_v0  ;;  %v2456_v16 = vsub.f32 %v2454_v12, %v2455_v14 }
 0x2c7   : > { %19531 = vmatpush3.msra.mxu1 %v1558_v2  ;;  %v2003_v8 = vsub.f32 %v2001_v63, %v2002_v5  ;;  %22760 = vst [vmem:[#allocation29_spill] sm:$0xff] %v21406_v62 }
 0x2c8   : > { %19533 = vmatmul.mubr.f32.vlgmr.msra.gmra.mrb[2].mxu1 %v21283_v39  ;;  %19540 = vmatprep.subr.mxu1 %v22715_v0  ;;  %v2457_v17 = vand.u32 4294901760, %v2456_v16 }
 0x2c9   : > { %19548 = vmatmul.mubr.f32.vlgmr.msra.gmra.mrb[6].mxu0 %v21283_v39  ;;  %19541 = vmatpush3.msra.mxu1 %v1478_v53  ;;  %v2004_v11 = vand.u32 4294901760, %v2003_v8 }
 0x2ca   : > { %19556 = vmatpush3.msra.mxu0 %v1924_v60  ;;  %19542 = vmatprep.mubr.msk.f32.mxu1 %vm20989_vm0, %v22715_v0 }
 0x2cb   : > { %19550 = vmatprep.subr.mxu1 %v22715_v0  ;;  %19557 = vmatprep.mubr.msk.f32.mxu0 %vm20989_vm0, %v22715_v0 }
 0x2cc   : > { %19565 = vmatprep.subr.mxu0 %v22715_v0  ;;  %19543 = vmatmul.mubr.f32.vlgmr.msra.gmra.mrb[4].mxu1 %v21289_v48 }
 0x2cd   : > { %19551 = vmatpush3.msra.mxu1 %v1478_v53  ;;  %19558 = vmatmul.mubr.f32.vlgmr.msra.gmra.mrb[8].mxu0 %v21295_v52 }
 0x2ce   : > { %19566 = vmatpush3.msra.mxu0 %v2001_v63  ;;  %19552 = vmatprep.mubr.msk.f32.mxu1 %vm20989_vm0, %v22715_v0 }
 0x2cf   : > { %19560 = vmatprep.subr.mxu1 %v22715_v0  ;;  %19567 = vmatprep.mubr.msk.f32.mxu0 %vm20989_vm0, %v22715_v0 }
 0x2d0   : > { %19575 = vmatprep.subr.mxu0 %v22715_v0  ;;  %19553 = vmatmul.mubr.f32.vlgmr.msra.gmra.mrb[6].mxu1 %v21283_v39 }
 0x2d1   : > { %19561 = vmatpush3.msra.mxu1 %v2004_v11  ;;  %19568 = vmatmul.mubr.f32.vlgmr.msra.gmra.mrb[10].mxu0 %v21286_v44 }
 0x2d2   : > { %19576 = vmatpush3.msra.mxu0 %v2002_v5  ;;  %19562 = vmatprep.mubr.msk.f32.mxu1 %vm20989_vm0, %v22715_v0 }
 0x2d3   : > { %19570 = vmatprep.subr.mxu1 %v22715_v0  ;;  %19577 = vmatprep.mubr.msk.f32.mxu0 %vm20989_vm0, %v22715_v0 }
 0x2d4   : > { %19585 = vmatprep.subr.mxu0 %v22715_v0  ;;  %19563 = vmatmul.mubr.f32.vlgmr.msra.gmra.mrb[8].mxu1 %v21283_v39 }
 0x2d5   : > { %19571 = vmatpush3.msra.mxu1 %v1924_v60  ;;  %19578 = vmatmul.mubr.f32.vlgmr.msra.gmra.mrb[12].mxu0 %v21283_v39 }
 0x2d6   : > { %19586 = vmatpush3.msra.mxu0 %v2377_v9  ;;  %19572 = vmatprep.mubr.msk.f32.mxu1 %vm20989_vm0, %v22715_v0 }
 0x2d7   : > { %19580 = vmatprep.subr.mxu1 %v22715_v0  ;;  %19587 = vmatprep.mubr.msk.f32.mxu0 %vm20989_vm0, %v22715_v0 }
 0x2d8   : > { %19595 = vmatprep.subr.mxu0 %v22715_v0  ;;  %19573 = vmatmul.mubr.f32.vlgmr.msra.gmra.mrb[10].mxu1 %v21289_v48 }
 0x2d9   : > { %19581 = vmatpush3.msra.mxu1 %v1924_v60  ;;  %19588 = vmatmul.mubr.f32.vlgmr.msra.gmra.mrb[14].mxu0 %v21355_v15 }
 0x2da   : > { %19596 = vmatpush3.msra.mxu0 %v2454_v12  ;;  %19582 = vmatprep.mubr.msk.f32.mxu1 %vm20989_vm0, %v22715_v0 }
 0x2db   : > { %19590 = vmatprep.subr.mxu1 %v22715_v0  ;;  %19597 = vmatprep.mubr.msk.f32.mxu0 %vm20989_vm0, %v22715_v0 }
 0x2dc   : > { %19605 = vmatprep.subr.mxu0 %v22715_v0  ;;  %19583 = vmatmul.mubr.f32.vlgmr.msra.gmra.mrb[12].mxu1 %v21283_v39 }
 0x2dd   : > { %19591 = vmatpush3.msra.mxu1 %v2457_v17  ;;  %19598 = vmatmul.mubr.f32.vlgmr.msra.gmra.mrb[16].mxu0 %v21324_v7  ;;  %v21411_v17 = vpop.permute.xlu1 %464 }
 0x2de   : > { %19606 = vmatpush3.msra.mxu0 %v2455_v14  ;;  %19592 = vmatprep.mubr.msk.f32.mxu1 %vm20989_vm0, %v22715_v0  ;;  %22762 = vst [vmem:[#allocation31_spill] sm:$0xff] %v21411_v17 }
 0x2df   : > { %19600 = vmatprep.subr.mxu1 %v22715_v0  ;;  %19607 = vmatprep.mubr.msk.f32.mxu0 %vm20989_vm0, %v22715_v0 }
 0x2e0   : > { %19593 = vmatmul.mubr.f32.vlgmr.msra.gmra.mrb[14].mxu1 %v21316_v4  ;;  %19615 = vmatprep.subr.mxu0 %v22715_v0 }
 0x2e1   : > { %19601 = vmatpush3.msra.mxu1 %v2377_v9  ;;  %19602 = vmatprep.mubr.msk.f32.mxu1 %vm20989_vm0, %v22715_v0 }
 0x2e2   : > { %19610 = vmatprep.subr.mxu1 %v22715_v0  ;;  %19608 = vmatmul.mubr.f32.vlgmr.msra.gmra.mrb[18].mxu0 %v21316_v4 }
 0x2e3   : > { %19617 = vmatprep.mubr.msk.f32.mxu0 %vm20989_vm0, %v22715_v0 }
 0x2e4   : > { %19603 = vmatmul.mubr.f32.vlgmr.msra.gmra.mrb[16].mxu1 %v21335_v10 }
 0x2e5   : > { %19611 = vmatpush3.msra.mxu1 %v2377_v9  ;;  %19612 = vmatprep.mubr.msk.f32.mxu1 %vm20989_vm0, %v22715_v0  ;;  %v21409_v9 = vand.u32 4294901760, %v21406_v62 }
 0x2e6   : > { %19620 = vmatprep.subr.mxu1 %v22715_v0 }
 0x2e7   : > { %22761 = vst [vmem:[#allocation30_spill] sm:$0xff] %v21409_v9 }
 0x2e8   : > { %19613 = vmatmul.mubr.f32.vlgmr.msra.gmra.mrb[18].mxu1 %v21316_v4 }
 0x2e9   : > { %19622 = vmatprep.mubr.msk.f32.mxu1 %vm20989_vm0, %v22715_v0 }
 0x393   : > { %v1549_v20 = vpop.f32.mrb[2].mxu0 }
 0x394   : > { %v19529_v21 = vpop.f32.mrb[3].mxu0  ;;  %v1550_v24 = vadd.f32 %v1549_v20, %v21393_v22 }
 0x395   : > { %v2898_v21 = vsub.f32 %v21406_v62, %v21409_v9 }
 0x397   : > { %v1699_v23 = vpop.f32.mrb[4].mxu0 }
 0x398   : > { %v19539_v25 = vpop.f32.mrb[5].mxu0 }
 0x39b   : > { %v1625_v26 = vpop.f32.mrb[2].mxu1 }
 0x39c   : > { %v1626_v27 = vadd.f32 %v1625_v26, %v1550_v24  ;;  %v19534_v28 = vpop.f32.mrb[3].mxu1  ;;  %v1847_v29 = vpop.f32.mrb[6].mxu0 }
 0x39d   : > { %v19549_v30 = vpop.f32.mrb[7].mxu0 }
 0x39e   : > { %v1700_v31 = vadd.f32 %v1699_v23, %v1626_v27  ;;  %v21417_v30 = vand.u32 4294901760, %v2898_v21 }
 0x39f   : > { %v1773_v32 = vpop.f32.mrb[4].mxu1 }
 0x3a0   : > { %v1774_v34 = vadd.f32 %v1773_v32, %v1700_v31  ;;  %v19544_v35 = vpop.f32.mrb[5].mxu1  ;;  %v1995_v36 = vpop.f32.mrb[8].mxu0  ;;  %22763 = vst [vmem:[#allocation32_spill] sm:$0xff] %v21417_v30 }
 0x3a1   : > { %v19559_v37 = vpop.f32.mrb[9].mxu0  ;;  %v1996_v45 = vadd.f32 %v1995_v36, %v21393_v22 }
 0x3a2   : > { %v1848_v38 = vadd.f32 %v1847_v29, %v1774_v34 }
 0x3a3   : > { %v1919_v41 = vpop.f32.mrb[6].mxu1 }
 0x3a4   : > { %v21400_v42 = vadd.f32 %v1919_v41, %v1848_v38  ;;  %v19554_v49 = vpop.f32.mrb[7].mxu1  ;;  %v2145_v50 = vpop.f32.mrb[10].mxu0 }
 0x3a5   : > { %v19569_v53 = vpop.f32.mrb[11].mxu0 }
 0x3a6   : > { %v454_v53 = vld [vmem:[%s22704_s9] sm:$0xf] }
 0x3a7   : > { %v2071_v57 = vpop.f32.mrb[8].mxu1 }
 0x3a8   : > { %v2072_v58 = vadd.f32 %v2071_v57, %v1996_v45  ;;  %v2293_v59 = vpop.f32.mrb[12].mxu0  ;;  %v19564_v60 = vpop.f32.mrb[9].mxu1 }
 0x3a9   : > { %v19579_v61 = vpop.f32.mrb[13].mxu0 }
 0x3aa   : > { %v2146_v63 = vadd.f32 %v2145_v50, %v2072_v58 }
 0x3ab   : > { %v2219_v1 = vpop.f32.mrb[10].mxu1 }
 0x3ac   : > { %v2220_v2 = vadd.f32 %v2219_v1, %v2146_v63  ;;  %v2448_v5 = vpop.f32.mrb[14].mxu0  ;;  %v19574_v6 = vpop.f32.mrb[11].mxu1 }
 0x3ad   : > { %v19589_v8 = vpop.f32.mrb[15].mxu0  ;;  %v2449_v23 = vadd.f32 %v2448_v5, %v21411_v17  ;;  %v21449_v1 = vpop.permute.xlu1 %476 }
 0x3ae   : > { %v2294_v11 = vadd.f32 %v2293_v59, %v2220_v2  ;;  %v3277_v59 = vsel %vm511_vm2, %v454_v53, 0 }
 0x3af   : > { %v2365_v12 = vpop.f32.mrb[12].mxu1  ;;  %v21447_v63 = vand.u32 4294901760, %v3277_v59 }
 0x3b0   : > { %v2366_v13 = vadd.f32 %v2365_v12, %v2294_v11  ;;  %v19584_v14 = vpop.f32.mrb[13].mxu1  ;;  %v2598_v16 = vpop.f32.mrb[16].mxu0 }
 0x3b1   : > { %v19599_v20 = vpop.f32.mrb[17].mxu0  ;;  %v21453_v11 = vsub.f32 %v3277_v59, %v21447_v63 }
 0x3b2   : > { %v2824_v24 = vadd.f32 1.0, %v2366_v13 }
 0x3b3   : > { %v2524_v25 = vpop.f32.mrb[14].mxu1 }
 0x3b4   : > { %v2825_v26 = vmul.f32 %v2824_v24, %v21293_v51  ;;  %v2525_v27 = vadd.f32 %v2524_v25, %v2449_v23  ;;  %v19594_v28 = vpop.f32.mrb[15].mxu1  ;;  %v21456_v24 = vand.u32 4294901760, %v21453_v11 }
 0x3b5   : > { %v2746_v29 = vpop.f32.mrb[18].mxu0 }
 0x3b6   : > { %v2830_v31 = vand.u32 4294901760, %v2825_v26  ;;  %v2599_v32 = vadd.f32 %v2598_v16, %v2525_v27  ;;  %v19609_v33 = vpop.f32.mrb[19].mxu0 }
 0x3b7   : > { %v2672_v34 = vpop.f32.mrb[16].mxu1 }
 0x3b8   : > { %v2907_v35 = vsub.f32 %v2825_v26, %v2830_v31  ;;  %v2673_v36 = vadd.f32 %v2672_v34, %v2599_v32  ;;  %19616 = vmatpush3.msra.mxu0 %v2830_v31  ;;  %v19604_v37 = vpop.f32.mrb[17].mxu1  ;;  %v3731_v32 = vrot.slane %v21298_v56, 4 }
 0x3b9   : > { %19618 = vmatmul.mubr.f32.vlgmr.msra.gmra.mrb[20].mxu0 %v21417_v30  ;;  %19625 = vmatprep.subr.mxu0 %v22715_v0 }
 0x3ba   : > { %v2747_v38 = vadd.f32 %v2746_v29, %v2673_v36  ;;  %19626 = vmatpush3.msra.mxu0 %v2907_v35  ;;  %19627 = vmatprep.mubr.msk.f32.mxu0 %vm20989_vm0, %v22715_v0  ;;  %v2908_v51 = vand.u32 4294901760, %v2907_v35  ;;  %v3732_v36 = vsel %vm515_vm3, %v3731_v32, 0 }
 0x3bb   : > { %v2818_v40 = vpop.f32.mrb[18].mxu1  ;;  %19635 = vmatprep.subr.mxu0 %v22715_v0 }
 0x3bc   : > { %v2819_v41 = vadd.f32 %v2818_v40, %v2747_v38  ;;  %v2909_v45 = vsub.f32 %v2907_v35, %v2908_v51  ;;  %v19614_v49 = vpop.f32.mrb[19].mxu1  ;;  %v4182_v40 = vadd.f32 1.0, %v21400_v42 }
 0x3bd   : > { %19628 = vmatmul.mubr.f32.vlgmr.msra.gmra.mrb[22].mxu0 %v21406_v62 }
 0x3be   : > { %19636 = vmatpush3.msra.mxu0 %v2908_v51  ;;  %v2910_v50 = vand.u32 4294901760, %v2909_v45  ;;  %19637 = vmatprep.mubr.msk.f32.mxu0 %vm20989_vm0, %v22715_v0  ;;  %v2822_v20 = vadd.f32 1.0, %v2819_v41  ;;  %v3735_v51 = vand.u32 4294901760, %v3732_v36 }
 0x3bf   : > { %19645 = vmatprep.subr.mxu0 %v22715_v0 }
 0x3c0   : > { %19621 = vmatpush3.msra.mxu1 %v2910_v50  ;;  %v2823_v27 = vmul.f32 %v2822_v20, %v21258_v18  ;;  %v3812_v45 = vsub.f32 %v3732_v36, %v3735_v51  ;;  %v4183_v50 = vmul.f32 %v4182_v40, %v21298_v56 }
 0x3c1   : > { %19623 = vmatmul.mubr.f32.vlgmr.msra.gmra.mrb[20].mxu1 %v21403_v55  ;;  %19630 = vmatprep.subr.mxu1 %v22715_v0 }
 0x3c2   : > { %19631 = vmatpush3.msra.mxu1 %v2830_v31  ;;  %19632 = vmatprep.mubr.msk.f32.mxu1 %vm20989_vm0, %v22715_v0  ;;  %v3813_v53 = vand.u32 4294901760, %v3812_v45  ;;  %v4185_v42 = vand.u32 4294901760, %v4183_v50 }
 0x3c3   : > { %19640 = vmatprep.subr.mxu1 %v22715_v0  ;;  %19638 = vmatmul.mubr.f32.vlgmr.msra.gmra.mrb[24].mxu0 %v21403_v55 }
 0x3c4   : > { %19647 = vmatprep.mubr.msk.f32.mxu0 %vm20989_vm0, %v22715_v0  ;;  %v3814_v56 = vsub.f32 %v3812_v45, %v3813_v53 }
 0x3c5   : > { %19633 = vmatmul.mubr.f32.vlgmr.msra.gmra.mrb[22].mxu1 %v21409_v9 }
 0x3c6   : > { %19641 = vmatpush3.msra.mxu1 %v2830_v31  ;;  %19642 = vmatprep.mubr.msk.f32.mxu1 %vm20989_vm0, %v22715_v0  ;;  %v3351_v31 = vsub.f32 %v21453_v11, %v21456_v24 }
 0x3c7   : > { %19650 = vmatprep.subr.mxu1 %v22715_v0 }
 0x3c8   : > { %v21463_v35 = vand.u32 4294901760, %v3351_v31 }
 0x3c9   : > { %19643 = vmatmul.mubr.f32.vlgmr.msra.gmra.mrb[24].mxu1 %v21403_v55 }
 0x3ca   : > { %19652 = vmatprep.mubr.msk.f32.mxu1 %vm20989_vm0, %v22715_v0 }
 0x48c   : > { %v2901_v57 = vpop.f32.mrb[20].mxu0 }
 0x48d   : > { %v19619_v58 = vpop.f32.mrb[21].mxu0  ;;  %v2902_v2 = vadd.f32 %v2901_v57, %v21449_v1  ;;  %v4262_v57 = vsub.f32 %v4183_v50, %v4185_v42 }
 0x48e   : > { %v3815_v58 = vand.u32 4294901760, %v3814_v56 }
 0x48f   : > { %v4263_v59 = vand.u32 4294901760, %v4262_v57 }
 0x490   : > { %v3051_v60 = vpop.f32.mrb[22].mxu0 }
 0x491   : > { %v19629_v61 = vpop.f32.mrb[23].mxu0 }
 0x494   : > { %v2977_v5 = vpop.f32.mrb[20].mxu1 }
 0x495   : > { %v2978_v6 = vadd.f32 %v2977_v5, %v2902_v2  ;;  %v19624_v8 = vpop.f32.mrb[21].mxu1  ;;  %v18967_v2 = vld [vmem:[%s21167_s25 + $0x4] sm:$0xf] }
 0x496   : > { %v3199_v12 = vpop.f32.mrb[24].mxu0  ;;  %v5087_v5 = vsel %vm488_vm1, %v18967_v2, 0.0  ;;  %v18968_v8 = vld [vmem:[%s21167_s25 + $0x14] sm:$0xf] }
 0x497   : > { %v3052_v13 = vadd.f32 %v3051_v60, %v2978_v6  ;;  %v19639_v14 = vpop.f32.mrb[25].mxu0  ;;  %v4264_v60 = vsub.f32 %v4262_v57, %v4263_v59  ;;  %v5088_v6 = vrot.slane %v5087_v5, 4 }
 0x498   : > { %v3125_v16 = vpop.f32.mrb[22].mxu1 }
 0x499   : > { %v3126_v21 = vadd.f32 %v3125_v16, %v3052_v13  ;;  %v19634_v23 = vpop.f32.mrb[23].mxu1  ;;  %v4265_v61 = vand.u32 4294901760, %v4264_v60  ;;  %v5089_v13 = vadd.f32 %v5088_v6, %v5087_v5 }
 0x49b   : > { %v3200_v25 = vadd.f32 %v3199_v12, %v3126_v21  ;;  %v5575_v12 = vsel %vm488_vm1, %v18968_v8, 0.0  ;;  %v5090_v16 = vrot.slane %v5089_v13, 2 }
 0x49c   : > { %v3271_v26 = vpop.f32.mrb[24].mxu1  ;;  %v5576_v14 = vrot.slane %v5575_v12, 4 }
 0x49d   : > { %v3272_v28 = vadd.f32 %v3271_v26, %v3200_v25  ;;  %v19644_v29 = vpop.f32.mrb[25].mxu1  ;;  %v5091_v21 = vadd.f32 %v5090_v16, %v5089_v13 }
 0x49e   : > { %v5577_v20 = vadd.f32 %v5576_v14, %v5575_v12 }
 0x49f   : > { %v3275_v33 = vadd.f32 %v3272_v28, %v2823_v27  ;;  %v5092_v25 = vrot.slane %v5091_v21, 1 }
 0x4a0   : > { %v5578_v23 = vrot.slane %v5577_v20, 2 }
 0x4a1   : > { %v3280_v34 = vsel %vm515_vm3, %v3275_v33, 0  ;;  %v5093_v27 = vadd.f32 %v5092_v25, %v5091_v21 }
 0x4a2   : > { %v3283_v37 = vand.u32 4294901760, %v3280_v34  ;;  %v5579_v26 = vadd.f32 %v5578_v23, %v5577_v20 }
 0x4a3   : > { %v5094_v29 = vmul.f32 0.25, %v5093_v27 }
 0x4a4   : > { %v3360_v38 = vsub.f32 %v3280_v34, %v3283_v37  ;;  %19646 = vmatpush3.msra.mxu0 %v3283_v37  ;;  %v5580_v28 = vrot.slane %v5579_v26, 1 }
 0x4a5   : > { %19648 = vmatmul.mubr.f32.vlgmr.msra.gmra.mrb[26].mxu0 %v21463_v35  ;;  %19655 = vmatprep.subr.mxu0 %v22715_v0  ;;  %v21544_v32 = vsub.f32 %v18967_v2, %v5094_v29 }
 0x4a6   : > { %19656 = vmatpush3.msra.mxu0 %v3360_v38  ;;  %19657 = vmatprep.mubr.msk.f32.mxu0 %vm20989_vm0, %v22715_v0  ;;  %v3361_v18 = vand.u32 4294901760, %v3360_v38  ;;  %v5581_v31 = vadd.f32 %v5580_v28, %v5579_v26 }
 0x4a7   : > { %19665 = vmatprep.subr.mxu0 %v22715_v0  ;;  %v5096_v34 = vmul.f32 %v21544_v32, %v21544_v32 }
 0x4a8   : > { %v3362_v41 = vsub.f32 %v3360_v38, %v3361_v18  ;;  %v5582_v33 = vmul.f32 0.25, %v5581_v31 }
 0x4a9   : > { %19658 = vmatmul.mubr.f32.vlgmr.msra.gmra.mrb[28].mxu0 %v21453_v11 }
 0x4aa   : > { %19666 = vmatpush3.msra.mxu0 %v3361_v18  ;;  %v3363_v49 = vand.u32 4294901760, %v3362_v41  ;;  %19667 = vmatprep.mubr.msk.f32.mxu0 %vm20989_vm0, %v22715_v0  ;;  %v21548_v36 = vsub.f32 %v18968_v8, %v5582_v33 }
 0x4ab   : > { %19675 = vmatprep.subr.mxu0 %v22715_v0 }
 0x4ac   : > { %19651 = vmatpush3.msra.mxu1 %v3363_v49  ;;  %v5584_v38 = vmul.f32 %v21548_v36, %v21548_v36 }
 0x4ad   : > { %19653 = vmatmul.mubr.f32.vlgmr.msra.gmra.mrb[26].mxu1 %v21447_v63  ;;  %19660 = vmatprep.subr.mxu1 %v22715_v0 }
 0x4ae   : > { %19668 = vmatmul.mubr.f32.vlgmr.msra.gmra.mrb[30].mxu0 %v21447_v63  ;;  %19661 = vmatpush3.msra.mxu1 %v3283_v37  ;;  %v5585_v18 = vsel %vm488_vm1, %v5584_v38, 0.0 }
 0x4af   : > { %19676 = vmatpush3.msra.mxu0 %v3735_v51  ;;  %19662 = vmatprep.mubr.msk.f32.mxu1 %vm20989_vm0, %v22715_v0  ;;  %v5586_v41 = vrot.slane %v5585_v18, 4 }
 0x4b0   : > { %19670 = vmatprep.subr.mxu1 %v22715_v0  ;;  %19677 = vmatprep.mubr.msk.f32.mxu0 %vm20989_vm0, %v22715_v0 }
 0x4b1   : > { %19685 = vmatprep.subr.mxu0 %v22715_v0  ;;  %19663 = vmatmul.mubr.f32.vlgmr.msra.gmra.mrb[28].mxu1 %v21456_v24 }
 0x4b2   : > { %19671 = vmatpush3.msra.mxu1 %v3283_v37  ;;  %19678 = vmatmul.mubr.f32.vlgmr.msra.gmra.mrb[32].mxu0 %v21355_v15  ;;  %v5097_v37 = vsel %vm488_vm1, %v5096_v34, 0.0 }
 0x4b3   : > { %19686 = vmatpush3.msra.mxu0 %v3812_v45  ;;  %19672 = vmatprep.mubr.msk.f32.mxu1 %vm20989_vm0, %v22715_v0 }
 0x4b4   : > { %19680 = vmatprep.subr.mxu1 %v22715_v0  ;;  %19687 = vmatprep.mubr.msk.f32.mxu0 %vm20989_vm0, %v22715_v0 }
 0x4b5   : > { %19695 = vmatprep.subr.mxu0 %v22715_v0  ;;  %19673 = vmatmul.mubr.f32.vlgmr.msra.gmra.mrb[30].mxu1 %v21447_v63 }
 0x4b6   : > { %19681 = vmatpush3.msra.mxu1 %v3815_v58  ;;  %19688 = vmatmul.mubr.f32.vlgmr.msra.gmra.mrb[34].mxu0 %v21324_v7 }
 0x4b7   : > { %19696 = vmatpush3.msra.mxu0 %v3813_v53  ;;  %19682 = vmatprep.mubr.msk.f32.mxu1 %vm20989_vm0, %v22715_v0  ;;  %v5587_v53 = vadd.f32 %v5586_v41, %v5585_v18 }
 0x4b8   : > { %19690 = vmatprep.subr.mxu1 %v22715_v0  ;;  %19697 = vmatprep.mubr.msk.f32.mxu0 %vm20989_vm0, %v22715_v0 }
 0x4b9   : > { %19705 = vmatprep.subr.mxu0 %v22715_v0  ;;  %19683 = vmatmul.mubr.f32.vlgmr.msra.gmra.mrb[32].mxu1 %v21316_v4  ;;  %v5588_v58 = vrot.slane %v5587_v53, 2 }
 0x4ba   : > { %19691 = vmatpush3.msra.mxu1 %v3735_v51  ;;  %19698 = vmatmul.mubr.f32.vlgmr.msra.gmra.mrb[36].mxu0 %v21316_v4 }
 0x4bb   : > { %19706 = vmatpush3.msra.mxu0 %v4185_v42  ;;  %19692 = vmatprep.mubr.msk.f32.mxu1 %vm20989_vm0, %v22715_v0  ;;  %v5589_v6 = vadd.f32 %v5588_v58, %v5587_v53 }
 0x4bc   : > { %19700 = vmatprep.subr.mxu1 %v22715_v0  ;;  %19707 = vmatprep.mubr.msk.f32.mxu0 %vm20989_vm0, %v22715_v0 }
 0x4bd   : > { %19715 = vmatprep.subr.mxu0 %v22715_v0  ;;  %19693 = vmatmul.mubr.f32.vlgmr.msra.gmra.mrb[34].mxu1 %v21335_v10  ;;  %v5590_v20 = vrot.slane %v5589_v6, 1 }
 0x4be   : > { %19701 = vmatpush3.msra.mxu1 %v3735_v51  ;;  %19708 = vmatmul.mubr.f32.vlgmr.msra.gmra.mrb[38].mxu0 %v21417_v30  ;;  %v5098_v51 = vrot.slane %v5097_v37, 4 }
 0x4bf   : > { %19716 = vmatpush3.msra.mxu0 %v4262_v57  ;;  %19702 = vmatprep.mubr.msk.f32.mxu1 %vm20989_vm0, %v22715_v0  ;;  %v5591_v28 = vadd.f32 %v5590_v20, %v5589_v6 }
 0x4c0   : > { %19710 = vmatprep.subr.mxu1 %v22715_v0  ;;  %19717 = vmatprep.mubr.msk.f32.mxu0 %vm20989_vm0, %v22715_v0  ;;  %v5099_v40 = vadd.f32 %v5098_v51, %v5097_v37 }
 0x4c1   : > { %19725 = vmatprep.subr.mxu0 %v22715_v0  ;;  %19703 = vmatmul.mubr.f32.vlgmr.msra.gmra.mrb[36].mxu1 %v21316_v4  ;;  %v5592_v18 = vmul.f32 0.25, %v5591_v28 }
 0x4c2   : > { %19711 = vmatpush3.msra.mxu1 %v4265_v61  ;;  %19718 = vmatmul.mubr.f32.vlgmr.msra.gmra.mrb[40].mxu0 %v21406_v62  ;;  %v5100_v49 = vrot.slane %v5099_v40, 2 }
 0x4c3   : > { %19726 = vmatpush3.msra.mxu0 %v4263_v59  ;;  %19712 = vmatprep.mubr.msk.f32.mxu1 %vm20989_vm0, %v22715_v0 }
 0x4c4   : > { %19720 = vmatprep.subr.mxu1 %v22715_v0  ;;  %19727 = vmatprep.mubr.msk.f32.mxu0 %vm20989_vm0, %v22715_v0  ;;  %v5101_v56 = vadd.f32 %v5100_v49, %v5099_v40 }
 0x4c5   : > { %19713 = vmatmul.mubr.f32.vlgmr.msra.gmra.mrb[38].mxu1 %v21403_v55  ;;  %19735 = vmatprep.subr.mxu0 %v22715_v0 }
 0x4c6   : > { %19721 = vmatpush3.msra.mxu1 %v4185_v42  ;;  %19722 = vmatprep.mubr.msk.f32.mxu1 %vm20989_vm0, %v22715_v0  ;;  %v5102_v60 = vrot.slane %v5101_v56, 1 }
 0x4c7   : > { %19730 = vmatprep.subr.mxu1 %v22715_v0  ;;  %19728 = vmatmul.mubr.f32.vlgmr.msra.gmra.mrb[42].mxu0 %v21403_v55 }
 0x4c8   : > { %19737 = vmatprep.mubr.msk.f32.mxu0 %vm20989_vm0, %v22715_v0  ;;  %v5103_v12 = vadd.f32 %v5102_v60, %v5101_v56 }
 0x4c9   : > { %19723 = vmatmul.mubr.f32.vlgmr.msra.gmra.mrb[40].mxu1 %v21409_v9 }
 0x4ca   : > { %19731 = vmatpush3.msra.mxu1 %v4185_v42  ;;  %19732 = vmatprep.mubr.msk.f32.mxu1 %vm20989_vm0, %v22715_v0  ;;  %v5104_v23 = vmul.f32 0.25, %v5103_v12 }
 0x4cb   : > { %19740 = vmatprep.subr.mxu1 %v22715_v0 }
 0x4cc   : > { %v5105_v33 = vadd.f32 1e-05, %v5104_v23 }
 0x4cd   : > { %19733 = vmatmul.mubr.f32.vlgmr.msra.gmra.mrb[42].mxu1 %v21403_v55 }
 0x4ce   : > { %19742 = vmatprep.mubr.msk.f32.mxu1 %vm20989_vm0, %v22715_v0  ;;  %20867 = vrsqrt.f32 %v5105_v33 }
 0x4d8   : > { %v20868_v23 = vpop.eup %20867 }
 0x578   : > { %v21554_v45 = vpop.f32.mrb[26].mxu0 }
 0x579   : > { %v19649_v50 = vpop.f32.mrb[27].mxu0 }
 0x57c   : > { %v21556_v42 = vpop.f32.mrb[28].mxu0 }
 0x57d   : > { %v19659_v57 = vpop.f32.mrb[29].mxu0 }
 0x57e   : > { %v5593_v57 = vadd.f32 1e-05, %v5592_v18 }
 0x580   : > { %v21558_v59 = vpop.f32.mrb[26].mxu1  ;;  %20869 = vrsqrt.f32 %v5593_v57 }
 0x581   : > { %v21560_v61 = vpop.f32.mrb[30].mxu0  ;;  %v19654_v2 = vpop.f32.mrb[27].mxu1 }
 0x582   : > { %v19669_v5 = vpop.f32.mrb[31].mxu0 }
 0x584   : > { %v21562_v8 = vpop.f32.mrb[28].mxu1 }
 0x585   : > { %v3806_v13 = vpop.f32.mrb[32].mxu0  ;;  %v19664_v14 = vpop.f32.mrb[29].mxu1 }
 0x586   : > { %v19679_v16 = vpop.f32.mrb[33].mxu0  ;;  %v3807_v29 = vadd.f32 %v3806_v13, %v21411_v17 }
 0x588   : > { %v21564_v21 = vpop.f32.mrb[30].mxu1 }
 0x589   : > { %22764 = vst [vmem:[#allocation33_spill] sm:$0xff] %v21564_v21  ;;  %v19674_v25 = vpop.f32.mrb[31].mxu1  ;;  %v3956_v26 = vpop.f32.mrb[34].mxu0 }
 0x58a   : > { %v19689_v27 = vpop.f32.mrb[35].mxu0 }
 0x58c   : > { %v3882_v31 = vpop.f32.mrb[32].mxu1 }
 0x58d   : > { %v3883_v34 = vadd.f32 %v3882_v31, %v3807_v29  ;;  %v4104_v37 = vpop.f32.mrb[36].mxu0  ;;  %v19684_v38 = vpop.f32.mrb[33].mxu1 }
 0x58e   : > { %v19699_v51 = vpop.f32.mrb[37].mxu0  ;;  %v20870_v38 = vpop.eup %20869 }
 0x58f   : > { %v3957_v40 = vadd.f32 %v3956_v26, %v3883_v34  ;;  %v5107_v34 = vmul.f32 %v20868_v23, %v21544_v32 }
 0x590   : > { %v4030_v41 = vpop.f32.mrb[34].mxu1 }
 0x591   : > { %v4031_v49 = vadd.f32 %v4030_v41, %v3957_v40  ;;  %v4256_v50 = vpop.f32.mrb[38].mxu0  ;;  %v19694_v53 = vpop.f32.mrb[35].mxu1 }
 0x592   : > { %v19709_v56 = vpop.f32.mrb[39].mxu0  ;;  %v4257_v13 = vadd.f32 %v4256_v50, %v21449_v1  ;;  %v5595_v53 = vmul.f32 %v20870_v38, %v21548_v36 }
 0x593   : > { %v4105_v58 = vadd.f32 %v4104_v37, %v4031_v49  ;;  %v5109_v49 = vsel %vm515_vm3, %v5107_v34, 0 }
 0x594   : > { %v4176_v60 = vpop.f32.mrb[36].mxu1  ;;  %v21572_v56 = vand.u32 4294901760, %v5109_v49 }
 0x595   : > { %v4177_v2 = vadd.f32 %v4176_v60, %v4105_v58  ;;  %v19704_v5 = vpop.f32.mrb[37].mxu1  ;;  %v4406_v6 = vpop.f32.mrb[40].mxu0  ;;  %v5597_v60 = vsel %vm515_vm3, %v5595_v53, 0 }
 0x596   : > { %v19719_v12 = vpop.f32.mrb[41].mxu0  ;;  %v21581_v36 = vand.u32 4294901760, %v5597_v60 }
 0x597   : > { %v4180_v29 = vadd.f32 1.0, %v4177_v2  ;;  %v5189_v2 = vsub.f32 %v5109_v49, %v21572_v56 }
 0x598   : > { %v4332_v14 = vpop.f32.mrb[38].mxu1 }
 0x599   : > { %v4333_v16 = vadd.f32 %v4332_v14, %v4257_v13  ;;  %v19714_v20 = vpop.f32.mrb[39].mxu1  ;;  %v4181_v18 = vmul.f32 %v4180_v29, %v21260_v19  ;;  %v5677_v13 = vsub.f32 %v5597_v60, %v21581_v36 }
 0x59a   : > { %v4554_v25 = vpop.f32.mrb[42].mxu0 }
 0x59b   : > { %v4407_v26 = vadd.f32 %v4406_v6, %v4333_v16  ;;  %v19729_v27 = vpop.f32.mrb[43].mxu0  ;;  %v5190_v6 = vand.u32 4294901760, %v5189_v2  ;;  %v5678_v16 = vand.u32 4294901760, %v5677_v13 }
 0x59c   : > { %v4480_v28 = vpop.f32.mrb[40].mxu1 }
 0x59d   : > { %v4481_v31 = vadd.f32 %v4480_v28, %v4407_v26  ;;  %v19724_v33 = vpop.f32.mrb[41].mxu1  ;;  %v5191_v14 = vsub.f32 %v5189_v2, %v5190_v6  ;;  %v5679_v23 = vsub.f32 %v5677_v13, %v5678_v16 }
 0x59f   : > { %v4555_v37 = vadd.f32 %v4554_v25, %v4481_v31  ;;  %v5192_v20 = vand.u32 4294901760, %v5191_v14  ;;  %v5680_v25 = vand.u32 4294901760, %v5679_v23 }
 0x5a0   : > { %v4626_v51 = vpop.f32.mrb[42].mxu1 }
 0x5a1   : > { %v4627_v40 = vadd.f32 %v4626_v51, %v4555_v37  ;;  %v19734_v41 = vpop.f32.mrb[43].mxu1 }
 0x5a3   : > { %v4630_v50 = vadd.f32 %v4627_v40, %v4181_v18 }
 0x5a5   : > { %v4632_v57 = vsel %vm515_vm3, %v4630_v50, 0 }
 0x5a6   : > { %v4635_v58 = vand.u32 4294901760, %v4632_v57 }
 0x5a8   : > { %v4712_v32 = vsub.f32 %v4632_v57, %v4635_v58  ;;  %19736 = vmatpush3.msra.mxu0 %v4635_v58 }
 0x5a9   : > { %19738 = vmatmul.mubr.f32.vlgmr.msra.gmra.mrb[44].mxu0 %v21463_v35  ;;  %19745 = vmatprep.subr.mxu0 %v22715_v0 }
 0x5aa   : > { %19746 = vmatpush3.msra.mxu0 %v4712_v32  ;;  %19747 = vmatprep.mubr.msk.f32.mxu0 %vm20989_vm0, %v22715_v0  ;;  %v4713_v19 = vand.u32 4294901760, %v4712_v32 }
 0x5ab   : > { %19755 = vmatprep.subr.mxu0 %v22715_v0 }
 0x5ac   : > { %v4714_v5 = vsub.f32 %v4712_v32, %v4713_v19 }
 0x5ad   : > { %19748 = vmatmul.mubr.f32.vlgmr.msra.gmra.mrb[46].mxu0 %v21453_v11 }
 0x5ae   : > { %19756 = vmatpush3.msra.mxu0 %v4713_v19  ;;  %v4715_v12 = vand.u32 4294901760, %v4714_v5  ;;  %19757 = vmatprep.mubr.msk.f32.mxu0 %vm20989_vm0, %v22715_v0 }
 0x5af   : > { %19765 = vmatprep.subr.mxu0 %v22715_v0 }
 0x5b0   : > { %19741 = vmatpush3.msra.mxu1 %v4715_v12 }
 0x5b1   : > { %19743 = vmatmul.mubr.f32.vlgmr.msra.gmra.mrb[44].mxu1 %v21447_v63  ;;  %19750 = vmatprep.subr.mxu1 %v22715_v0 }
 0x5b2   : > { %19758 = vmatmul.mubr.f32.vlgmr.msra.gmra.mrb[48].mxu0 %v21447_v63  ;;  %19751 = vmatpush3.msra.mxu1 %v4635_v58 }
 0x5b3   : > { %19752 = vmatprep.mubr.msk.f32.mxu1 %vm20989_vm0, %v22715_v0  ;;  %19760 = vmatprep.subr.mxu1 %v22715_v0 }
 0x5b4   : > { %19766 = vmatpush3.msra.mxu0 %v21572_v56  ;;  %19767 = vmatprep.mubr.msk.f32.mxu0 %vm20989_vm0, %v22715_v0 }
 0x5b5   : > { %19753 = vmatmul.mubr.f32.vlgmr.msra.gmra.mrb[46].mxu1 %v21456_v24  ;;  %19770 = vmatprep.subr.mxu0 %v22715_v0 }
 0x5b6   : > { %19761 = vmatpush3.msra.mxu1 %v4635_v58  ;;  %19768 = vmatmul.mubr.f32.vlgmr.msra.gmra.mrb[50].mxu0 %v21203_v54 }
 0x5b7   : > { %19762 = vmatprep.mubr.msk.f32.mxu1 %vm20989_vm0, %v22715_v0  ;;  %19795 = vmatprep.subr.mxu1 %v22715_v0 }
 0x5b8   : > { %19771 = vmatpush3.msra.mxu0 %v5192_v20  ;;  %19772 = vmatprep.mubr.msk.f32.mxu0 %vm20989_vm0, %v22715_v0 }
 0x5b9   : > { %19763 = vmatmul.mubr.f32.vlgmr.msra.gmra.mrb[48].mxu1 %v21447_v63  ;;  %19775 = vmatprep.subr.mxu0 %v22715_v0 }
 0x5ba   : > { %19796 = vmatpush3.msra.mxu1 %v21581_v36  ;;  %19797 = vmatprep.mubr.msk.f32.mxu1 %vm20989_vm0, %v22715_v0 }
 0x5bb   : > { %19800 = vmatprep.subr.mxu1 %v22715_v0 }
 0x5bd   : > { %19798 = vmatmul.mubr.f32.vlgmr.msra.gmra.mrb[50].mxu1 %v21203_v54 }
 0x5be   : > { %19773 = vmatmul.mubr.f32.vlgmr.msra.gmra.mrb[50].mxu0 %v21192_v43  ;;  %19801 = vmatpush3.msra.mxu1 %v5680_v25 }
 0x5bf   : > { %19776 = vmatpush3.msra.mxu0 %v5189_v2  ;;  %19777 = vmatprep.mubr.msk.f32.mxu0 %vm20989_vm0, %v22715_v0 }
 0x5c0   : > { %19802 = vmatprep.mubr.msk.f32.mxu1 %vm20989_vm0, %v22715_v0  ;;  %19780 = vmatprep.subr.mxu0 %v22715_v0 }
 0x5c1   : > { %19805 = vmatprep.subr.mxu1 %v22715_v0 }
 0x5c5   : > { %19803 = vmatmul.mubr.f32.vlgmr.msra.gmra.mrb[50].mxu1 %v21192_v43 }
 0x5c6   : > { %19778 = vmatmul.mubr.f32.vlgmr.msra.gmra.mrb[50].mxu0 %v21195_v46  ;;  %19806 = vmatpush3.msra.mxu1 %v5677_v13 }
 0x5c7   : > { %19781 = vmatpush3.msra.mxu0 %v21572_v56  ;;  %19782 = vmatprep.mubr.msk.f32.mxu0 %vm20989_vm0, %v22715_v0 }
 0x5c8   : > { %19807 = vmatprep.mubr.msk.f32.mxu1 %vm20989_vm0, %v22715_v0  ;;  %19785 = vmatprep.subr.mxu0 %v22715_v0 }
 0x5c9   : > { %19810 = vmatprep.subr.mxu1 %v22715_v0 }
 0x5cd   : > { %19808 = vmatmul.mubr.f32.vlgmr.msra.gmra.mrb[50].mxu1 %v21195_v46 }
 0x5ce   : > { %19783 = vmatmul.mubr.f32.vlgmr.msra.gmra.mrb[50].mxu0 %v21198_v47  ;;  %19811 = vmatpush3.msra.mxu1 %v21581_v36 }
 0x5cf   : > { %19786 = vmatpush3.msra.mxu0 %v5190_v6  ;;  %19787 = vmatprep.mubr.msk.f32.mxu0 %vm20989_vm0, %v22715_v0 }
 0x5d0   : > { %19812 = vmatprep.mubr.msk.f32.mxu1 %vm20989_vm0, %v22715_v0  ;;  %19790 = vmatprep.subr.mxu0 %v22715_v0 }
 0x5d1   : > { %19815 = vmatprep.subr.mxu1 %v22715_v0 }
 0x5d5   : > { %19813 = vmatmul.mubr.f32.vlgmr.msra.gmra.mrb[50].mxu1 %v21198_v47 }
 0x5d6   : > { %19788 = vmatmul.mubr.f32.vlgmr.msra.gmra.mrb[50].mxu0 %v21192_v43  ;;  %19816 = vmatpush3.msra.mxu1 %v5678_v16 }
 0x5d7   : > { %19791 = vmatpush3.msra.mxu0 %v21572_v56  ;;  %19792 = vmatprep.mubr.msk.f32.mxu0 %vm20989_vm0, %v22715_v0 }
 0x5d8   : > { %19817 = vmatprep.mubr.msk.f32.mxu1 %vm20989_vm0, %v22715_v0  ;;  %19820 = vmatprep.subr.mxu1 %v22715_v0 }
 0x5d9   : > { %19825 = vmatprep.subr.mxu0 %v22715_v0 }
 0x5dd   : > { %19818 = vmatmul.mubr.f32.vlgmr.msra.gmra.mrb[50].mxu1 %v21192_v43 }
 0x5de   : > { %19793 = vmatmul.mubr.f32.vlgmr.msra.gmra.mrb[50].mxu0 %v21192_v43  ;;  %19821 = vmatpush3.msra.mxu1 %v21581_v36 }
 0x5df   : > { %19822 = vmatprep.mubr.msk.f32.mxu1 %vm20989_vm0, %v22715_v0  ;;  %19827 = vmatprep.mubr.msk.f32.mxu0 %vm20989_vm0, %v22715_v0 }
 0x5e0   : > { %19830 = vmatprep.subr.mxu1 %v22715_v0 }
 0x5e5   : > { %19823 = vmatmul.mubr.f32.vlgmr.msra.gmra.mrb[50].mxu1 %v21192_v43 }
 0x5e6   : > { %19832 = vmatprep.mubr.msk.f32.mxu1 %vm20989_vm0, %v22715_v0 }
 0x67c   : > { %v21658_v26 = vpop.f32.mrb[44].mxu0 }
 0x67d   : > { %v19739_v27 = vpop.f32.mrb[45].mxu0 }
 0x680   : > { %v21660_v28 = vpop.f32.mrb[46].mxu0 }
 0x681   : > { %v19749_v29 = vpop.f32.mrb[47].mxu0 }
 0x684   : > { %v21662_v31 = vpop.f32.mrb[44].mxu1 }
 0x685   : > { %v21664_v33 = vpop.f32.mrb[48].mxu0  ;;  %v19744_v34 = vpop.f32.mrb[45].mxu1 }
 0x686   : > { %22765 = vst [vmem:[#allocation34_spill] sm:$0xff] %v21664_v33  ;;  %v19759_v37 = vpop.f32.mrb[49].mxu0 }
 0x688   : > { %v21666_v38 = vpop.f32.mrb[46].mxu1 }
 0x689   : > { %v19754_v51 = vpop.f32.mrb[47].mxu1 }
 0x68c   : > { %v21668_v18 = vpop.f32.mrb[48].mxu1 }
 0x68d   : > { %22766 = vst [vmem:[#allocation35_spill] sm:$0xff] %v21668_v18  ;;  %v19764_v40 = vpop.f32.mrb[49].mxu1 }
 0x6b1   : > { %v5553_v41 = vpop.f32.mrb[50].mxu0 }
 0x6b2   : > { %v20667_v49 = vadd.f32 %v5553_v41, %v21254_v3  ;;  %v19794_v50 = vpop.f32.mrb[51].mxu0 }
 0x6b4   : > { %v5558_v53 = vmul.f32 0.70710677, %v20667_v49  ;;  %v5557_v2 = vmul.f32 0.5, %v20667_v49 }
 0x6b6   : > { %20871 = verf.f32 %v5558_v53 }
 0x6b8   : > { %v6041_v56 = vpop.f32.mrb[50].mxu1 }
 0x6b9   : > { %v20668_v57 = vadd.f32 %v6041_v56, %v21254_v3  ;;  %v19824_v58 = vpop.f32.mrb[51].mxu1 }
 0x6bb   : > { %v6046_v60 = vmul.f32 0.70710677, %v20668_v57  ;;  %v6045_v12 = vmul.f32 0.5, %v20668_v57 }
 0x6bd   : > { %20873 = verf.f32 %v6046_v60 }
 0x6c0   : > { %v20872_v32 = vpop.eup %20871 }
 0x6c1   : > { %v5560_v19 = vadd.f32 1.0, %v20872_v32 }
 0x6c3   : > { %v21672_v36 = vmul.f32 %v5560_v19, %v5557_v2 }
 0x6c5   : > { %v5562_v5 = vsel %vm970_vm4, %v21672_v36, 0.0 }
 0x6c6   : > { %5563 = vadd.xlane.f32.xlu0 %v5562_v5 }
 0x6c7   : > { %v20874_v6 = vpop.eup %20873 }
 0x6c8   : > { %v6048_v13 = vadd.f32 1.0, %v20874_v6 }
 0x6ca   : > { %v21676_v14 = vmul.f32 %v6048_v13, %v6045_v12 }
 0x6cc   : > { %v6050_v16 = vsel %vm970_vm4, %v21676_v14, 0.0 }
 0x6cd   : > { %6051 = vadd.xlane.f32.xlu1 %v6050_v16 }
 0x753   : > { %v5564_v20 = vpop.xlane.xlu0 %5563 }
 0x754   : > { %v5565_v23 = vmul.f32 0.0625, %v5564_v20 }
 0x756   : > { %v5566_v25 = vsub.f32 %v21672_v36, %v5565_v23 }
 0x758   : > { %v5567_v27 = vmul.f32 %v5566_v25, %v5566_v25 }
 0x75a   : > { %v6052_v29 = vpop.xlane.xlu1 %6051  ;;  %v5568_v34 = vsel %vm970_vm4, %v5567_v27, 0.0 }
 0x75b   : > { %v6053_v37 = vmul.f32 0.0625, %v6052_v29  ;;  %5569 = vadd.xlane.f32.xlu0 %v5568_v34 }
 0x75d   : > { %v6054_v51 = vsub.f32 %v21676_v14, %v6053_v37 }
 0x75f   : > { %v6055_v40 = vmul.f32 %v6054_v51, %v6054_v51 }
 0x761   : > { %v6056_v41 = vsel %vm970_vm4, %v6055_v40, 0.0 }
 0x762   : > { %6057 = vadd.xlane.f32.xlu0 %v6056_v41 }
 0x7e8   : > { %v5570_v49 = vpop.xlane.xlu0 %5569 }
 0x7e9   : > { %v5571_v50 = vmul.f32 0.0625, %v5570_v49 }
 0x7eb   : > { %v5572_v53 = vadd.f32 1e-05, %v5571_v50 }
 0x7ed   : > { %20875 = vrsqrt.f32 %v5572_v53 }
 0x7ef   : > { %v6058_v56 = vpop.xlane.xlu0 %6057 }
 0x7f0   : > { %v6059_v57 = vmul.f32 0.0625, %v6058_v56 }
 0x7f2   : > { %v6060_v58 = vadd.f32 1e-05, %v6059_v57 }
 0x7f4   : > { %20877 = vrsqrt.f32 %v6060_v58 }
 0x7f7   : > { %v20876_v60 = vpop.eup %20875 }
 0x7f8   : > { %v21684_v32 = vmul.f32 %v20876_v60, %v5566_v25 }
 0x7fa   : > { %v6064_v2 = vand.u32 4294901760, %v21684_v32  ;;  %v6956_v20 = vrot.slane %v21684_v32, 4 }
 0x7fc   : > { %19826 = vmatpush3.msra.mxu0 %v6064_v2  ;;  %v6141_v19 = vsub.f32 %v21684_v32, %v6064_v2  ;;  %v6957_v29 = vsel %vm515_vm3, %v6956_v20, 0 }
 0x7fd   : > { %19828 = vmatmul.mubr.f32.vlgmr.msra.gmra.mrb[52].mxu0 %v21295_v52  ;;  %19835 = vmatprep.subr.mxu0 %v22715_v0  ;;  %v6960_v37 = vand.u32 4294901760, %v6957_v29 }
 0x7fe   : > { %v20878_v5 = vpop.eup %20877  ;;  %19836 = vmatpush3.msra.mxu0 %v6141_v19  ;;  %19837 = vmatprep.mubr.msk.f32.mxu0 %vm20989_vm0, %v22715_v0  ;;  %v6142_v6 = vand.u32 4294901760, %v6141_v19 }
 0x7ff   : > { %v21692_v12 = vmul.f32 %v20878_v5, %v6054_v51  ;;  %19845 = vmatprep.subr.mxu0 %v22715_v0  ;;  %v7037_v40 = vsub.f32 %v6957_v29, %v6960_v37 }
 0x800   : > { %v6143_v13 = vsub.f32 %v6141_v19, %v6142_v6 }
 0x801   : > { %19838 = vmatmul.mubr.f32.vlgmr.msra.gmra.mrb[54].mxu0 %v21286_v44  ;;  %v6510_v16 = vand.u32 4294901760, %v21692_v12  ;;  %v7038_v41 = vand.u32 4294901760, %v7037_v40 }
 0x802   : > { %19846 = vmatpush3.msra.mxu0 %v6142_v6  ;;  %v6144_v23 = vand.u32 4294901760, %v6143_v13  ;;  %19847 = vmatprep.mubr.msk.f32.mxu0 %vm20989_vm0, %v22715_v0 }
 0x803   : > { %19855 = vmatprep.subr.mxu0 %v22715_v0  ;;  %v6587_v25 = vsub.f32 %v21692_v12, %v6510_v16  ;;  %v7039_v49 = vsub.f32 %v7037_v40, %v7038_v41 }
 0x804   : > { %19831 = vmatpush3.msra.mxu1 %v6144_v23 }
 0x805   : > { %19833 = vmatmul.mubr.f32.vlgmr.msra.gmra.mrb[52].mxu1 %v21283_v39  ;;  %19840 = vmatprep.subr.mxu1 %v22715_v0  ;;  %v6588_v27 = vand.u32 4294901760, %v6587_v25  ;;  %v7040_v50 = vand.u32 4294901760, %v7039_v49 }
 0x806   : > { %19848 = vmatmul.mubr.f32.vlgmr.msra.gmra.mrb[56].mxu0 %v21283_v39  ;;  %19841 = vmatpush3.msra.mxu1 %v6064_v2 }
 0x807   : > { %19856 = vmatpush3.msra.mxu0 %v6510_v16  ;;  %19842 = vmatprep.mubr.msk.f32.mxu1 %vm20989_vm0, %v22715_v0  ;;  %v6589_v34 = vsub.f32 %v6587_v25, %v6588_v27 }
 0x808   : > { %19850 = vmatprep.subr.mxu1 %v22715_v0  ;;  %19857 = vmatprep.mubr.msk.f32.mxu0 %vm20989_vm0, %v22715_v0 }
 0x809   : > { %19865 = vmatprep.subr.mxu0 %v22715_v0  ;;  %19843 = vmatmul.mubr.f32.vlgmr.msra.gmra.mrb[54].mxu1 %v21289_v48  ;;  %v6590_v51 = vand.u32 4294901760, %v6589_v34 }
 0x80a   : > { %19851 = vmatpush3.msra.mxu1 %v6064_v2  ;;  %19858 = vmatmul.mubr.f32.vlgmr.msra.gmra.mrb[58].mxu0 %v21295_v52 }
 0x80b   : > { %19866 = vmatpush3.msra.mxu0 %v6587_v25  ;;  %19852 = vmatprep.mubr.msk.f32.mxu1 %vm20989_vm0, %v22715_v0 }
 0x80c   : > { %19860 = vmatprep.subr.mxu1 %v22715_v0  ;;  %19867 = vmatprep.mubr.msk.f32.mxu0 %vm20989_vm0, %v22715_v0 }
 0x80d   : > { %19875 = vmatprep.subr.mxu0 %v22715_v0  ;;  %19853 = vmatmul.mubr.f32.vlgmr.msra.gmra.mrb[56].mxu1 %v21283_v39 }
 0x80e   : > { %19861 = vmatpush3.msra.mxu1 %v6590_v51  ;;  %19868 = vmatmul.mubr.f32.vlgmr.msra.gmra.mrb[60].mxu0 %v21286_v44 }
 0x80f   : > { %19876 = vmatpush3.msra.mxu0 %v6588_v27  ;;  %19862 = vmatprep.mubr.msk.f32.mxu1 %vm20989_vm0, %v22715_v0 }
 0x810   : > { %19870 = vmatprep.subr.mxu1 %v22715_v0  ;;  %19877 = vmatprep.mubr.msk.f32.mxu0 %vm20989_vm0, %v22715_v0 }
 0x811   : > { %19885 = vmatprep.subr.mxu0 %v22715_v0  ;;  %19863 = vmatmul.mubr.f32.vlgmr.msra.gmra.mrb[58].mxu1 %v21283_v39 }
 0x812   : > { %19871 = vmatpush3.msra.mxu1 %v6510_v16  ;;  %19878 = vmatmul.mubr.f32.vlgmr.msra.gmra.mrb[62].mxu0 %v21283_v39 }
 0x813   : > { %19886 = vmatpush3.msra.mxu0 %v6960_v37  ;;  %19872 = vmatprep.mubr.msk.f32.mxu1 %vm20989_vm0, %v22715_v0 }
 0x814   : > { %19880 = vmatprep.subr.mxu1 %v22715_v0  ;;  %19887 = vmatprep.mubr.msk.f32.mxu0 %vm20989_vm0, %v22715_v0 }
 0x815   : > { %19895 = vmatprep.subr.mxu0 %v22715_v0  ;;  %19873 = vmatmul.mubr.f32.vlgmr.msra.gmra.mrb[60].mxu1 %v21289_v48 }
 0x816   : > { %19881 = vmatpush3.msra.mxu1 %v6510_v16  ;;  %19888 = vmatmul.mubr.f32.vlgmr.msra.gmra.mrb[64].mxu0 %v21355_v15 }
 0x817   : > { %19896 = vmatpush3.msra.mxu0 %v7037_v40  ;;  %19882 = vmatprep.mubr.msk.f32.mxu1 %vm20989_vm0, %v22715_v0 }
 0x818   : > { %19890 = vmatprep.subr.mxu1 %v22715_v0  ;;  %19897 = vmatprep.mubr.msk.f32.mxu0 %vm20989_vm0, %v22715_v0 }
 0x819   : > { %19905 = vmatprep.subr.mxu0 %v22715_v0  ;;  %19883 = vmatmul.mubr.f32.vlgmr.msra.gmra.mrb[62].mxu1 %v21283_v39 }
 0x81a   : > { %19891 = vmatpush3.msra.mxu1 %v7040_v50  ;;  %19898 = vmatmul.mubr.f32.vlgmr.msra.gmra.mrb[66].mxu0 %v21324_v7 }
 0x81b   : > { %19906 = vmatpush3.msra.mxu0 %v7038_v41  ;;  %19892 = vmatprep.mubr.msk.f32.mxu1 %vm20989_vm0, %v22715_v0 }
 0x81c   : > { %19900 = vmatprep.subr.mxu1 %v22715_v0  ;;  %19907 = vmatprep.mubr.msk.f32.mxu0 %vm20989_vm0, %v22715_v0 }
 0x81d   : > { %19893 = vmatmul.mubr.f32.vlgmr.msra.gmra.mrb[64].mxu1 %v21316_v4  ;;  %19915 = vmatprep.subr.mxu0 %v22715_v0 }
 0x81e   : > { %19901 = vmatpush3.msra.mxu1 %v6960_v37  ;;  %19902 = vmatprep.mubr.msk.f32.mxu1 %vm20989_vm0, %v22715_v0 }
 0x81f   : > { %19910 = vmatprep.subr.mxu1 %v22715_v0  ;;  %19908 = vmatmul.mubr.f32.vlgmr.msra.gmra.mrb[68].mxu0 %v21316_v4 }
 0x820   : > { %19917 = vmatprep.mubr.msk.f32.mxu0 %vm20989_vm0, %v22715_v0 }
 0x821   : > { %19903 = vmatmul.mubr.f32.vlgmr.msra.gmra.mrb[66].mxu1 %v21335_v10 }
 0x822   : > { %19911 = vmatpush3.msra.mxu1 %v6960_v37  ;;  %19912 = vmatprep.mubr.msk.f32.mxu1 %vm20989_vm0, %v22715_v0 }
 0x823   : > { %19920 = vmatprep.subr.mxu1 %v22715_v0 }
 0x825   : > { %19913 = vmatmul.mubr.f32.vlgmr.msra.gmra.mrb[68].mxu1 %v21316_v4 }
 0x826   : > { %19922 = vmatprep.mubr.msk.f32.mxu1 %vm20989_vm0, %v22715_v0 }
 0x8d0   : > { %v6135_v53 = vpop.f32.mrb[52].mxu0 }
 0x8d1   : > { %v19829_v56 = vpop.f32.mrb[53].mxu0  ;;  %v6136_v60 = vadd.f32 %v6135_v53, %v21393_v22 }
 0x8d4   : > { %v6285_v57 = vpop.f32.mrb[54].mxu0 }
 0x8d5   : > { %v19839_v58 = vpop.f32.mrb[55].mxu0 }
 0x8d8   : > { %v6211_v2 = vpop.f32.mrb[52].mxu1 }
 0x8d9   : > { %v6212_v19 = vadd.f32 %v6211_v2, %v6136_v60  ;;  %v6433_v5 = vpop.f32.mrb[56].mxu0  ;;  %v19834_v6 = vpop.f32.mrb[53].mxu1 }
 0x8da   : > { %v19849_v13 = vpop.f32.mrb[57].mxu0 }
 0x8db   : > { %v6286_v16 = vadd.f32 %v6285_v57, %v6212_v19 }
 0x8dc   : > { %v6359_v20 = vpop.f32.mrb[54].mxu1 }
 0x8dd   : > { %v6360_v23 = vadd.f32 %v6359_v20, %v6286_v16  ;;  %v6581_v25 = vpop.f32.mrb[58].mxu0  ;;  %v19844_v27 = vpop.f32.mrb[55].mxu1 }
 0x8de   : > { %v19859_v29 = vpop.f32.mrb[59].mxu0  ;;  %v6582_v50 = vadd.f32 %v6581_v25, %v21393_v22 }
 0x8df   : > { %v6434_v34 = vadd.f32 %v6433_v5, %v6360_v23 }
 0x8e0   : > { %v6505_v37 = vpop.f32.mrb[56].mxu1 }
 0x8e1   : > { %v21767_v51 = vadd.f32 %v6505_v37, %v6434_v34  ;;  %v19854_v40 = vpop.f32.mrb[57].mxu1  ;;  %v6731_v41 = vpop.f32.mrb[60].mxu0 }
 0x8e2   : > { %v19869_v49 = vpop.f32.mrb[61].mxu0 }
 0x8e4   : > { %v6657_v53 = vpop.f32.mrb[58].mxu1 }
 0x8e5   : > { %v6658_v56 = vadd.f32 %v6657_v53, %v6582_v50  ;;  %v6879_v58 = vpop.f32.mrb[62].mxu0  ;;  %v19864_v60 = vpop.f32.mrb[59].mxu1 }
 0x8e6   : > { %v19879_v2 = vpop.f32.mrb[63].mxu0 }
 0x8e7   : > { %v6732_v57 = vadd.f32 %v6731_v41, %v6658_v56 }
 0x8e8   : > { %v6805_v19 = vpop.f32.mrb[60].mxu1 }
 0x8e9   : > { %v6806_v6 = vadd.f32 %v6805_v19, %v6732_v57  ;;  %v7031_v13 = vpop.f32.mrb[64].mxu0  ;;  %v19874_v16 = vpop.f32.mrb[61].mxu1 }
 0x8ea   : > { %v19889_v20 = vpop.f32.mrb[65].mxu0  ;;  %v7032_v40 = vadd.f32 %v7031_v13, %v21411_v17 }
 0x8eb   : > { %v6880_v5 = vadd.f32 %v6879_v58, %v6806_v6 }
 0x8ec   : > { %v6951_v23 = vpop.f32.mrb[62].mxu1 }
 0x8ed   : > { %v6952_v27 = vadd.f32 %v6951_v23, %v6880_v5  ;;  %v19884_v29 = vpop.f32.mrb[63].mxu1  ;;  %v7181_v34 = vpop.f32.mrb[66].mxu0 }
 0x8ee   : > { %v19899_v37 = vpop.f32.mrb[67].mxu0 }
 0x8ef   : > { %v7407_v25 = vadd.f32 1.0, %v6952_v27 }
 0x8f0   : > { %v7107_v49 = vpop.f32.mrb[64].mxu1 }
 0x8f1   : > { %v7408_v50 = vmul.f32 %v7407_v25, %v21684_v32  ;;  %v7108_v53 = vadd.f32 %v7107_v49, %v7032_v40  ;;  %v19894_v60 = vpop.f32.mrb[65].mxu1 }
 0x8f2   : > { %v7329_v41 = vpop.f32.mrb[68].mxu0 }
 0x8f3   : > { %v7410_v56 = vand.u32 4294901760, %v7408_v50  ;;  %v7182_v2 = vadd.f32 %v7181_v34, %v7108_v53  ;;  %v19909_v57 = vpop.f32.mrb[69].mxu0 }
 0x8f4   : > { %v7255_v19 = vpop.f32.mrb[66].mxu1 }
 0x8f5   : > { %v7487_v16 = vsub.f32 %v7408_v50, %v7410_v56  ;;  %v7256_v58 = vadd.f32 %v7255_v19, %v7182_v2  ;;  %19916 = vmatpush3.msra.mxu0 %v7410_v56  ;;  %v19904_v6 = vpop.f32.mrb[67].mxu1 }
 0x8f6   : > { %19918 = vmatmul.mubr.f32.vlgmr.msra.gmra.mrb[70].mxu0 %v21417_v30  ;;  %19925 = vmatprep.subr.mxu0 %v22715_v0 }
 0x8f7   : > { %v7330_v13 = vadd.f32 %v7329_v41, %v7256_v58  ;;  %19926 = vmatpush3.msra.mxu0 %v7487_v16  ;;  %19927 = vmatprep.mubr.msk.f32.mxu0 %vm20989_vm0, %v22715_v0  ;;  %v7488_v32 = vand.u32 4294901760, %v7487_v16 }
 0x8f8   : > { %v7401_v20 = vpop.f32.mrb[68].mxu1  ;;  %19935 = vmatprep.subr.mxu0 %v22715_v0 }
 0x8f9   : > { %v7402_v5 = vadd.f32 %v7401_v20, %v7330_v13  ;;  %v7489_v23 = vsub.f32 %v7487_v16, %v7488_v32  ;;  %v19914_v27 = vpop.f32.mrb[69].mxu1 }
 0x8fa   : > { %19928 = vmatmul.mubr.f32.vlgmr.msra.gmra.mrb[72].mxu0 %v21406_v62  ;;  %v8309_v27 = vrot.slane %v21692_v12, 4 }
 0x8fb   : > { %19936 = vmatpush3.msra.mxu0 %v7488_v32  ;;  %v7490_v29 = vand.u32 4294901760, %v7489_v23  ;;  %19937 = vmatprep.mubr.msk.f32.mxu0 %vm20989_vm0, %v22715_v0  ;;  %v7405_v19 = vadd.f32 1.0, %v7402_v5  ;;  %v8760_v5 = vadd.f32 1.0, %v21767_v51 }
 0x8fc   : > { %19945 = vmatprep.subr.mxu0 %v22715_v0 }
 0x8fd   : > { %19921 = vmatpush3.msra.mxu1 %v7490_v29  ;;  %v7406_v32 = vmul.f32 %v7405_v19, %v21672_v36 }
 0x8fe   : > { %19923 = vmatmul.mubr.f32.vlgmr.msra.gmra.mrb[70].mxu1 %v21403_v55  ;;  %19930 = vmatprep.subr.mxu1 %v22715_v0 }
 0x8ff   : > { %19931 = vmatpush3.msra.mxu1 %v7410_v56  ;;  %19932 = vmatprep.mubr.msk.f32.mxu1 %vm20989_vm0, %v22715_v0 }
 0x900   : > { %19940 = vmatprep.subr.mxu1 %v22715_v0  ;;  %19938 = vmatmul.mubr.f32.vlgmr.msra.gmra.mrb[74].mxu0 %v21403_v55 }
 0x901   : > { %19947 = vmatprep.mubr.msk.f32.mxu0 %vm20989_vm0, %v22715_v0 }
 0x902   : > { %19933 = vmatmul.mubr.f32.vlgmr.msra.gmra.mrb[72].mxu1 %v21409_v9 }
 0x903   : > { %19941 = vmatpush3.msra.mxu1 %v7410_v56  ;;  %19942 = vmatprep.mubr.msk.f32.mxu1 %vm20989_vm0, %v22715_v0 }
 0x904   : > { %19950 = vmatprep.subr.mxu1 %v22715_v0 }
 0x906   : > { %19943 = vmatmul.mubr.f32.vlgmr.msra.gmra.mrb[74].mxu1 %v21403_v55 }
 0x907   : > { %19952 = vmatprep.mubr.msk.f32.mxu1 %vm20989_vm0, %v22715_v0 }
 0x9c9   : > { %v7481_v34 = vpop.f32.mrb[70].mxu0 }
 0x9ca   : > { %v19919_v37 = vpop.f32.mrb[71].mxu0  ;;  %v7482_v49 = vadd.f32 %v7481_v34, %v21449_v1 }
 0x9cb   : > { %v8310_v37 = vsel %vm515_vm3, %v8309_v27, 0 }
 0x9cd   : > { %v7631_v40 = vpop.f32.mrb[72].mxu0 }
 0x9ce   : > { %v19929_v25 = vpop.f32.mrb[73].mxu0 }
 0x9d1   : > { %v7557_v50 = vpop.f32.mrb[70].mxu1 }
 0x9d2   : > { %v7558_v53 = vadd.f32 %v7557_v50, %v7482_v49  ;;  %v19924_v60 = vpop.f32.mrb[71].mxu1  ;;  %v8313_v49 = vand.u32 4294901760, %v8310_v37 }
 0x9d3   : > { %v7779_v41 = vpop.f32.mrb[74].mxu0 }
 0x9d4   : > { %v7632_v56 = vadd.f32 %v7631_v40, %v7558_v53  ;;  %v19939_v2 = vpop.f32.mrb[75].mxu0  ;;  %v8390_v53 = vsub.f32 %v8310_v37, %v8313_v49 }
 0x9d5   : > { %v7705_v57 = vpop.f32.mrb[72].mxu1 }
 0x9d6   : > { %v7706_v16 = vadd.f32 %v7705_v57, %v7632_v56  ;;  %v19934_v58 = vpop.f32.mrb[73].mxu1  ;;  %v8391_v56 = vand.u32 4294901760, %v8390_v53 }
 0x9d8   : > { %v7780_v6 = vadd.f32 %v7779_v41, %v7706_v16  ;;  %v8761_v41 = vmul.f32 %v8760_v5, %v21692_v12  ;;  %v8392_v12 = vsub.f32 %v8390_v53, %v8391_v56 }
 0x9d9   : > { %v7851_v13 = vpop.f32.mrb[74].mxu1 }
 0x9da   : > { %v7852_v20 = vadd.f32 %v7851_v13, %v7780_v6  ;;  %v19944_v23 = vpop.f32.mrb[75].mxu1  ;;  %v8763_v51 = vand.u32 4294901760, %v8761_v41  ;;  %v8393_v57 = vand.u32 4294901760, %v8392_v12  ;;  %v18971_v6 = vld [vmem:[%s21167_s25 + $0x8] sm:$0xf] }
 0x9db   : > { %v9665_v13 = vsel %vm488_vm1, %v18971_v6, 0.0 }
 0x9dc   : > { %v7855_v29 = vadd.f32 %v7852_v20, %v7406_v32  ;;  %v8840_v2 = vsub.f32 %v8761_v41, %v8763_v51  ;;  %v9666_v32 = vrot.slane %v9665_v13, 4  ;;  %v18972_v20 = vld [vmem:[%s21167_s25 + $0x18] sm:$0xf] }
 0x9dd   : > { %v10153_v23 = vsel %vm488_vm1, %v18972_v20, 0.0 }
 0x9de   : > { %v7857_v34 = vsel %vm515_vm3, %v7855_v29, 0  ;;  %v8841_v19 = vand.u32 4294901760, %v8840_v2  ;;  %v9667_v27 = vadd.f32 %v9666_v32, %v9665_v13  ;;  %v10154_v29 = vrot.slane %v10153_v23, 4 }
 0x9df   : > { %v7860_v25 = vand.u32 4294901760, %v7857_v34 }
 0x9e0   : > { %v8842_v16 = vsub.f32 %v8840_v2, %v8841_v19  ;;  %v10155_v37 = vadd.f32 %v10154_v29, %v10153_v23 }
 0x9e1   : > { %v7937_v40 = vsub.f32 %v7857_v34, %v7860_v25  ;;  %19946 = vmatpush3.msra.mxu0 %v7860_v25  ;;  %v9668_v34 = vrot.slane %v9667_v27, 2 }
 0x9e2   : > { %19948 = vmatmul.mubr.f32.vlgmr.msra.gmra.mrb[76].mxu0 %v21463_v35  ;;  %19955 = vmatprep.subr.mxu0 %v22715_v0  ;;  %v8843_v58 = vand.u32 4294901760, %v8842_v16 }
 0x9e3   : > { %19956 = vmatpush3.msra.mxu0 %v7937_v40  ;;  %19957 = vmatprep.mubr.msk.f32.mxu0 %vm20989_vm0, %v22715_v0  ;;  %v7938_v36 = vand.u32 4294901760, %v7937_v40 }
 0x9e4   : > { %19965 = vmatprep.subr.mxu0 %v22715_v0 }
 0x9e5   : > { %v7939_v50 = vsub.f32 %v7937_v40, %v7938_v36  ;;  %v10156_v40 = vrot.slane %v10155_v37, 2 }
 0x9e6   : > { %19958 = vmatmul.mubr.f32.vlgmr.msra.gmra.mrb[78].mxu0 %v21453_v11 }
 0x9e7   : > { %19966 = vmatpush3.msra.mxu0 %v7938_v36  ;;  %v7940_v60 = vand.u32 4294901760, %v7939_v50  ;;  %19967 = vmatprep.mubr.msk.f32.mxu0 %vm20989_vm0, %v22715_v0  ;;  %v10157_v36 = vadd.f32 %v10156_v40, %v10155_v37 }
 0x9e8   : > { %19975 = vmatprep.subr.mxu0 %v22715_v0 }
 0x9e9   : > { %19951 = vmatpush3.msra.mxu1 %v7940_v60  ;;  %v10158_v50 = vrot.slane %v10157_v36, 1 }
 0x9ea   : > { %19953 = vmatmul.mubr.f32.vlgmr.msra.gmra.mrb[76].mxu1 %v21447_v63  ;;  %19960 = vmatprep.subr.mxu1 %v22715_v0 }
 0x9eb   : > { %19968 = vmatmul.mubr.f32.vlgmr.msra.gmra.mrb[80].mxu0 %v21447_v63  ;;  %19961 = vmatpush3.msra.mxu1 %v7860_v25  ;;  %v10159_v60 = vadd.f32 %v10158_v50, %v10157_v36 }
 0x9ec   : > { %19976 = vmatpush3.msra.mxu0 %v8313_v49  ;;  %19962 = vmatprep.mubr.msk.f32.mxu1 %vm20989_vm0, %v22715_v0 }
 0x9ed   : > { %19970 = vmatprep.subr.mxu1 %v22715_v0  ;;  %19977 = vmatprep.mubr.msk.f32.mxu0 %vm20989_vm0, %v22715_v0 }
 0x9ee   : > { %19985 = vmatprep.subr.mxu0 %v22715_v0  ;;  %19963 = vmatmul.mubr.f32.vlgmr.msra.gmra.mrb[78].mxu1 %v21456_v24 }
 0x9ef   : > { %19971 = vmatpush3.msra.mxu1 %v7860_v25  ;;  %19978 = vmatmul.mubr.f32.vlgmr.msra.gmra.mrb[82].mxu0 %v21355_v15  ;;  %v9669_v25 = vadd.f32 %v9668_v34, %v9667_v27 }
 0x9f0   : > { %19986 = vmatpush3.msra.mxu0 %v8390_v53  ;;  %19972 = vmatprep.mubr.msk.f32.mxu1 %vm20989_vm0, %v22715_v0 }
 0x9f1   : > { %19980 = vmatprep.subr.mxu1 %v22715_v0  ;;  %19987 = vmatprep.mubr.msk.f32.mxu0 %vm20989_vm0, %v22715_v0 }
 0x9f2   : > { %19995 = vmatprep.subr.mxu0 %v22715_v0  ;;  %19973 = vmatmul.mubr.f32.vlgmr.msra.gmra.mrb[80].mxu1 %v21447_v63 }
 0x9f3   : > { %19981 = vmatpush3.msra.mxu1 %v8393_v57  ;;  %19988 = vmatmul.mubr.f32.vlgmr.msra.gmra.mrb[84].mxu0 %v21324_v7 }
 0x9f4   : > { %19996 = vmatpush3.msra.mxu0 %v8391_v56  ;;  %19982 = vmatprep.mubr.msk.f32.mxu1 %vm20989_vm0, %v22715_v0  ;;  %v10160_v56 = vmul.f32 0.25, %v10159_v60 }
 0x9f5   : > { %19990 = vmatprep.subr.mxu1 %v22715_v0  ;;  %19997 = vmatprep.mubr.msk.f32.mxu0 %vm20989_vm0, %v22715_v0 }
 0x9f6   : > { %20005 = vmatprep.subr.mxu0 %v22715_v0  ;;  %19983 = vmatmul.mubr.f32.vlgmr.msra.gmra.mrb[82].mxu1 %v21316_v4  ;;  %v21883_v12 = vsub.f32 %v18972_v20, %v10160_v56 }
 0x9f7   : > { %19991 = vmatpush3.msra.mxu1 %v8313_v49  ;;  %19998 = vmatmul.mubr.f32.vlgmr.msra.gmra.mrb[86].mxu0 %v21316_v4 }
 0x9f8   : > { %20006 = vmatpush3.msra.mxu0 %v8763_v51  ;;  %19992 = vmatprep.mubr.msk.f32.mxu1 %vm20989_vm0, %v22715_v0  ;;  %v10162_v57 = vmul.f32 %v21883_v12, %v21883_v12 }
 0x9f9   : > { %20000 = vmatprep.subr.mxu1 %v22715_v0  ;;  %20007 = vmatprep.mubr.msk.f32.mxu0 %vm20989_vm0, %v22715_v0 }
 0x9fa   : > { %20015 = vmatprep.subr.mxu0 %v22715_v0  ;;  %19993 = vmatmul.mubr.f32.vlgmr.msra.gmra.mrb[84].mxu1 %v21335_v10  ;;  %v10163_v16 = vsel %vm488_vm1, %v10162_v57, 0.0 }
 0x9fb   : > { %20001 = vmatpush3.msra.mxu1 %v8313_v49  ;;  %20008 = vmatmul.mubr.f32.vlgmr.msra.gmra.mrb[88].mxu0 %v21417_v30  ;;  %v9670_v49 = vrot.slane %v9669_v25, 1  ;;  %v10164_v13 = vrot.slane %v10163_v16, 4 }
 0x9fc   : > { %20016 = vmatpush3.msra.mxu0 %v8840_v2  ;;  %20002 = vmatprep.mubr.msk.f32.mxu1 %vm20989_vm0, %v22715_v0 }
 0x9fd   : > { %20010 = vmatprep.subr.mxu1 %v22715_v0  ;;  %20017 = vmatprep.mubr.msk.f32.mxu0 %vm20989_vm0, %v22715_v0  ;;  %v9671_v5 = vadd.f32 %v9670_v49, %v9669_v25  ;;  %v10165_v27 = vadd.f32 %v10164_v13, %v10163_v16 }
 0x9fe   : > { %20025 = vmatprep.subr.mxu0 %v22715_v0  ;;  %20003 = vmatmul.mubr.f32.vlgmr.msra.gmra.mrb[86].mxu1 %v21316_v4 }
 0x9ff   : > { %20011 = vmatpush3.msra.mxu1 %v8843_v58  ;;  %20018 = vmatmul.mubr.f32.vlgmr.msra.gmra.mrb[90].mxu0 %v21406_v62  ;;  %v9672_v53 = vmul.f32 0.25, %v9671_v5  ;;  %v10166_v37 = vrot.slane %v10165_v27, 2 }
 0xa00   : > { %20026 = vmatpush3.msra.mxu0 %v8841_v19  ;;  %20012 = vmatprep.mubr.msk.f32.mxu1 %vm20989_vm0, %v22715_v0 }
 0xa01   : > { %20020 = vmatprep.subr.mxu1 %v22715_v0  ;;  %20027 = vmatprep.mubr.msk.f32.mxu0 %vm20989_vm0, %v22715_v0  ;;  %v21879_v41 = vsub.f32 %v18971_v6, %v9672_v53  ;;  %v10167_v50 = vadd.f32 %v10166_v37, %v10165_v27 }
 0xa02   : > { %20013 = vmatmul.mubr.f32.vlgmr.msra.gmra.mrb[88].mxu1 %v21403_v55  ;;  %20035 = vmatprep.subr.mxu0 %v22715_v0 }
 0xa03   : > { %20021 = vmatpush3.msra.mxu1 %v8763_v51  ;;  %20022 = vmatprep.mubr.msk.f32.mxu1 %vm20989_vm0, %v22715_v0  ;;  %v10168_v57 = vrot.slane %v10167_v50, 1 }
 0xa04   : > { %20030 = vmatprep.subr.mxu1 %v22715_v0  ;;  %20028 = vmatmul.mubr.f32.vlgmr.msra.gmra.mrb[92].mxu0 %v21403_v55 }
 0xa05   : > { %20037 = vmatprep.mubr.msk.f32.mxu0 %vm20989_vm0, %v22715_v0 }
 0xa06   : > { %20023 = vmatmul.mubr.f32.vlgmr.msra.gmra.mrb[90].mxu1 %v21409_v9 }
 0xa07   : > { %20031 = vmatpush3.msra.mxu1 %v8763_v51  ;;  %20032 = vmatprep.mubr.msk.f32.mxu1 %vm20989_vm0, %v22715_v0  ;;  %v9674_v51 = vmul.f32 %v21879_v41, %v21879_v41 }
 0xa08   : > { %20040 = vmatprep.subr.mxu1 %v22715_v0 }
 0xa09   : > { %v9675_v2 = vsel %vm488_vm1, %v9674_v51, 0.0 }
 0xa0a   : > { %20033 = vmatmul.mubr.f32.vlgmr.msra.gmra.mrb[92].mxu1 %v21403_v55  ;;  %v9676_v19 = vrot.slane %v9675_v2, 4 }
 0xa0b   : > { %20042 = vmatprep.mubr.msk.f32.mxu1 %vm20989_vm0, %v22715_v0 }
 0xa0c   : > { %v9677_v58 = vadd.f32 %v9676_v19, %v9675_v2 }
 0xa0e   : > { %v9678_v6 = vrot.slane %v9677_v58, 2 }
 0xa10   : > { %v9679_v34 = vadd.f32 %v9678_v6, %v9677_v58 }
 0xa12   : > { %v9680_v40 = vrot.slane %v9679_v34, 1 }
 0xa14   : > { %v9681_v60 = vadd.f32 %v9680_v40, %v9679_v34 }
 0xa16   : > { %v9682_v16 = vmul.f32 0.25, %v9681_v60 }
 0xab5   : > { %v21889_v32 = vpop.f32.mrb[76].mxu0 }
 0xab6   : > { %v19949_v23 = vpop.f32.mrb[77].mxu0 }
 0xab7   : > { %v10169_v23 = vadd.f32 %v10168_v57, %v10167_v50 }
 0xab9   : > { %v21891_v29 = vpop.f32.mrb[78].mxu0  ;;  %v10170_v34 = vmul.f32 0.25, %v10169_v23 }
 0xaba   : > { %v19959_v20 = vpop.f32.mrb[79].mxu0 }
 0xabd   : > { %v21893_v25 = vpop.f32.mrb[76].mxu1 }
 0xabe   : > { %v21895_v49 = vpop.f32.mrb[80].mxu0  ;;  %v19954_v36 = vpop.f32.mrb[77].mxu1 }
 0xabf   : > { %22767 = vst [vmem:[#allocation36_spill] sm:$0xff] %v21895_v49  ;;  %v19969_v5 = vpop.f32.mrb[81].mxu0  ;;  %v9683_v36 = vadd.f32 1e-05, %v9682_v16 }
 0xac1   : > { %v21897_v53 = vpop.f32.mrb[78].mxu1  ;;  %20879 = vrsqrt.f32 %v9683_v36 }
 0xac2   : > { %v8384_v56 = vpop.f32.mrb[82].mxu0  ;;  %v19964_v51 = vpop.f32.mrb[79].mxu1 }
 0xac3   : > { %v19979_v2 = vpop.f32.mrb[83].mxu0  ;;  %v8385_v20 = vadd.f32 %v8384_v56, %v21411_v17 }
 0xac5   : > { %v21899_v19 = vpop.f32.mrb[80].mxu1 }
 0xac6   : > { %22768 = vst [vmem:[#allocation37_spill] sm:$0xff] %v21899_v19  ;;  %v19974_v58 = vpop.f32.mrb[81].mxu1  ;;  %v8534_v13 = vpop.f32.mrb[84].mxu0 }
 0xac7   : > { %v19989_v6 = vpop.f32.mrb[85].mxu0  ;;  %v10171_v58 = vadd.f32 1e-05, %v10170_v34 }
 0xac9   : > { %v8460_v0 = vpop.f32.mrb[82].mxu1  ;;  %20881 = vrsqrt.f32 %v10171_v58 }
 0xaca   : > { %v8461_v5 = vadd.f32 %v8460_v0, %v8385_v20  ;;  %v8682_v27 = vpop.f32.mrb[86].mxu0  ;;  %v19984_v37 = vpop.f32.mrb[83].mxu1 }
 0xacb   : > { %v19999_v18 = vpop.f32.mrb[87].mxu0 }
 0xacc   : > { %v8535_v40 = vadd.f32 %v8534_v13, %v8461_v5  ;;  %v20880_v13 = vpop.eup %20879 }
 0xacd   : > { %v8608_v51 = vpop.f32.mrb[84].mxu1 }
 0xace   : > { %v8609_v2 = vadd.f32 %v8608_v51, %v8535_v40  ;;  %v8834_v21 = vpop.f32.mrb[88].mxu0  ;;  %v19994_v19 = vpop.f32.mrb[85].mxu1 }
 0xacf   : > { %v20009_v60 = vpop.f32.mrb[89].mxu0  ;;  %v8835_v0 = vadd.f32 %v8834_v21, %v21449_v1 }
 0xad0   : > { %v8683_v49 = vadd.f32 %v8682_v27, %v8609_v2  ;;  %v9685_v27 = vmul.f32 %v20880_v13, %v21879_v41 }
 0xad1   : > { %v8754_v6 = vpop.f32.mrb[86].mxu1 }
 0xad2   : > { %v8755_v50 = vadd.f32 %v8754_v6, %v8683_v49  ;;  %v20004_v57 = vpop.f32.mrb[87].mxu1  ;;  %v8984_v56 = vpop.f32.mrb[90].mxu0  ;;  %v9687_v58 = vsel %vm515_vm3, %v9685_v27, 0 }
 0xad3   : > { %v20019_v33 = vpop.f32.mrb[91].mxu0  ;;  %v20882_v51 = vpop.eup %20881 }
 0xad4   : > { %v8758_v19 = vadd.f32 1.0, %v8755_v50  ;;  %v10173_v57 = vmul.f32 %v20882_v51, %v21883_v12 }
 0xad5   : > { %v8910_v16 = vpop.f32.mrb[88].mxu1 }
 0xad6   : > { %v8911_v18 = vadd.f32 %v8910_v16, %v8835_v0  ;;  %v20014_v23 = vpop.f32.mrb[89].mxu1  ;;  %v8759_v33 = vmul.f32 %v8758_v19, %v21676_v14  ;;  %v10175_v16 = vsel %vm515_vm3, %v10173_v57, 0  ;;  %v22769_v14 = vmov 0.0  }
 0xad7   : > { %v9132_v20 = vpop.f32.mrb[92].mxu0  ;;  %v21916_v23 = vand.u32 4294901760, %v10175_v16 }
 0xad8   : > { %v8985_v36 = vadd.f32 %v8984_v56, %v8911_v18  ;;  %v20029_v5 = vpop.f32.mrb[93].mxu0  ;;  %v21907_v56 = vand.u32 4294901760, %v9687_v58 }
 0xad9   : > { %v9058_v37 = vpop.f32.mrb[90].mxu1  ;;  %v10255_v5 = vsub.f32 %v10175_v16, %v21916_v23 }
 0xada   : > { %v9059_v40 = vadd.f32 %v9058_v37, %v8985_v36  ;;  %v20024_v34 = vpop.f32.mrb[91].mxu1  ;;  %v9767_v18 = vsub.f32 %v9687_v58, %v21907_v56 }
 0xadb   : > { %v10256_v19 = vand.u32 4294901760, %v10255_v5 }
 0xadc   : > { %v9133_v49 = vadd.f32 %v9132_v20, %v9059_v40  ;;  %v9768_v20 = vand.u32 4294901760, %v9767_v18 }
 0xadd   : > { %v9204_v2 = vpop.f32.mrb[92].mxu1  ;;  %v10257_v34 = vsub.f32 %v10255_v5, %v10256_v19 }
 0xade   : > { %v9205_v60 = vadd.f32 %v9204_v2, %v9133_v49  ;;  %v20034_v21 = vpop.f32.mrb[93].mxu1  ;;  %v9769_v37 = vsub.f32 %v9767_v18, %v9768_v20 }
 0xadf   : > { %v10258_v27 = vand.u32 4294901760, %v10257_v34 }
 0xae0   : > { %v9208_v6 = vadd.f32 %v9205_v60, %v8759_v33  ;;  %v9770_v40 = vand.u32 4294901760, %v9769_v37 }
 0xae2   : > { %v9210_v50 = vsel %vm515_vm3, %v9208_v6, 0 }
 0xae3   : > { %v9213_v0 = vand.u32 4294901760, %v9210_v50 }
 0xae5   : > { %v9290_v41 = vsub.f32 %v9210_v50, %v9213_v0  ;;  %20036 = vmatpush3.msra.mxu0 %v9213_v0 }
 0xae6   : > { %20038 = vmatmul.mubr.f32.vlgmr.msra.gmra.mrb[94].mxu0 %v21463_v35  ;;  %20045 = vmatprep.subr.mxu0 %v22769_v14 }
 0xae7   : > { %20046 = vmatpush3.msra.mxu0 %v9290_v41  ;;  %20047 = vmatprep.mubr.msk.f32.mxu0 %vm20989_vm0, %v22769_v14  ;;  %v9291_v12 = vand.u32 4294901760, %v9290_v41 }
 0xae8   : > { %20055 = vmatprep.subr.mxu0 %v22769_v14 }
 0xae9   : > { %v9292_v13 = vsub.f32 %v9290_v41, %v9291_v12 }
 0xaea   : > { %20048 = vmatmul.mubr.f32.vlgmr.msra.gmra.mrb[96].mxu0 %v21453_v11 }
 0xaeb   : > { %20056 = vmatpush3.msra.mxu0 %v9291_v12  ;;  %v9293_v36 = vand.u32 4294901760, %v9292_v13  ;;  %20057 = vmatprep.mubr.msk.f32.mxu0 %vm20989_vm0, %v22769_v14 }
 0xaec   : > { %20065 = vmatprep.subr.mxu0 %v22769_v14 }
 0xaed   : > { %20041 = vmatpush3.msra.mxu1 %v9293_v36 }
 0xaee   : > { %20043 = vmatmul.mubr.f32.vlgmr.msra.gmra.mrb[94].mxu1 %v21447_v63  ;;  %20050 = vmatprep.subr.mxu1 %v22769_v14 }
 0xaef   : > { %20058 = vmatmul.mubr.f32.vlgmr.msra.gmra.mrb[98].mxu0 %v21447_v63  ;;  %20051 = vmatpush3.msra.mxu1 %v9213_v0 }
 0xaf0   : > { %20052 = vmatprep.mubr.msk.f32.mxu1 %vm20989_vm0, %v22769_v14  ;;  %20060 = vmatprep.subr.mxu1 %v22769_v14 }
 0xaf1   : > { %20066 = vmatpush3.msra.mxu0 %v21907_v56  ;;  %20067 = vmatprep.mubr.msk.f32.mxu0 %vm20989_vm0, %v22769_v14 }
 0xaf2   : > { %20053 = vmatmul.mubr.f32.vlgmr.msra.gmra.mrb[96].mxu1 %v21456_v24  ;;  %20070 = vmatprep.subr.mxu0 %v22769_v14 }
 0xaf3   : > { %20061 = vmatpush3.msra.mxu1 %v9213_v0  ;;  %20068 = vmatmul.mubr.f32.vlgmr.msra.gmra.mrb[100].mxu0 %v21203_v54 }
 0xaf4   : > { %20062 = vmatprep.mubr.msk.f32.mxu1 %vm20989_vm0, %v22769_v14  ;;  %20095 = vmatprep.subr.mxu1 %v22769_v14 }
 0xaf5   : > { %20071 = vmatpush3.msra.mxu0 %v9770_v40  ;;  %20072 = vmatprep.mubr.msk.f32.mxu0 %vm20989_vm0, %v22769_v14 }
 0xaf6   : > { %20063 = vmatmul.mubr.f32.vlgmr.msra.gmra.mrb[98].mxu1 %v21447_v63  ;;  %20075 = vmatprep.subr.mxu0 %v22769_v14 }
 0xaf7   : > { %20096 = vmatpush3.msra.mxu1 %v21916_v23  ;;  %20097 = vmatprep.mubr.msk.f32.mxu1 %vm20989_vm0, %v22769_v14 }
 0xaf8   : > { %20100 = vmatprep.subr.mxu1 %v22769_v14 }
 0xafa   : > { %20098 = vmatmul.mubr.f32.vlgmr.msra.gmra.mrb[100].mxu1 %v21203_v54 }
 0xafb   : > { %20073 = vmatmul.mubr.f32.vlgmr.msra.gmra.mrb[100].mxu0 %v21192_v43  ;;  %20101 = vmatpush3.msra.mxu1 %v10258_v27 }
 0xafc   : > { %20076 = vmatpush3.msra.mxu0 %v9767_v18  ;;  %20077 = vmatprep.mubr.msk.f32.mxu0 %vm20989_vm0, %v22769_v14 }
 0xafd   : > { %20102 = vmatprep.mubr.msk.f32.mxu1 %vm20989_vm0, %v22769_v14  ;;  %20080 = vmatprep.subr.mxu0 %v22769_v14 }
 0xafe   : > { %20105 = vmatprep.subr.mxu1 %v22769_v14 }
 0xb02   : > { %20103 = vmatmul.mubr.f32.vlgmr.msra.gmra.mrb[100].mxu1 %v21192_v43 }
 0xb03   : > { %20078 = vmatmul.mubr.f32.vlgmr.msra.gmra.mrb[100].mxu0 %v21195_v46  ;;  %20106 = vmatpush3.msra.mxu1 %v10255_v5 }
 0xb04   : > { %20081 = vmatpush3.msra.mxu0 %v21907_v56  ;;  %20082 = vmatprep.mubr.msk.f32.mxu0 %vm20989_vm0, %v22769_v14 }
 0xb05   : > { %20107 = vmatprep.mubr.msk.f32.mxu1 %vm20989_vm0, %v22769_v14  ;;  %20085 = vmatprep.subr.mxu0 %v22769_v14 }
 0xb06   : > { %20110 = vmatprep.subr.mxu1 %v22769_v14 }
 0xb0a   : > { %20108 = vmatmul.mubr.f32.vlgmr.msra.gmra.mrb[100].mxu1 %v21195_v46 }
 0xb0b   : > { %20083 = vmatmul.mubr.f32.vlgmr.msra.gmra.mrb[100].mxu0 %v21198_v47  ;;  %20111 = vmatpush3.msra.mxu1 %v21916_v23 }
 0xb0c   : > { %20086 = vmatpush3.msra.mxu0 %v9768_v20  ;;  %20087 = vmatprep.mubr.msk.f32.mxu0 %vm20989_vm0, %v22769_v14 }
 0xb0d   : > { %20112 = vmatprep.mubr.msk.f32.mxu1 %vm20989_vm0, %v22769_v14  ;;  %20090 = vmatprep.subr.mxu0 %v22769_v14 }
 0xb0e   : > { %20115 = vmatprep.subr.mxu1 %v22769_v14 }
 0xb12   : > { %20113 = vmatmul.mubr.f32.vlgmr.msra.gmra.mrb[100].mxu1 %v21198_v47 }
 0xb13   : > { %20088 = vmatmul.mubr.f32.vlgmr.msra.gmra.mrb[100].mxu0 %v21192_v43  ;;  %20116 = vmatpush3.msra.mxu1 %v10256_v19 }
 0xb14   : > { %20091 = vmatpush3.msra.mxu0 %v21907_v56  ;;  %20092 = vmatprep.mubr.msk.f32.mxu0 %vm20989_vm0, %v22769_v14 }
 0xb15   : > { %20117 = vmatprep.mubr.msk.f32.mxu1 %vm20989_vm0, %v22769_v14  ;;  %20120 = vmatprep.subr.mxu1 %v22769_v14 }
 0xb16   : > { %20125 = vmatprep.subr.mxu0 %v22769_v14 }
 0xb1a   : > { %20118 = vmatmul.mubr.f32.vlgmr.msra.gmra.mrb[100].mxu1 %v21192_v43 }
 0xb1b   : > { %20093 = vmatmul.mubr.f32.vlgmr.msra.gmra.mrb[100].mxu0 %v21192_v43  ;;  %20121 = vmatpush3.msra.mxu1 %v21916_v23 }
 0xb1c   : > { %20122 = vmatprep.mubr.msk.f32.mxu1 %vm20989_vm0, %v22769_v14  ;;  %20127 = vmatprep.mubr.msk.f32.mxu0 %vm20989_vm0, %v22769_v14 }
 0xb1d   : > { %20130 = vmatprep.subr.mxu1 %v22769_v14 }
 0xb22   : > { %20123 = vmatmul.mubr.f32.vlgmr.msra.gmra.mrb[100].mxu1 %v21192_v43 }
 0xb23   : > { %20132 = vmatprep.mubr.msk.f32.mxu1 %vm20989_vm0, %v22769_v14 }
 0xbb9   : > { %v21993_v49 = vpop.f32.mrb[94].mxu0 }
 0xbba   : > { %v20039_v51 = vpop.f32.mrb[95].mxu0 }
 0xbbd   : > { %v21995_v2 = vpop.f32.mrb[96].mxu0 }
 0xbbe   : > { %v20049_v33 = vpop.f32.mrb[97].mxu0 }
 0xbc1   : > { %v21997_v60 = vpop.f32.mrb[94].mxu1 }
 0xbc2   : > { %v21999_v21 = vpop.f32.mrb[98].mxu0  ;;  %v20044_v58 = vpop.f32.mrb[95].mxu1 }
 0xbc3   : > { %22770 = vst [vmem:[#allocation38_spill] sm:$0xff] %v21999_v21  ;;  %v20059_v6 = vpop.f32.mrb[99].mxu0 }
 0xbc5   : > { %v22001_v57 = vpop.f32.mrb[96].mxu1 }
 0xbc6   : > { %v20054_v56 = vpop.f32.mrb[97].mxu1 }
 0xbc9   : > { %v22003_v50 = vpop.f32.mrb[98].mxu1 }
 0xbca   : > { %22771 = vst [vmem:[#allocation39_spill] sm:$0xff] %v22003_v50  ;;  %v20064_v0 = vpop.f32.mrb[99].mxu1 }
 0xbee   : > { %v10131_v16 = vpop.f32.mrb[100].mxu0 }
 0xbef   : > { %v20669_v41 = vadd.f32 %v10131_v16, %v21254_v3  ;;  %v20094_v18 = vpop.f32.mrb[101].mxu0 }
 0xbf1   : > { %v10136_v12 = vmul.f32 0.70710677, %v20669_v41  ;;  %v10135_v37 = vmul.f32 0.5, %v20669_v41 }
 0xbf3   : > { %20883 = verf.f32 %v10136_v12 }
 0xbf5   : > { %v10619_v23 = vpop.f32.mrb[100].mxu1 }
 0xbf6   : > { %v20670_v13 = vadd.f32 %v10619_v23, %v21254_v3  ;;  %v20124_v20 = vpop.f32.mrb[101].mxu1 }
 0xbf8   : > { %v10624_v36 = vmul.f32 0.70710677, %v20670_v13  ;;  %v10623_v51 = vmul.f32 0.5, %v20670_v13 }
 0xbfa   : > { %20885 = verf.f32 %v10624_v36 }
 0xbfd   : > { %v20884_v5 = vpop.eup %20883 }
 0xbfe   : > { %v10138_v19 = vadd.f32 1.0, %v20884_v5 }
 0xc00   : > { %v22007_v40 = vmul.f32 %v10138_v19, %v10135_v37 }
 0xc02   : > { %v10140_v34 = vsel %vm970_vm4, %v22007_v40, 0.0 }
 0xc03   : > { %10141 = vadd.xlane.f32.xlu0 %v10140_v34 }
 0xc04   : > { %v20886_v27 = vpop.eup %20885 }
 0xc05   : > { %v10626_v33 = vadd.f32 1.0, %v20886_v27 }
 0xc07   : > { %v22011_v58 = vmul.f32 %v10626_v33, %v10623_v51 }
 0xc09   : > { %v10628_v6 = vsel %vm970_vm4, %v22011_v58, 0.0 }
 0xc0a   : > { %10629 = vadd.xlane.f32.xlu0 %v10628_v6 }
 0xc90   : > { %v10142_v56 = vpop.xlane.xlu0 %10141 }
 0xc91   : > { %v10143_v0 = vmul.f32 0.0625, %v10142_v56 }
 0xc93   : > { %v10144_v16 = vsub.f32 %v22007_v40, %v10143_v0 }
 0xc95   : > { %v10145_v41 = vmul.f32 %v10144_v16, %v10144_v16 }
 0xc97   : > { %v10146_v18 = vsel %vm970_vm4, %v10145_v41, 0.0  ;;  %v10630_v12 = vpop.xlane.xlu0 %10629 }
 0xc98   : > { %10147 = vadd.xlane.f32.xlu0 %v10146_v18  ;;  %v10631_v23 = vmul.f32 0.0625, %v10630_v12 }
 0xc9a   : > { %v10632_v20 = vsub.f32 %v22011_v58, %v10631_v23 }
 0xc9c   : > { %v10633_v13 = vmul.f32 %v10632_v20, %v10632_v20 }
 0xc9e   : > { %v10634_v36 = vsel %vm970_vm4, %v10633_v13, 0.0 }
 0xc9f   : > { %10635 = vadd.xlane.f32.xlu0 %v10634_v36 }
 0xd25   : > { %v10148_v5 = vpop.xlane.xlu0 %10147 }
 0xd26   : > { %v10149_v37 = vmul.f32 0.0625, %v10148_v5 }
 0xd28   : > { %v10150_v19 = vadd.f32 1e-05, %v10149_v37 }
 0xd2a   : > { %20887 = vrsqrt.f32 %v10150_v19 }
 0xd2c   : > { %v10636_v34 = vpop.xlane.xlu0 %10635 }
 0xd2d   : > { %v10637_v27 = vmul.f32 0.0625, %v10636_v34 }
 0xd2f   : > { %v10638_v51 = vadd.f32 1e-05, %v10637_v27 }
 0xd31   : > { %20889 = vrsqrt.f32 %v10638_v51 }
 0xd34   : > { %v20888_v33 = vpop.eup %20887 }
 0xd35   : > { %v22019_v6 = vmul.f32 %v20888_v33, %v10144_v16 }
 0xd37   : > { %v10642_v56 = vand.u32 4294901760, %v22019_v6  ;;  %v11534_v13 = vrot.slane %v22019_v6, 4 }
 0xd39   : > { %20126 = vmatpush3.msra.mxu0 %v10642_v56  ;;  %v10719_v0 = vsub.f32 %v22019_v6, %v10642_v56  ;;  %v11535_v37 = vsel %vm515_vm3, %v11534_v13, 0 }
 0xd3a   : > { %20128 = vmatmul.mubr.f32.vlgmr.msra.gmra.mrb[102].mxu0 %v21295_v52  ;;  %20135 = vmatprep.subr.mxu0 %v22769_v14  ;;  %v11538_v34 = vand.u32 4294901760, %v11535_v37 }
 0xd3b   : > { %v20890_v41 = vpop.eup %20889  ;;  %20136 = vmatpush3.msra.mxu0 %v10719_v0  ;;  %20137 = vmatprep.mubr.msk.f32.mxu0 %vm20989_vm0, %v22769_v14  ;;  %v10720_v18 = vand.u32 4294901760, %v10719_v0 }
 0xd3c   : > { %v22027_v12 = vmul.f32 %v20890_v41, %v10632_v20  ;;  %20145 = vmatprep.subr.mxu0 %v22769_v14  ;;  %v11615_v51 = vsub.f32 %v11535_v37, %v11538_v34 }
 0xd3d   : > { %v10721_v16 = vsub.f32 %v10719_v0, %v10720_v18 }
 0xd3e   : > { %20138 = vmatmul.mubr.f32.vlgmr.msra.gmra.mrb[104].mxu0 %v21286_v44  ;;  %v11088_v23 = vand.u32 4294901760, %v22027_v12  ;;  %v11616_v33 = vand.u32 4294901760, %v11615_v51 }
 0xd3f   : > { %20146 = vmatpush3.msra.mxu0 %v10720_v18  ;;  %v10722_v36 = vand.u32 4294901760, %v10721_v16  ;;  %20147 = vmatprep.mubr.msk.f32.mxu0 %vm20989_vm0, %v22769_v14 }
 0xd40   : > { %20155 = vmatprep.subr.mxu0 %v22769_v14  ;;  %v11165_v5 = vsub.f32 %v22027_v12, %v11088_v23 }
 0xd41   : > { %20131 = vmatpush3.msra.mxu1 %v10722_v36 }
 0xd42   : > { %20133 = vmatmul.mubr.f32.vlgmr.msra.gmra.mrb[102].mxu1 %v21283_v39  ;;  %20140 = vmatprep.subr.mxu1 %v22769_v14  ;;  %v11166_v20 = vand.u32 4294901760, %v11165_v5 }
 0xd43   : > { %20148 = vmatmul.mubr.f32.vlgmr.msra.gmra.mrb[106].mxu0 %v21283_v39  ;;  %20141 = vmatpush3.msra.mxu1 %v10642_v56 }
 0xd44   : > { %20156 = vmatpush3.msra.mxu0 %v11088_v23  ;;  %20142 = vmatprep.mubr.msk.f32.mxu1 %vm20989_vm0, %v22769_v14  ;;  %v11167_v19 = vsub.f32 %v11165_v5, %v11166_v20 }
 0xd45   : > { %20150 = vmatprep.subr.mxu1 %v22769_v14  ;;  %20157 = vmatprep.mubr.msk.f32.mxu0 %vm20989_vm0, %v22769_v14 }
 0xd46   : > { %20165 = vmatprep.subr.mxu0 %v22769_v14  ;;  %20143 = vmatmul.mubr.f32.vlgmr.msra.gmra.mrb[104].mxu1 %v21289_v48  ;;  %v11168_v27 = vand.u32 4294901760, %v11167_v19 }
 0xd47   : > { %20151 = vmatpush3.msra.mxu1 %v10642_v56  ;;  %20158 = vmatmul.mubr.f32.vlgmr.msra.gmra.mrb[108].mxu0 %v21295_v52  ;;  %v11617_v56 = vsub.f32 %v11615_v51, %v11616_v33 }
 0xd48   : > { %20166 = vmatpush3.msra.mxu0 %v11165_v5  ;;  %20152 = vmatprep.mubr.msk.f32.mxu1 %vm20989_vm0, %v22769_v14 }
 0xd49   : > { %20160 = vmatprep.subr.mxu1 %v22769_v14  ;;  %20167 = vmatprep.mubr.msk.f32.mxu0 %vm20989_vm0, %v22769_v14  ;;  %v11618_v0 = vand.u32 4294901760, %v11617_v56 }
 0xd4a   : > { %20175 = vmatprep.subr.mxu0 %v22769_v14  ;;  %20153 = vmatmul.mubr.f32.vlgmr.msra.gmra.mrb[106].mxu1 %v21283_v39 }
 0xd4b   : > { %20161 = vmatpush3.msra.mxu1 %v11168_v27  ;;  %20168 = vmatmul.mubr.f32.vlgmr.msra.gmra.mrb[110].mxu0 %v21286_v44 }
 0xd4c   : > { %20176 = vmatpush3.msra.mxu0 %v11166_v20  ;;  %20162 = vmatprep.mubr.msk.f32.mxu1 %vm20989_vm0, %v22769_v14 }
 0xd4d   : > { %20170 = vmatprep.subr.mxu1 %v22769_v14  ;;  %20177 = vmatprep.mubr.msk.f32.mxu0 %vm20989_vm0, %v22769_v14 }
 0xd4e   : > { %20185 = vmatprep.subr.mxu0 %v22769_v14  ;;  %20163 = vmatmul.mubr.f32.vlgmr.msra.gmra.mrb[108].mxu1 %v21283_v39 }
 0xd4f   : > { %20171 = vmatpush3.msra.mxu1 %v11088_v23  ;;  %20178 = vmatmul.mubr.f32.vlgmr.msra.gmra.mrb[112].mxu0 %v21283_v39 }
 0xd50   : > { %20186 = vmatpush3.msra.mxu0 %v11538_v34  ;;  %20172 = vmatprep.mubr.msk.f32.mxu1 %vm20989_vm0, %v22769_v14 }
 0xd51   : > { %20180 = vmatprep.subr.mxu1 %v22769_v14  ;;  %20187 = vmatprep.mubr.msk.f32.mxu0 %vm20989_vm0, %v22769_v14 }
 0xd52   : > { %20195 = vmatprep.subr.mxu0 %v22769_v14  ;;  %20173 = vmatmul.mubr.f32.vlgmr.msra.gmra.mrb[110].mxu1 %v21289_v48 }
 0xd53   : > { %20181 = vmatpush3.msra.mxu1 %v11088_v23  ;;  %20188 = vmatmul.mubr.f32.vlgmr.msra.gmra.mrb[114].mxu0 %v21355_v15 }
 0xd54   : > { %20196 = vmatpush3.msra.mxu0 %v11615_v51  ;;  %20182 = vmatprep.mubr.msk.f32.mxu1 %vm20989_vm0, %v22769_v14 }
 0xd55   : > { %20190 = vmatprep.subr.mxu1 %v22769_v14  ;;  %20197 = vmatprep.mubr.msk.f32.mxu0 %vm20989_vm0, %v22769_v14 }
 0xd56   : > { %20205 = vmatprep.subr.mxu0 %v22769_v14  ;;  %20183 = vmatmul.mubr.f32.vlgmr.msra.gmra.mrb[112].mxu1 %v21283_v39 }
 0xd57   : > { %20191 = vmatpush3.msra.mxu1 %v11618_v0  ;;  %20198 = vmatmul.mubr.f32.vlgmr.msra.gmra.mrb[116].mxu0 %v21324_v7 }
 0xd58   : > { %20206 = vmatpush3.msra.mxu0 %v11616_v33  ;;  %20192 = vmatprep.mubr.msk.f32.mxu1 %vm20989_vm0, %v22769_v14 }
 0xd59   : > { %20200 = vmatprep.subr.mxu1 %v22769_v14  ;;  %20207 = vmatprep.mubr.msk.f32.mxu0 %vm20989_vm0, %v22769_v14 }
 0xd5a   : > { %20193 = vmatmul.mubr.f32.vlgmr.msra.gmra.mrb[114].mxu1 %v21316_v4  ;;  %20215 = vmatprep.subr.mxu0 %v22769_v14 }
 0xd5b   : > { %20201 = vmatpush3.msra.mxu1 %v11538_v34  ;;  %20202 = vmatprep.mubr.msk.f32.mxu1 %vm20989_vm0, %v22769_v14 }
 0xd5c   : > { %20210 = vmatprep.subr.mxu1 %v22769_v14  ;;  %20208 = vmatmul.mubr.f32.vlgmr.msra.gmra.mrb[118].mxu0 %v21316_v4 }
 0xd5d   : > { %20217 = vmatprep.mubr.msk.f32.mxu0 %vm20989_vm0, %v22769_v14 }
 0xd5e   : > { %20203 = vmatmul.mubr.f32.vlgmr.msra.gmra.mrb[116].mxu1 %v21335_v10 }
 0xd5f   : > { %20211 = vmatpush3.msra.mxu1 %v11538_v34  ;;  %20212 = vmatprep.mubr.msk.f32.mxu1 %vm20989_vm0, %v22769_v14 }
 0xd60   : > { %20220 = vmatprep.subr.mxu1 %v22769_v14 }
 0xd62   : > { %20213 = vmatmul.mubr.f32.vlgmr.msra.gmra.mrb[118].mxu1 %v21316_v4 }
 0xd63   : > { %20222 = vmatprep.mubr.msk.f32.mxu1 %vm20989_vm0, %v22769_v14 }
 0xe0d   : > { %v10713_v41 = vpop.f32.mrb[102].mxu0 }
 0xe0e   : > { %v20129_v18 = vpop.f32.mrb[103].mxu0  ;;  %v10714_v13 = vadd.f32 %v10713_v41, %v21393_v22 }
 0xe11   : > { %v10863_v16 = vpop.f32.mrb[104].mxu0 }
 0xe12   : > { %v20139_v23 = vpop.f32.mrb[105].mxu0 }
 0xe15   : > { %v10789_v36 = vpop.f32.mrb[102].mxu1 }
 0xe16   : > { %v10790_v5 = vadd.f32 %v10789_v36, %v10714_v13  ;;  %v11011_v20 = vpop.f32.mrb[106].mxu0  ;;  %v20134_v37 = vpop.f32.mrb[103].mxu1 }
 0xe17   : > { %v20149_v19 = vpop.f32.mrb[107].mxu0 }
 0xe18   : > { %v10864_v34 = vadd.f32 %v10863_v16, %v10790_v5 }
 0xe19   : > { %v10937_v27 = vpop.f32.mrb[104].mxu1 }
 0xe1a   : > { %v10938_v51 = vadd.f32 %v10937_v27, %v10864_v34  ;;  %v11159_v33 = vpop.f32.mrb[108].mxu0  ;;  %v20144_v56 = vpop.f32.mrb[105].mxu1 }
 0xe1b   : > { %v20159_v0 = vpop.f32.mrb[109].mxu0  ;;  %v11160_v41 = vadd.f32 %v11159_v33, %v21393_v22 }
 0xe1c   : > { %v11012_v48 = vadd.f32 %v11011_v20, %v10938_v51 }
 0xe1d   : > { %v11083_v39 = vpop.f32.mrb[106].mxu1 }
 0xe1e   : > { %v22102_v44 = vadd.f32 %v11083_v39, %v11012_v48  ;;  %v20154_v18 = vpop.f32.mrb[107].mxu1  ;;  %v11309_v52 = vpop.f32.mrb[110].mxu0 }
 0xe1f   : > { %v20169_v23 = vpop.f32.mrb[111].mxu0 }
 0xe21   : > { %v11235_v50 = vpop.f32.mrb[108].mxu1 }
 0xe22   : > { %v11236_v13 = vadd.f32 %v11235_v50, %v11160_v41  ;;  %v11457_v36 = vpop.f32.mrb[112].mxu0  ;;  %v20164_v37 = vpop.f32.mrb[109].mxu1 }
 0xe23   : > { %v20179_v19 = vpop.f32.mrb[113].mxu0 }
 0xe24   : > { %v11310_v16 = vadd.f32 %v11309_v52, %v11236_v13 }
 0xe25   : > { %v11383_v5 = vpop.f32.mrb[110].mxu1 }
 0xe26   : > { %v11384_v34 = vadd.f32 %v11383_v5, %v11310_v16  ;;  %v11609_v27 = vpop.f32.mrb[114].mxu0  ;;  %v20174_v56 = vpop.f32.mrb[111].mxu1 }
 0xe27   : > { %v20189_v0 = vpop.f32.mrb[115].mxu0  ;;  %v11610_v23 = vadd.f32 %v11609_v27, %v21411_v17 }
 0xe28   : > { %v11458_v20 = vadd.f32 %v11457_v36, %v11384_v34 }
 0xe29   : > { %v11529_v51 = vpop.f32.mrb[112].mxu1 }
 0xe2a   : > { %v11530_v39 = vadd.f32 %v11529_v51, %v11458_v20  ;;  %v20184_v48 = vpop.f32.mrb[113].mxu1  ;;  %v11759_v18 = vpop.f32.mrb[116].mxu0 }
 0xe2b   : > { %v20199_v21 = vpop.f32.mrb[117].mxu0 }
 0xe2c   : > { %v11985_v33 = vadd.f32 1.0, %v11530_v39 }
 0xe2d   : > { %v11685_v22 = vpop.f32.mrb[114].mxu1 }
 0xe2e   : > { %v11986_v50 = vmul.f32 %v11985_v33, %v22019_v6  ;;  %v11686_v41 = vadd.f32 %v11685_v22, %v11610_v23  ;;  %v20194_v37 = vpop.f32.mrb[115].mxu1 }
 0xe2f   : > { %v11907_v52 = vpop.f32.mrb[118].mxu0 }
 0xe30   : > { %v11988_v13 = vand.u32 4294901760, %v11986_v50  ;;  %v11760_v19 = vadd.f32 %v11759_v18, %v11686_v41  ;;  %v20209_v16 = vpop.f32.mrb[119].mxu0 }
 0xe31   : > { %v11833_v5 = vpop.f32.mrb[116].mxu1 }
 0xe32   : > { %v12065_v56 = vsub.f32 %v11986_v50, %v11988_v13  ;;  %v11834_v36 = vadd.f32 %v11833_v5, %v11760_v19  ;;  %20216 = vmatpush3.msra.mxu0 %v11988_v13  ;;  %v20204_v34 = vpop.f32.mrb[117].mxu1 }
 0xe33   : > { %20218 = vmatmul.mubr.f32.vlgmr.msra.gmra.mrb[120].mxu0 %v21417_v30  ;;  %20225 = vmatprep.subr.mxu0 %v22769_v14 }
 0xe34   : > { %v11908_v21 = vadd.f32 %v11907_v52, %v11834_v36  ;;  %20226 = vmatpush3.msra.mxu0 %v12065_v56  ;;  %20227 = vmatprep.mubr.msk.f32.mxu0 %vm20989_vm0, %v22769_v14  ;;  %v12066_v22 = vand.u32 4294901760, %v12065_v56 }
 0xe35   : > { %v11979_v6 = vpop.f32.mrb[118].mxu1  ;;  %20235 = vmatprep.subr.mxu0 %v22769_v14 }
 0xe36   : > { %v11980_v27 = vadd.f32 %v11979_v6, %v11908_v21  ;;  %v12067_v0 = vsub.f32 %v12065_v56, %v12066_v22  ;;  %v20214_v20 = vpop.f32.mrb[119].mxu1 }
 0xe37   : > { %20228 = vmatmul.mubr.f32.vlgmr.msra.gmra.mrb[122].mxu0 %v21406_v62  ;;  %v12887_v20 = vrot.slane %v22027_v12, 4 }
 0xe38   : > { %20236 = vmatpush3.msra.mxu0 %v12066_v22  ;;  %v12068_v51 = vand.u32 4294901760, %v12067_v0  ;;  %20237 = vmatprep.mubr.msk.f32.mxu0 %vm20989_vm0, %v22769_v14  ;;  %v11983_v5 = vadd.f32 1.0, %v11980_v27  ;;  %v13338_v27 = vadd.f32 1.0, %v22102_v44 }
 0xe39   : > { %20245 = vmatprep.subr.mxu0 %v22769_v14 }
 0xe3a   : > { %20221 = vmatpush3.msra.mxu1 %v12068_v51  ;;  %v11984_v22 = vmul.f32 %v11983_v5, %v22007_v40 }
 0xe3b   : > { %20223 = vmatmul.mubr.f32.vlgmr.msra.gmra.mrb[120].mxu1 %v21403_v55  ;;  %20230 = vmatprep.subr.mxu1 %v22769_v14 }
 0xe3c   : > { %20231 = vmatpush3.msra.mxu1 %v11988_v13  ;;  %20232 = vmatprep.mubr.msk.f32.mxu1 %vm20989_vm0, %v22769_v14 }
 0xe3d   : > { %20240 = vmatprep.subr.mxu1 %v22769_v14  ;;  %20238 = vmatmul.mubr.f32.vlgmr.msra.gmra.mrb[124].mxu0 %v21403_v55 }
 0xe3e   : > { %20247 = vmatprep.mubr.msk.f32.mxu0 %vm20989_vm0, %v22769_v14 }
 0xe3f   : > { %20233 = vmatmul.mubr.f32.vlgmr.msra.gmra.mrb[122].mxu1 %v21409_v9 }
 0xe40   : > { %20241 = vmatpush3.msra.mxu1 %v11988_v13  ;;  %20242 = vmatprep.mubr.msk.f32.mxu1 %vm20989_vm0, %v22769_v14 }
 0xe41   : > { %20250 = vmatprep.subr.mxu1 %v22769_v14 }
 0xe43   : > { %20243 = vmatmul.mubr.f32.vlgmr.msra.gmra.mrb[124].mxu1 %v21403_v55 }
 0xe44   : > { %20252 = vmatprep.mubr.msk.f32.mxu1 %vm20989_vm0, %v22769_v14 }
 0xf06   : > { %v12059_v39 = vpop.f32.mrb[120].mxu0 }
 0xf07   : > { %v20219_v48 = vpop.f32.mrb[121].mxu0  ;;  %v12060_v33 = vadd.f32 %v12059_v39, %v21449_v1 }
 0xf08   : > { %v12888_v48 = vsel %vm515_vm3, %v12887_v20, 0 }
 0xf0a   : > { %v12209_v18 = vpop.f32.mrb[122].mxu0 }
 0xf0b   : > { %v20229_v23 = vpop.f32.mrb[123].mxu0 }
 0xf0e   : > { %v12135_v50 = vpop.f32.mrb[120].mxu1 }
 0xf0f   : > { %v12136_v41 = vadd.f32 %v12135_v50, %v12060_v33  ;;  %v20224_v37 = vpop.f32.mrb[121].mxu1  ;;  %v12891_v33 = vand.u32 4294901760, %v12888_v48 }
 0xf10   : > { %v12357_v52 = vpop.f32.mrb[124].mxu0 }
 0xf11   : > { %v12210_v13 = vadd.f32 %v12209_v18, %v12136_v41  ;;  %v20239_v19 = vpop.f32.mrb[125].mxu0  ;;  %v12968_v41 = vsub.f32 %v12888_v48, %v12891_v33 }
 0xf12   : > { %v12283_v16 = vpop.f32.mrb[122].mxu1 }
 0xf13   : > { %v12284_v56 = vadd.f32 %v12283_v16, %v12210_v13  ;;  %v20234_v36 = vpop.f32.mrb[123].mxu1  ;;  %v12969_v13 = vand.u32 4294901760, %v12968_v41 }
 0xf15   : > { %v12358_v34 = vadd.f32 %v12357_v52, %v12284_v56  ;;  %v13339_v52 = vmul.f32 %v13338_v27, %v22027_v12  ;;  %v12970_v12 = vsub.f32 %v12968_v41, %v12969_v13 }
 0xf16   : > { %v12429_v21 = vpop.f32.mrb[124].mxu1 }
 0xf17   : > { %v12430_v6 = vadd.f32 %v12429_v21, %v12358_v34  ;;  %v20244_v0 = vpop.f32.mrb[125].mxu1  ;;  %v13341_v44 = vand.u32 4294901760, %v13339_v52  ;;  %v12971_v16 = vand.u32 4294901760, %v12970_v12  ;;  %v18975_v34 = vld [vmem:[%s21167_s25 + $0xc] sm:$0xf] }
 0xf18   : > { %v14243_v21 = vsel %vm488_vm1, %v18975_v34, 0.0 }
 0xf19   : > { %v12433_v51 = vadd.f32 %v12430_v6, %v11984_v22  ;;  %v13418_v19 = vsub.f32 %v13339_v52, %v13341_v44  ;;  %v14244_v22 = vrot.slane %v14243_v21, 4  ;;  %v18976_v6 = vld [vmem:[%s21167_s25 + $0x1c] sm:$0xf] }
 0xf1a   : > { %v14731_v0 = vsel %vm488_vm1, %v18976_v6, 0.0 }
 0xf1b   : > { %v12435_v39 = vsel %vm515_vm3, %v12433_v51, 0  ;;  %v13419_v5 = vand.u32 4294901760, %v13418_v19  ;;  %v14245_v20 = vadd.f32 %v14244_v22, %v14243_v21  ;;  %v14732_v51 = vrot.slane %v14731_v0, 4 }
 0xf1c   : > { %v12438_v23 = vand.u32 4294901760, %v12435_v39 }
 0xf1d   : > { %v13420_v56 = vsub.f32 %v13418_v19, %v13419_v5  ;;  %v14733_v48 = vadd.f32 %v14732_v51, %v14731_v0 }
 0xf1e   : > { %v12515_v18 = vsub.f32 %v12435_v39, %v12438_v23  ;;  %20246 = vmatpush3.msra.mxu0 %v12438_v23  ;;  %v14246_v39 = vrot.slane %v14245_v20, 2 }
 0xf1f   : > { %20248 = vmatmul.mubr.f32.vlgmr.msra.gmra.mrb[126].mxu0 %v21463_v35  ;;  %20255 = vmatprep.subr.mxu0 %v22769_v14  ;;  %v13421_v36 = vand.u32 4294901760, %v13420_v56 }
 0xf20   : > { %20256 = vmatpush3.msra.mxu0 %v12515_v18  ;;  %20257 = vmatprep.mubr.msk.f32.mxu0 %vm20989_vm0, %v22769_v14  ;;  %v12516_v40 = vand.u32 4294901760, %v12515_v18 }
 0xf21   : > { %20265 = vmatprep.subr.mxu0 %v22769_v14 }
 0xf22   : > { %v12517_v50 = vsub.f32 %v12515_v18, %v12516_v40  ;;  %v14734_v18 = vrot.slane %v14733_v48, 2 }
 0xf23   : > { %20258 = vmatmul.mubr.f32.vlgmr.msra.gmra.mrb[128].mxu0 %v21453_v11 }
 0xf24   : > { %20266 = vmatpush3.msra.mxu0 %v12516_v40  ;;  %v12518_v37 = vand.u32 4294901760, %v12517_v50  ;;  %20267 = vmatprep.mubr.msk.f32.mxu0 %vm20989_vm0, %v22769_v14  ;;  %v14735_v40 = vadd.f32 %v14734_v18, %v14733_v48 }
 0xf25   : > { %20275 = vmatprep.subr.mxu0 %v22769_v14 }
 0xf26   : > { %20251 = vmatpush3.msra.mxu1 %v12518_v37  ;;  %v14736_v50 = vrot.slane %v14735_v40, 1 }
 0xf27   : > { %20253 = vmatmul.mubr.f32.vlgmr.msra.gmra.mrb[126].mxu1 %v21447_v63  ;;  %20260 = vmatprep.subr.mxu1 %v22769_v14 }
 0xf28   : > { %20268 = vmatmul.mubr.f32.vlgmr.msra.gmra.mrb[130].mxu0 %v21447_v63  ;;  %20261 = vmatpush3.msra.mxu1 %v12438_v23  ;;  %v14737_v37 = vadd.f32 %v14736_v50, %v14735_v40 }
 0xf29   : > { %20276 = vmatpush3.msra.mxu0 %v12891_v33  ;;  %20262 = vmatprep.mubr.msk.f32.mxu1 %vm20989_vm0, %v22769_v14 }
 0xf2a   : > { %20270 = vmatprep.subr.mxu1 %v22769_v14  ;;  %20277 = vmatprep.mubr.msk.f32.mxu0 %vm20989_vm0, %v22769_v14 }
 0xf2b   : > { %20285 = vmatprep.subr.mxu0 %v22769_v14  ;;  %20263 = vmatmul.mubr.f32.vlgmr.msra.gmra.mrb[128].mxu1 %v21456_v24 }
 0xf2c   : > { %20271 = vmatpush3.msra.mxu1 %v12438_v23  ;;  %20278 = vmatmul.mubr.f32.vlgmr.msra.gmra.mrb[132].mxu0 %v21355_v15  ;;  %v14247_v23 = vadd.f32 %v14246_v39, %v14245_v20 }
 0xf2d   : > { %20286 = vmatpush3.msra.mxu0 %v12968_v41  ;;  %20272 = vmatprep.mubr.msk.f32.mxu1 %vm20989_vm0, %v22769_v14 }
 0xf2e   : > { %20280 = vmatprep.subr.mxu1 %v22769_v14  ;;  %20287 = vmatprep.mubr.msk.f32.mxu0 %vm20989_vm0, %v22769_v14 }
 0xf2f   : > { %20295 = vmatprep.subr.mxu0 %v22769_v14  ;;  %20273 = vmatmul.mubr.f32.vlgmr.msra.gmra.mrb[130].mxu1 %v21447_v63 }
 0xf30   : > { %20281 = vmatpush3.msra.mxu1 %v12971_v16  ;;  %20288 = vmatmul.mubr.f32.vlgmr.msra.gmra.mrb[134].mxu0 %v21324_v7 }
 0xf31   : > { %20296 = vmatpush3.msra.mxu0 %v12969_v13  ;;  %20282 = vmatprep.mubr.msk.f32.mxu1 %vm20989_vm0, %v22769_v14  ;;  %v14738_v13 = vmul.f32 0.25, %v14737_v37 }
 0xf32   : > { %20290 = vmatprep.subr.mxu1 %v22769_v14  ;;  %20297 = vmatprep.mubr.msk.f32.mxu0 %vm20989_vm0, %v22769_v14 }
 0xf33   : > { %20305 = vmatprep.subr.mxu0 %v22769_v14  ;;  %20283 = vmatmul.mubr.f32.vlgmr.msra.gmra.mrb[132].mxu1 %v21316_v4  ;;  %v22218_v12 = vsub.f32 %v18976_v6, %v14738_v13 }
 0xf34   : > { %20291 = vmatpush3.msra.mxu1 %v12891_v33  ;;  %20298 = vmatmul.mubr.f32.vlgmr.msra.gmra.mrb[136].mxu0 %v21316_v4 }
 0xf35   : > { %20306 = vmatpush3.msra.mxu0 %v13341_v44  ;;  %20292 = vmatprep.mubr.msk.f32.mxu1 %vm20989_vm0, %v22769_v14  ;;  %v14740_v16 = vmul.f32 %v22218_v12, %v22218_v12 }
 0xf36   : > { %20300 = vmatprep.subr.mxu1 %v22769_v14  ;;  %20307 = vmatprep.mubr.msk.f32.mxu0 %vm20989_vm0, %v22769_v14 }
 0xf37   : > { %20315 = vmatprep.subr.mxu0 %v22769_v14  ;;  %20293 = vmatmul.mubr.f32.vlgmr.msra.gmra.mrb[134].mxu1 %v21335_v10  ;;  %v14741_v56 = vsel %vm488_vm1, %v14740_v16, 0.0 }
 0xf38   : > { %20301 = vmatpush3.msra.mxu1 %v12891_v33  ;;  %20308 = vmatmul.mubr.f32.vlgmr.msra.gmra.mrb[138].mxu0 %v21417_v30  ;;  %v14248_v33 = vrot.slane %v14247_v23, 1  ;;  %v14742_v21 = vrot.slane %v14741_v56, 4 }
 0xf39   : > { %20316 = vmatpush3.msra.mxu0 %v13418_v19  ;;  %20302 = vmatprep.mubr.msk.f32.mxu1 %vm20989_vm0, %v22769_v14 }
 0xf3a   : > { %20310 = vmatprep.subr.mxu1 %v22769_v14  ;;  %20317 = vmatprep.mubr.msk.f32.mxu0 %vm20989_vm0, %v22769_v14  ;;  %v14249_v27 = vadd.f32 %v14248_v33, %v14247_v23  ;;  %v14743_v20 = vadd.f32 %v14742_v21, %v14741_v56 }
 0xf3b   : > { %20325 = vmatprep.subr.mxu0 %v22769_v14  ;;  %20303 = vmatmul.mubr.f32.vlgmr.msra.gmra.mrb[136].mxu1 %v21316_v4 }
 0xf3c   : > { %20311 = vmatpush3.msra.mxu1 %v13421_v36  ;;  %20318 = vmatmul.mubr.f32.vlgmr.msra.gmra.mrb[140].mxu0 %v21406_v62  ;;  %v14250_v41 = vmul.f32 0.25, %v14249_v27  ;;  %v14744_v48 = vrot.slane %v14743_v20, 2 }
 0xf3d   : > { %20326 = vmatpush3.msra.mxu0 %v13419_v5  ;;  %20312 = vmatprep.mubr.msk.f32.mxu1 %vm20989_vm0, %v22769_v14 }
 0xf3e   : > { %20320 = vmatprep.subr.mxu1 %v22769_v14  ;;  %20327 = vmatprep.mubr.msk.f32.mxu0 %vm20989_vm0, %v22769_v14  ;;  %v22214_v52 = vsub.f32 %v18975_v34, %v14250_v41  ;;  %v14745_v50 = vadd.f32 %v14744_v48, %v14743_v20 }
 0xf3f   : > { %20313 = vmatmul.mubr.f32.vlgmr.msra.gmra.mrb[138].mxu1 %v21403_v55  ;;  %20335 = vmatprep.subr.mxu0 %v22769_v14 }
 0xf40   : > { %20321 = vmatpush3.msra.mxu1 %v13341_v44  ;;  %20322 = vmatprep.mubr.msk.f32.mxu1 %vm20989_vm0, %v22769_v14  ;;  %v14746_v16 = vrot.slane %v14745_v50, 1 }
 0xf41   : > { %20330 = vmatprep.subr.mxu1 %v22769_v14  ;;  %20328 = vmatmul.mubr.f32.vlgmr.msra.gmra.mrb[142].mxu0 %v21403_v55 }
 0xf42   : > { %20337 = vmatprep.mubr.msk.f32.mxu0 %vm20989_vm0, %v22769_v14 }
 0xf43   : > { %20323 = vmatmul.mubr.f32.vlgmr.msra.gmra.mrb[140].mxu1 %v21409_v9 }
 0xf44   : > { %20331 = vmatpush3.msra.mxu1 %v13341_v44  ;;  %20332 = vmatprep.mubr.msk.f32.mxu1 %vm20989_vm0, %v22769_v14  ;;  %v14252_v44 = vmul.f32 %v22214_v52, %v22214_v52 }
 0xf45   : > { %20340 = vmatprep.subr.mxu1 %v22769_v14 }
 0xf46   : > { %v14253_v19 = vsel %vm488_vm1, %v14252_v44, 0.0 }
 0xf47   : > { %20333 = vmatmul.mubr.f32.vlgmr.msra.gmra.mrb[142].mxu1 %v21403_v55  ;;  %v14254_v5 = vrot.slane %v14253_v19, 4 }
 0xf48   : > { %20342 = vmatprep.mubr.msk.f32.mxu1 %vm20989_vm0, %v22769_v14 }
 0xf49   : > { %v14255_v36 = vadd.f32 %v14254_v5, %v14253_v19 }
 0xf4b   : > { %v14256_v34 = vrot.slane %v14255_v36, 2 }
 0xf4d   : > { %v14257_v39 = vadd.f32 %v14256_v34, %v14255_v36 }
 0xf4f   : > { %v14258_v18 = vrot.slane %v14257_v39, 1 }
 0xf51   : > { %v14259_v37 = vadd.f32 %v14258_v18, %v14257_v39 }
 0xf53   : > { %v14260_v56 = vmul.f32 0.25, %v14259_v37 }
 0xff2   : > { %v22224_v22 = vpop.f32.mrb[126].mxu0 }
 0xff3   : > { %v20249_v0 = vpop.f32.mrb[127].mxu0 }
 0xff4   : > { %v14747_v0 = vadd.f32 %v14746_v16, %v14745_v50 }
 0xff6   : > { %v22226_v51 = vpop.f32.mrb[128].mxu0  ;;  %v14748_v39 = vmul.f32 0.25, %v14747_v0 }
 0xff7   : > { %v20259_v6 = vpop.f32.mrb[129].mxu0 }
 0xffa   : > { %v22228_v23 = vpop.f32.mrb[126].mxu1 }
 0xffb   : > { %v22230_v33 = vpop.f32.mrb[130].mxu0  ;;  %v20254_v40 = vpop.f32.mrb[127].mxu1 }
 0xffc   : > { %v20269_v27 = vpop.f32.mrb[131].mxu0  ;;  %v14261_v40 = vadd.f32 1e-05, %v14260_v56 }
 0xffe   : > { %v22232_v41 = vpop.f32.mrb[128].mxu1  ;;  %20891 = vrsqrt.f32 %v14261_v40 }
 0xfff   : > { %v12962_v13 = vpop.f32.mrb[132].mxu0  ;;  %v20264_v44 = vpop.f32.mrb[129].mxu1 }
0x1000   : > { %v20279_v19 = vpop.f32.mrb[133].mxu0  ;;  %v12963_v6 = vadd.f32 %v12962_v13, %v21411_v17 }
0x1002   : > { %v22234_v5 = vpop.f32.mrb[130].mxu1 }
0x1003   : > { %v20274_v36 = vpop.f32.mrb[131].mxu1  ;;  %v13112_v21 = vpop.f32.mrb[134].mxu0 }
0x1004   : > { %v20289_v34 = vpop.f32.mrb[135].mxu0  ;;  %v14749_v36 = vadd.f32 1e-05, %v14748_v39 }
0x1006   : > { %v13038_v9 = vpop.f32.mrb[132].mxu1  ;;  %20893 = vrsqrt.f32 %v14749_v36 }
0x1007   : > { %v13039_v27 = vadd.f32 %v13038_v9, %v12963_v6  ;;  %v13260_v20 = vpop.f32.mrb[136].mxu0  ;;  %v20284_v48 = vpop.f32.mrb[133].mxu1 }
0x1008   : > { %v20299_v55 = vpop.f32.mrb[137].mxu0 }
0x1009   : > { %v13113_v18 = vadd.f32 %v13112_v21, %v13039_v27  ;;  %v20892_v21 = vpop.eup %20891 }
0x100a   : > { %v13186_v44 = vpop.f32.mrb[134].mxu1 }
0x100b   : > { %v13187_v19 = vadd.f32 %v13186_v44, %v13113_v18  ;;  %v13412_v62 = vpop.f32.mrb[138].mxu0  ;;  %v20294_v30 = vpop.f32.mrb[135].mxu1 }
0x100c   : > { %v20309_v37 = vpop.f32.mrb[139].mxu0  ;;  %v13413_v9 = vadd.f32 %v13412_v62, %v21449_v1 }
0x100d   : > { %v13261_v10 = vadd.f32 %v13260_v20, %v13187_v19  ;;  %v14263_v20 = vmul.f32 %v20892_v21, %v22214_v52 }
0x100e   : > { %v13332_v34 = vpop.f32.mrb[136].mxu1 }
0x100f   : > { %v13333_v50 = vadd.f32 %v13332_v34, %v13261_v10  ;;  %v20304_v16 = vpop.f32.mrb[137].mxu1  ;;  %v13562_v13 = vpop.f32.mrb[140].mxu0  ;;  %v14265_v36 = vsel %vm515_vm3, %v14263_v20, 0 }
0x1010   : > { %v20319_v17 = vpop.f32.mrb[141].mxu0  ;;  %v20894_v44 = vpop.eup %20893 }
0x1011   : > { %v13336_v30 = vadd.f32 1.0, %v13333_v50  ;;  %v14751_v16 = vmul.f32 %v20894_v44, %v22218_v12 }
0x1012   : > { %v13488_v56 = vpop.f32.mrb[138].mxu1 }
0x1013   : > { %v13489_v55 = vadd.f32 %v13488_v56, %v13413_v9  ;;  %v20314_v0 = vpop.f32.mrb[139].mxu1  ;;  %v13337_v17 = vmul.f32 %v13336_v30, %v22011_v58  ;;  %v14753_v56 = vsel %vm515_vm3, %v14751_v16, 0 }
0x1014   : > { %v13710_v6 = vpop.f32.mrb[142].mxu0  ;;  %v22251_v12 = vand.u32 4294901760, %v14753_v56 }
0x1015   : > { %v13563_v40 = vadd.f32 %v13562_v13, %v13489_v55  ;;  %v20329_v27 = vpop.f32.mrb[143].mxu0  ;;  %v22242_v13 = vand.u32 4294901760, %v14265_v36 }
0x1016   : > { %v13636_v48 = vpop.f32.mrb[140].mxu1 }
0x1017   : > { %v13637_v18 = vadd.f32 %v13636_v48, %v13563_v40  ;;  %v20324_v39 = vpop.f32.mrb[141].mxu1  ;;  %v14345_v55 = vsub.f32 %v14265_v36, %v22242_v13  ;;  %v14833_v40 = vsub.f32 %v14753_v56, %v22251_v12 }
0x1019   : > { %v13711_v10 = vadd.f32 %v13710_v6, %v13637_v18  ;;  %v14346_v21 = vand.u32 4294901760, %v14345_v55  ;;  %v14834_v48 = vand.u32 4294901760, %v14833_v40 }
0x101a   : > { %v13782_v19 = vpop.f32.mrb[142].mxu1 }
0x101b   : > { %v13783_v37 = vadd.f32 %v13782_v19, %v13711_v10  ;;  %v20334_v62 = vpop.f32.mrb[143].mxu1  ;;  %v14347_v27 = vsub.f32 %v14345_v55, %v14346_v21  ;;  %v14835_v18 = vsub.f32 %v14833_v40, %v14834_v48 }
0x101d   : > { %v13786_v34 = vadd.f32 %v13783_v37, %v13337_v17  ;;  %v14348_v30 = vand.u32 4294901760, %v14347_v27  ;;  %v14836_v39 = vand.u32 4294901760, %v14835_v18 }
0x101f   : > { %v13788_v50 = vsel %vm515_vm3, %v13786_v34, 0 }
0x1020   : > { %v13791_v9 = vand.u32 4294901760, %v13788_v50 }
0x1022   : > { %v13868_v52 = vsub.f32 %v13788_v50, %v13791_v9  ;;  %20336 = vmatpush3.msra.mxu0 %v13791_v9 }
0x1023   : > { %20338 = vmatmul.mubr.f32.vlgmr.msra.gmra.mrb[144].mxu0 %v21463_v35  ;;  %20345 = vmatprep.subr.mxu0 %v22769_v14 }
0x1024   : > { %20346 = vmatpush3.msra.mxu0 %v13868_v52  ;;  %20347 = vmatprep.mubr.msk.f32.mxu0 %vm20989_vm0, %v22769_v14  ;;  %v13869_v58 = vand.u32 4294901760, %v13868_v52 }
0x1025   : > { %20355 = vmatprep.subr.mxu0 %v22769_v14 }
0x1026   : > { %v13870_v0 = vsub.f32 %v13868_v52, %v13869_v58 }
0x1027   : > { %20348 = vmatmul.mubr.f32.vlgmr.msra.gmra.mrb[146].mxu0 %v21453_v11 }
0x1028   : > { %20356 = vmatpush3.msra.mxu0 %v13869_v58  ;;  %v13871_v6 = vand.u32 4294901760, %v13870_v0  ;;  %20357 = vmatprep.mubr.msk.f32.mxu0 %vm20989_vm0, %v22769_v14 }
0x1029   : > { %20365 = vmatprep.subr.mxu0 %v22769_v14 }
0x102a   : > { %20341 = vmatpush3.msra.mxu1 %v13871_v6 }
0x102b   : > { %20343 = vmatmul.mubr.f32.vlgmr.msra.gmra.mrb[144].mxu1 %v21447_v63  ;;  %20350 = vmatprep.subr.mxu1 %v22769_v14 }
0x102c   : > { %20358 = vmatmul.mubr.f32.vlgmr.msra.gmra.mrb[148].mxu0 %v21447_v63  ;;  %20351 = vmatpush3.msra.mxu1 %v13791_v9 }
0x102d   : > { %20352 = vmatprep.mubr.msk.f32.mxu1 %vm20989_vm0, %v22769_v14  ;;  %20360 = vmatprep.subr.mxu1 %v22769_v14 }
0x102e   : > { %20366 = vmatpush3.msra.mxu0 %v22242_v13  ;;  %20367 = vmatprep.mubr.msk.f32.mxu0 %vm20989_vm0, %v22769_v14 }
0x102f   : > { %20353 = vmatmul.mubr.f32.vlgmr.msra.gmra.mrb[146].mxu1 %v21456_v24  ;;  %20370 = vmatprep.subr.mxu0 %v22769_v14 }
0x1030   : > { %20361 = vmatpush3.msra.mxu1 %v13791_v9  ;;  %20368 = vmatmul.mubr.f32.vlgmr.msra.gmra.mrb[150].mxu0 %v21203_v54 }
0x1031   : > { %20362 = vmatprep.mubr.msk.f32.mxu1 %vm20989_vm0, %v22769_v14  ;;  %20395 = vmatprep.subr.mxu1 %v22769_v14 }
0x1032   : > { %20371 = vmatpush3.msra.mxu0 %v14348_v30  ;;  %20372 = vmatprep.mubr.msk.f32.mxu0 %vm20989_vm0, %v22769_v14 }
0x1033   : > { %20363 = vmatmul.mubr.f32.vlgmr.msra.gmra.mrb[148].mxu1 %v21447_v63  ;;  %20375 = vmatprep.subr.mxu0 %v22769_v14 }
0x1034   : > { %20396 = vmatpush3.msra.mxu1 %v22251_v12  ;;  %20397 = vmatprep.mubr.msk.f32.mxu1 %vm20989_vm0, %v22769_v14 }
0x1035   : > { %20400 = vmatprep.subr.mxu1 %v22769_v14 }
0x1037   : > { %20398 = vmatmul.mubr.f32.vlgmr.msra.gmra.mrb[150].mxu1 %v21203_v54 }
0x1038   : > { %20373 = vmatmul.mubr.f32.vlgmr.msra.gmra.mrb[150].mxu0 %v21192_v43  ;;  %20401 = vmatpush3.msra.mxu1 %v14836_v39 }
0x1039   : > { %20376 = vmatpush3.msra.mxu0 %v14345_v55  ;;  %20377 = vmatprep.mubr.msk.f32.mxu0 %vm20989_vm0, %v22769_v14 }
0x103a   : > { %20402 = vmatprep.mubr.msk.f32.mxu1 %vm20989_vm0, %v22769_v14  ;;  %20380 = vmatprep.subr.mxu0 %v22769_v14 }
0x103b   : > { %20405 = vmatprep.subr.mxu1 %v22769_v14 }
0x103f   : > { %20403 = vmatmul.mubr.f32.vlgmr.msra.gmra.mrb[150].mxu1 %v21192_v43 }
0x1040   : > { %20378 = vmatmul.mubr.f32.vlgmr.msra.gmra.mrb[150].mxu0 %v21195_v46  ;;  %20406 = vmatpush3.msra.mxu1 %v14833_v40 }
0x1041   : > { %20381 = vmatpush3.msra.mxu0 %v22242_v13  ;;  %20382 = vmatprep.mubr.msk.f32.mxu0 %vm20989_vm0, %v22769_v14 }
0x1042   : > { %20407 = vmatprep.mubr.msk.f32.mxu1 %vm20989_vm0, %v22769_v14  ;;  %20385 = vmatprep.subr.mxu0 %v22769_v14 }
0x1043   : > { %20410 = vmatprep.subr.mxu1 %v22769_v14 }
0x1047   : > { %20408 = vmatmul.mubr.f32.vlgmr.msra.gmra.mrb[150].mxu1 %v21195_v46 }
0x1048   : > { %20383 = vmatmul.mubr.f32.vlgmr.msra.gmra.mrb[150].mxu0 %v21198_v47  ;;  %20411 = vmatpush3.msra.mxu1 %v22251_v12 }
0x1049   : > { %20386 = vmatpush3.msra.mxu0 %v14346_v21  ;;  %20387 = vmatprep.mubr.msk.f32.mxu0 %vm20989_vm0, %v22769_v14 }
0x104a   : > { %20412 = vmatprep.mubr.msk.f32.mxu1 %vm20989_vm0, %v22769_v14  ;;  %20390 = vmatprep.subr.mxu0 %v22769_v14 }
0x104b   : > { %20415 = vmatprep.subr.mxu1 %v22769_v14 }
0x104f   : > { %20413 = vmatmul.mubr.f32.vlgmr.msra.gmra.mrb[150].mxu1 %v21198_v47 }
0x1050   : > { %20388 = vmatmul.mubr.f32.vlgmr.msra.gmra.mrb[150].mxu0 %v21192_v43  ;;  %20416 = vmatpush3.msra.mxu1 %v14834_v48 }
0x1051   : > { %20391 = vmatpush3.msra.mxu0 %v22242_v13  ;;  %20392 = vmatprep.mubr.msk.f32.mxu0 %vm20989_vm0, %v22769_v14 }
0x1052   : > { %20417 = vmatprep.mubr.msk.f32.mxu1 %vm20989_vm0, %v22769_v14  ;;  %20420 = vmatprep.subr.mxu1 %v22769_v14 }
0x1053   : > { %20425 = vmatprep.subr.mxu0 %v22769_v14 }
0x1057   : > { %20418 = vmatmul.mubr.f32.vlgmr.msra.gmra.mrb[150].mxu1 %v21192_v43 }
0x1058   : > { %20393 = vmatmul.mubr.f32.vlgmr.msra.gmra.mrb[150].mxu0 %v21192_v43  ;;  %20421 = vmatpush3.msra.mxu1 %v22251_v12 }
0x1059   : > { %20422 = vmatprep.mubr.msk.f32.mxu1 %vm20989_vm0, %v22769_v14  ;;  %20427 = vmatprep.mubr.msk.f32.mxu0 %vm20989_vm0, %v22769_v14 }
0x105a   : > { %20430 = vmatprep.subr.mxu1 %v22769_v14 }
0x105f   : > { %20423 = vmatmul.mubr.f32.vlgmr.msra.gmra.mrb[150].mxu1 %v21192_v43 }
0x1060   : > { %20432 = vmatprep.mubr.msk.f32.mxu1 %vm20989_vm0, %v22769_v14 }
0x10f6   : > { %v13862_v46 = vpop.f32.mrb[144].mxu0 }
0x10f7   : > { %v20339_v47 = vpop.f32.mrb[145].mxu0 }
0x10fa   : > { %v22328_v54 = vpop.f32.mrb[146].mxu0 }
0x10fb   : > { %v20349_v20 = vpop.f32.mrb[147].mxu0 }
0x10fe   : > { %v22330_v10 = vpop.f32.mrb[144].mxu1 }
0x10ff   : > { %v22332_v44 = vpop.f32.mrb[148].mxu0  ;;  %v20344_v19 = vpop.f32.mrb[145].mxu1 }
0x1100   : > { %v20359_v17 = vpop.f32.mrb[149].mxu0 }
0x1102   : > { %v22334_v37 = vpop.f32.mrb[146].mxu1 }
0x1103   : > { %v20354_v62 = vpop.f32.mrb[147].mxu1 }
0x1106   : > { %v22336_v36 = vpop.f32.mrb[148].mxu1 }
0x1107   : > { %v20364_v43 = vpop.f32.mrb[149].mxu1 }
0x112b   : > { %v14709_v34 = vpop.f32.mrb[150].mxu0 }
0x112c   : > { %v20671_v16 = vadd.f32 %v14709_v34, %v21254_v3  ;;  %v20394_v13 = vpop.f32.mrb[151].mxu0 }
0x112d   : > { %v479_v13 = vld [vmem:[%s22705_s10] sm:$0xf] }
0x112e   : > { %v14714_v50 = vmul.f32 0.70710677, %v20671_v16  ;;  %v14713_v12 = vmul.f32 0.5, %v20671_v16 }
0x1130   : > { %20895 = verf.f32 %v14714_v50 }
0x1132   : > { %v15197_v9 = vpop.f32.mrb[150].mxu1 }
0x1133   : > { %v20672_v56 = vadd.f32 %v15197_v9, %v21254_v3  ;;  %v20424_v52 = vpop.f32.mrb[151].mxu1 }
0x1135   : > { %v15202_v55 = vmul.f32 0.70710677, %v20672_v56  ;;  %v15201_v27 = vmul.f32 0.5, %v20672_v56 }
0x1137   : > { %20897 = verf.f32 %v15202_v55 }
0x113a   : > { %v20896_v58 = vpop.eup %20895 }
0x113b   : > { %v14716_v0 = vadd.f32 1.0, %v20896_v58 }
0x113d   : > { %v22340_v21 = vmul.f32 %v14716_v0, %v14713_v12 }
0x113f   : > { %v14718_v6 = vsel %vm970_vm4, %v22340_v21, 0.0 }
0x1140   : > { %14719 = vadd.xlane.f32.xlu0 %v14718_v6 }
0x1141   : > { %v20898_v40 = vpop.eup %20897 }
0x1142   : > { %v15204_v48 = vadd.f32 1.0, %v20898_v40 }
0x1144   : > { %v22344_v30 = vmul.f32 %v15204_v48, %v15201_v27 }
0x1146   : > { %v15206_v3 = vsel %vm970_vm4, %v22344_v30, 0.0 }
0x1147   : > { %15207 = vadd.xlane.f32.xlu0 %v15206_v3 }
0x11cd   : > { %v14720_v18 = vpop.xlane.xlu0 %14719 }
0x11ce   : > { %v14721_v39 = vmul.f32 0.0625, %v14720_v18 }
0x11d0   : > { %v14722_v47 = vsub.f32 %v22340_v21, %v14721_v39 }
0x11d2   : > { %v14723_v20 = vmul.f32 %v14722_v47, %v14722_v47 }
0x11d4   : > { %v14724_v19 = vsel %vm970_vm4, %v14723_v20, 0.0  ;;  %v15208_v17 = vpop.xlane.xlu0 %15207 }
0x11d5   : > { %14725 = vadd.xlane.f32.xlu0 %v14724_v19  ;;  %v15209_v62 = vmul.f32 0.0625, %v15208_v17 }
0x11d7   : > { %v22351_v43 = vsub.f32 %v22344_v30, %v15209_v62  ;;  %v22773_v62 = vld [vmem:[#allocation36_spill] sm:$0xff] }
0x11d9   : > { %v15211_v34 = vmul.f32 %v22351_v43, %v22351_v43 }
0x11db   : > { %v15212_v16 = vsel %vm970_vm4, %v15211_v34, 0.0  ;;  %v22774_v34 = vld [vmem:[#allocation38_spill] sm:$0xff] }
0x11dc   : > { %15213 = vadd.xlane.f32.xlu1 %v15212_v16  ;;  %v22776_v16 = vld [vmem:[#allocation35_spill] sm:$0xff] }
0x11eb   : > { %482 = vperm.xlu0 %20853, %v479_v13  }
0x1262   : > { %v14726_v50 = vpop.xlane.xlu0 %14725 }
0x1263   : > { %v14727_v9 = vmul.f32 0.0625, %v14726_v50 }
0x1265   : > { %v14728_v56 = vadd.f32 1e-05, %v14727_v9  ;;  %v22778_v9 = vld [vmem:[#allocation39_spill] sm:$0xff] }
0x1267   : > { %20899 = vrsqrt.f32 %v14728_v56 }
0x1269   : > { %v15214_v52 = vpop.xlane.xlu1 %15213 }
0x126a   : > { %v15215_v55 = vmul.f32 0.0625, %v15214_v52  ;;  %v22359_v58 = vpop.permute.xlu0 %482 }
0x126b   : > { %v3355_v12 = vadd.f32 %v21554_v45, %v22359_v58  ;;  %v4707_v0 = vadd.f32 %v21658_v26, %v22359_v58  ;;  %v7932_v6 = vadd.f32 %v21889_v32, %v22359_v58  ;;  %v9285_v40 = vadd.f32 %v21993_v49, %v22359_v58 }
0x126c   : > { %v15216_v27 = vadd.f32 1e-05, %v15215_v55  ;;  %v12510_v48 = vadd.f32 %v22224_v22, %v22359_v58  ;;  %v13863_v3 = vadd.f32 %v13862_v46, %v22359_v58 }
0x126d   : > { %v3431_v18 = vadd.f32 %v21558_v59, %v3355_v12  ;;  %v4783_v39 = vadd.f32 %v21662_v31, %v4707_v0  ;;  %v8008_v45 = vadd.f32 %v21893_v25, %v7932_v6  ;;  %v9361_v26 = vadd.f32 %v21997_v60, %v9285_v40  ;;  %v20904_v0 = vld [vmem:[%s21167_s25 + $0x10] sm:$0xf]  ;;  %v20905_v40 = vld [vmem:[%s21167_s25 + $0x4] sm:$0xf] }
0x126e   : > { %20901 = vrsqrt.f32 %v15216_v27  ;;  %v12586_v32 = vadd.f32 %v22228_v23, %v12510_v48  ;;  %v13939_v20 = vadd.f32 %v22330_v10, %v13863_v3  ;;  %v20906_v48 = vld [vmem:[%s21167_s25 + $0x14] sm:$0xf] }
0x126f   : > { %v3505_v49 = vadd.f32 %v21556_v42, %v3431_v18  ;;  %v4857_v19 = vadd.f32 %v21660_v28, %v4783_v39  ;;  %v8082_v22 = vadd.f32 %v21891_v29, %v8008_v45  ;;  %v9435_v46 = vadd.f32 %v21995_v2, %v9361_v26  ;;  %v22779_v18 = vld [vmem:[#allocation25_spill] sm:$0xff]  ;;  %v20907_v45 = vld [vmem:[%s21167_s25 + $0x8] sm:$0xf] }
0x1270   : > { %v12660_v59 = vadd.f32 %v22226_v51, %v12586_v32  ;;  %v14013_v31 = vadd.f32 %v22328_v54, %v13939_v20  ;;  %v22772_v51 = vld [vmem:[#allocation34_spill] sm:$0xff]  ;;  %v20908_v26 = vld [vmem:[%s21167_s25 + $0x18] sm:$0xf] }
0x1271   : > { %v20900_v25 = vpop.eup %20899  ;;  %v3579_v60 = vadd.f32 %v21562_v8, %v3505_v49  ;;  %v4931_v17 = vadd.f32 %v21666_v38, %v4857_v19  ;;  %v8156_v23 = vadd.f32 %v21897_v53, %v8082_v22  ;;  %v9509_v10 = vadd.f32 %v22001_v57, %v9435_v46  ;;  %v22780_v49 = vld [vmem:[#allocation23_spill] sm:$0xff] }
0x1272   : > { %v22388_v42 = vmul.f32 %v20900_v25, %v14722_v47  ;;  %v12734_v28 = vadd.f32 %v22232_v41, %v12660_v59  ;;  %v14087_v29 = vadd.f32 %v22334_v37, %v14013_v31  ;;  %v22775_v47 = vld [vmem:[#allocation33_spill] sm:$0xff]  ;;  %v22781_v31 = vld [vmem:[#allocation22_spill] sm:$0xff] }
0x1273   : > { %v3653_v2 = vadd.f32 %v21560_v61, %v3579_v60  ;;  %v5005_v54 = vadd.f32 %v22772_v51, %v4931_v17  ;;  %v8230_v8 = vadd.f32 %v22773_v62, %v8156_v23  ;;  %v9583_v38 = vadd.f32 %v22774_v34, %v9509_v10  ;;  %v22777_v61 = vld [vmem:[#allocation37_spill] sm:$0xff]  ;;  %v22782_v10 = vld [vmem:[#allocation24_spill] sm:$0xff]  ;;  %v22783_v62 = vld [vmem:[#allocation26_spill] sm:$0xff] }
0x1274   : > { %v12808_v53 = vadd.f32 %v22230_v33, %v12734_v28  ;;  %v14161_v57 = vadd.f32 %v22332_v44, %v14087_v29  ;;  %v15220_v41 = vand.u32 4294901760, %v22388_v42  ;;  %v20903_v44 = vld [vmem:[%s21167_s25] sm:$0xf]  ;;  %v16112_v22 = vrot.slane %v22388_v42, 4 }
0x1275   : > { %v3725_v37 = vadd.f32 %v22775_v47, %v3653_v2  ;;  %v5077_v13 = vadd.f32 %v22776_v16, %v5005_v54  ;;  %v8302_v50 = vadd.f32 %v22777_v61, %v8230_v8  ;;  %v9655_v56 = vadd.f32 %v22778_v9, %v9583_v38 }
0x1276   : > { %v12880_v52 = vadd.f32 %v22234_v5, %v12808_v53  ;;  %v14233_v55 = vadd.f32 %v22336_v36, %v14161_v57  ;;  %20426 = vmatpush3.msra.mxu0 %v15220_v41  ;;  %v15297_v33 = vsub.f32 %v22388_v42, %v15220_v41  ;;  %v16113_v60 = vsel %vm515_vm3, %v16112_v22, 0  ;;  %v22784_v57 = vld [vmem:[#allocation27_spill] sm:$0xff] }
0x1277   : > { %v3728_v12 = vadd.f32 %v20903_v44, %v3725_v37  ;;  %v5080_v6 = vadd.f32 %v20904_v0, %v5077_v13  ;;  %v8305_v27 = vadd.f32 %v20905_v40, %v8302_v50  ;;  %v9658_v3 = vadd.f32 %v20906_v48, %v9655_v56  ;;  %20428 = vmatmul.mubr.f32.vlgmr.msra.gmra.mrb[152].mxu0 %v22779_v18 }
0x1278   : > { %v20902_v39 = vpop.eup %20901  ;;  %v12883_v5 = vadd.f32 %v20907_v45, %v12880_v52  ;;  %v14236_v32 = vadd.f32 %v20908_v26, %v14233_v55  ;;  %20435 = vmatprep.subr.mxu0 %v22769_v14  ;;  %20437 = vmatprep.mubr.msk.f32.mxu0 %vm20989_vm0, %v22769_v14  ;;  %v15298_v36 = vand.u32 4294901760, %v15297_v33  ;;  %v16116_v23 = vand.u32 4294901760, %v16113_v60 }
0x1279   : > { %v22417_v20 = vmul.f32 %v20902_v39, %v22351_v43  ;;  %20436 = vmatpush3.msra.mxu0 %v15297_v33  ;;  %3729 = vst.msk [vmem:[%s22421_s27] sm:$0xf] %vm488_vm1, %v3728_v12  ;;  %18966 = vst.msk [vmem:[%s22421_s27 + $0x10] sm:$0xf] %vm488_vm1, %v5080_v6 }
0x127a   : > { %18969 = vst.msk [vmem:[%s22421_s27 + $0x4] sm:$0xf] %vm488_vm1, %v8305_v27  ;;  %18970 = vst.msk [vmem:[%s22421_s27 + $0x14] sm:$0xf] %vm488_vm1, %v9658_v3  ;;  %20445 = vmatprep.subr.mxu0 %v22769_v14  ;;  %v15299_v43 = vsub.f32 %v15297_v33, %v15298_v36  ;;  %v16193_v29 = vsub.f32 %v16113_v60, %v16116_v23 }
0x127b   : > { %18973 = vst.msk [vmem:[%s22421_s27 + $0x8] sm:$0xf] %vm488_vm1, %v12883_v5  ;;  %18974 = vst.msk [vmem:[%s22421_s27 + $0x18] sm:$0xf] %vm488_vm1, %v14236_v32  ;;  %20438 = vmatmul.mubr.f32.vlgmr.msra.gmra.mrb[154].mxu0 %v22780_v49  ;;  %v15666_v19 = vand.u32 4294901760, %v22417_v20 }
0x127c   : > { %20446 = vmatpush3.msra.mxu0 %v15298_v36  ;;  %v15300_v46 = vand.u32 4294901760, %v15299_v43  ;;  %20447 = vmatprep.mubr.msk.f32.mxu0 %vm20989_vm0, %v22769_v14  ;;  %v16194_v2 = vand.u32 4294901760, %v16193_v29 }
0x127d   : > { %20455 = vmatprep.subr.mxu0 %v22769_v14  ;;  %v15743_v59 = vsub.f32 %v22417_v20, %v15666_v19 }
0x127e   : > { %20431 = vmatpush3.msra.mxu1 %v15300_v46  ;;  %v16195_v51 = vsub.f32 %v16193_v29, %v16194_v2 }
0x127f   : > { %20433 = vmatmul.mubr.f32.vlgmr.msra.gmra.mrb[152].mxu1 %v22781_v31  ;;  %20440 = vmatprep.subr.mxu1 %v22769_v14  ;;  %v15744_v25 = vand.u32 4294901760, %v15743_v59 }
0x1280   : > { %20448 = vmatmul.mubr.f32.vlgmr.msra.gmra.mrb[156].mxu0 %v22781_v31  ;;  %20441 = vmatpush3.msra.mxu1 %v15220_v41  ;;  %v16196_v54 = vand.u32 4294901760, %v16195_v51 }
0x1281   : > { %20456 = vmatpush3.msra.mxu0 %v15666_v19  ;;  %20442 = vmatprep.mubr.msk.f32.mxu1 %vm20989_vm0, %v22769_v14  ;;  %v15745_v17 = vsub.f32 %v15743_v59, %v15744_v25 }
0x1282   : > { %20450 = vmatprep.subr.mxu1 %v22769_v14  ;;  %20457 = vmatprep.mubr.msk.f32.mxu0 %vm20989_vm0, %v22769_v14 }
0x1283   : > { %20465 = vmatprep.subr.mxu0 %v22769_v14  ;;  %20443 = vmatmul.mubr.f32.vlgmr.msra.gmra.mrb[154].mxu1 %v22782_v10  ;;  %v15746_v28 = vand.u32 4294901760, %v15745_v17  ;;  %v22785_v17 = vld [vmem:[#allocation31_spill] sm:$0xff] }
0x1284   : > { %20451 = vmatpush3.msra.mxu1 %v15220_v41  ;;  %20458 = vmatmul.mubr.f32.vlgmr.msra.gmra.mrb[158].mxu0 %v22779_v18 }
0x1285   : > { %20466 = vmatpush3.msra.mxu0 %v15743_v59  ;;  %20452 = vmatprep.mubr.msk.f32.mxu1 %vm20989_vm0, %v22769_v14 }
0x1286   : > { %20460 = vmatprep.subr.mxu1 %v22769_v14  ;;  %20467 = vmatprep.mubr.msk.f32.mxu0 %vm20989_vm0, %v22769_v14 }
0x1287   : > { %20475 = vmatprep.subr.mxu0 %v22769_v14  ;;  %20453 = vmatmul.mubr.f32.vlgmr.msra.gmra.mrb[156].mxu1 %v22781_v31 }
0x1288   : > { %20461 = vmatpush3.msra.mxu1 %v15746_v28  ;;  %20468 = vmatmul.mubr.f32.vlgmr.msra.gmra.mrb[160].mxu0 %v22780_v49 }
0x1289   : > { %20476 = vmatpush3.msra.mxu0 %v15744_v25  ;;  %20462 = vmatprep.mubr.msk.f32.mxu1 %vm20989_vm0, %v22769_v14 }
0x128a   : > { %20470 = vmatprep.subr.mxu1 %v22769_v14  ;;  %20477 = vmatprep.mubr.msk.f32.mxu0 %vm20989_vm0, %v22769_v14 }
0x128b   : > { %20485 = vmatprep.subr.mxu0 %v22769_v14  ;;  %20463 = vmatmul.mubr.f32.vlgmr.msra.gmra.mrb[158].mxu1 %v22781_v31 }
0x128c   : > { %20471 = vmatpush3.msra.mxu1 %v15666_v19  ;;  %20478 = vmatmul.mubr.f32.vlgmr.msra.gmra.mrb[162].mxu0 %v22781_v31 }
0x128d   : > { %20486 = vmatpush3.msra.mxu0 %v16116_v23  ;;  %20472 = vmatprep.mubr.msk.f32.mxu1 %vm20989_vm0, %v22769_v14 }
0x128e   : > { %20480 = vmatprep.subr.mxu1 %v22769_v14  ;;  %20487 = vmatprep.mubr.msk.f32.mxu0 %vm20989_vm0, %v22769_v14 }
0x128f   : > { %20495 = vmatprep.subr.mxu0 %v22769_v14  ;;  %20473 = vmatmul.mubr.f32.vlgmr.msra.gmra.mrb[160].mxu1 %v22782_v10 }
0x1290   : > { %20481 = vmatpush3.msra.mxu1 %v15666_v19  ;;  %20488 = vmatmul.mubr.f32.vlgmr.msra.gmra.mrb[164].mxu0 %v21355_v15 }
0x1291   : > { %20496 = vmatpush3.msra.mxu0 %v16193_v29  ;;  %20482 = vmatprep.mubr.msk.f32.mxu1 %vm20989_vm0, %v22769_v14 }
0x1292   : > { %20490 = vmatprep.subr.mxu1 %v22769_v14  ;;  %20497 = vmatprep.mubr.msk.f32.mxu0 %vm20989_vm0, %v22769_v14 }
0x1293   : > { %20505 = vmatprep.subr.mxu0 %v22769_v14  ;;  %20483 = vmatmul.mubr.f32.vlgmr.msra.gmra.mrb[162].mxu1 %v22781_v31 }
0x1294   : > { %20491 = vmatpush3.msra.mxu1 %v16196_v54  ;;  %20498 = vmatmul.mubr.f32.vlgmr.msra.gmra.mrb[166].mxu0 %v21324_v7 }
0x1295   : > { %20506 = vmatpush3.msra.mxu0 %v16194_v2  ;;  %20492 = vmatprep.mubr.msk.f32.mxu1 %vm20989_vm0, %v22769_v14 }
0x1296   : > { %20500 = vmatprep.subr.mxu1 %v22769_v14  ;;  %20507 = vmatprep.mubr.msk.f32.mxu0 %vm20989_vm0, %v22769_v14 }
0x1297   : > { %20493 = vmatmul.mubr.f32.vlgmr.msra.gmra.mrb[164].mxu1 %v21316_v4  ;;  %20515 = vmatprep.subr.mxu0 %v22769_v14 }
0x1298   : > { %20501 = vmatpush3.msra.mxu1 %v16116_v23  ;;  %20502 = vmatprep.mubr.msk.f32.mxu1 %vm20989_vm0, %v22769_v14 }
0x1299   : > { %20510 = vmatprep.subr.mxu1 %v22769_v14  ;;  %20508 = vmatmul.mubr.f32.vlgmr.msra.gmra.mrb[168].mxu0 %v21316_v4 }
0x129a   : > { %20517 = vmatprep.mubr.msk.f32.mxu0 %vm20989_vm0, %v22769_v14 }
0x129b   : > { %20503 = vmatmul.mubr.f32.vlgmr.msra.gmra.mrb[166].mxu1 %v22783_v62 }
0x129c   : > { %20511 = vmatpush3.msra.mxu1 %v16116_v23  ;;  %20512 = vmatprep.mubr.msk.f32.mxu1 %vm20989_vm0, %v22769_v14 }
0x129d   : > { %20520 = vmatprep.subr.mxu1 %v22769_v14 }
0x129f   : > { %20513 = vmatmul.mubr.f32.vlgmr.msra.gmra.mrb[168].mxu1 %v21316_v4 }
0x12a0   : > { %20522 = vmatprep.mubr.msk.f32.mxu1 %vm20989_vm0, %v22769_v14 }
0x134a   : > { %v15291_v8 = vpop.f32.mrb[152].mxu0 }
0x134b   : > { %v20429_v34 = vpop.f32.mrb[153].mxu0  ;;  %v15292_v41 = vadd.f32 %v15291_v8, %v22784_v57 }
0x134e   : > { %v15441_v38 = vpop.f32.mrb[154].mxu0 }
0x134f   : > { %v20439_v53 = vpop.f32.mrb[155].mxu0 }
0x1352   : > { %v15367_v47 = vpop.f32.mrb[152].mxu1 }
0x1353   : > { %v15368_v37 = vadd.f32 %v15367_v47, %v15292_v41  ;;  %v15589_v16 = vpop.f32.mrb[156].mxu0  ;;  %v20434_v13 = vpop.f32.mrb[153].mxu1 }
0x1354   : > { %v20449_v61 = vpop.f32.mrb[157].mxu0 }
0x1355   : > { %v15442_v50 = vadd.f32 %v15441_v38, %v15368_v37  ;;  %v22786_v37 = vld [vmem:[#allocation32_spill] sm:$0xff] }
0x1356   : > { %v15515_v9 = vpop.f32.mrb[154].mxu1 }
0x1357   : > { %v15516_v56 = vadd.f32 %v15515_v9, %v15442_v50  ;;  %v15737_v52 = vpop.f32.mrb[158].mxu0  ;;  %v20444_v55 = vpop.f32.mrb[155].mxu1 }
0x1358   : > { %v20459_v33 = vpop.f32.mrb[159].mxu0  ;;  %v15738_v48 = vadd.f32 %v15737_v52, %v22784_v57  ;;  %v22788_v55 = vld [vmem:[#allocation28_spill] sm:$0xff] }
0x1359   : > { %v15590_v44 = vadd.f32 %v15589_v16, %v15516_v56  ;;  %v22787_v56 = vld [vmem:[#allocation29_spill] sm:$0xff]  ;;  %v22789_v33 = vld [vmem:[#allocation30_spill] sm:$0xff] }
0x135a   : > { %v15661_v12 = vpop.f32.mrb[156].mxu1 }
0x135b   : > { %v22508_v0 = vadd.f32 %v15661_v12, %v15590_v44  ;;  %v20454_v6 = vpop.f32.mrb[157].mxu1  ;;  %v15887_v40 = vpop.f32.mrb[160].mxu0 }
0x135c   : > { %v20469_v27 = vpop.f32.mrb[161].mxu0 }
0x135e   : > { %v15813_v3 = vpop.f32.mrb[158].mxu1 }
0x135f   : > { %v15814_v18 = vadd.f32 %v15813_v3, %v15738_v48  ;;  %v16035_v39 = vpop.f32.mrb[162].mxu0  ;;  %v20464_v45 = vpop.f32.mrb[159].mxu1 }
0x1360   : > { %v20479_v5 = vpop.f32.mrb[163].mxu0 }
0x1361   : > { %v15888_v26 = vadd.f32 %v15887_v40, %v15814_v18 }
0x1362   : > { %v15961_v32 = vpop.f32.mrb[160].mxu1 }
0x1363   : > { %v15962_v36 = vadd.f32 %v15961_v32, %v15888_v26  ;;  %v16187_v43 = vpop.f32.mrb[164].mxu0  ;;  %v20474_v49 = vpop.f32.mrb[161].mxu1 }
0x1364   : > { %v20489_v19 = vpop.f32.mrb[165].mxu0  ;;  %v16188_v23 = vadd.f32 %v16187_v43, %v22785_v17 }
0x1365   : > { %v16036_v22 = vadd.f32 %v16035_v39, %v15962_v36 }
0x1366   : > { %v16107_v46 = vpop.f32.mrb[162].mxu1 }
0x1367   : > { %v16108_v59 = vadd.f32 %v16107_v46, %v16036_v22  ;;  %v20484_v31 = vpop.f32.mrb[163].mxu1  ;;  %v16337_v25 = vpop.f32.mrb[166].mxu0 }
0x1368   : > { %v20499_v60 = vpop.f32.mrb[167].mxu0  ;;  %v17465_v31 = vrot.slane %v22417_v20, 4 }
0x1369   : > { %v16563_v10 = vadd.f32 1.0, %v16108_v59 }
0x136a   : > { %v16263_v28 = vpop.f32.mrb[164].mxu1 }
0x136b   : > { %v16564_v29 = vmul.f32 %v16563_v10, %v22388_v42  ;;  %v16264_v2 = vadd.f32 %v16263_v28, %v16188_v23  ;;  %v20494_v51 = vpop.f32.mrb[165].mxu1  ;;  %v17466_v23 = vsel %vm515_vm3, %v17465_v31, 0 }
0x136c   : > { %v16485_v54 = vpop.f32.mrb[168].mxu0 }
0x136d   : > { %v16566_v8 = vand.u32 4294901760, %v16564_v29  ;;  %v16338_v34 = vadd.f32 %v16337_v25, %v16264_v2  ;;  %v20509_v38 = vpop.f32.mrb[169].mxu0  ;;  %v17916_v2 = vadd.f32 1.0, %v22508_v0 }
0x136e   : > { %v16411_v53 = vpop.f32.mrb[166].mxu1 }
0x136f   : > { %v16643_v57 = vsub.f32 %v16564_v29, %v16566_v8  ;;  %v16412_v41 = vadd.f32 %v16411_v53, %v16338_v34  ;;  %20516 = vmatpush3.msra.mxu0 %v16566_v8  ;;  %v20504_v47 = vpop.f32.mrb[167].mxu1  ;;  %v17469_v29 = vand.u32 4294901760, %v17466_v23  ;;  %v17917_v34 = vmul.f32 %v17916_v2, %v22417_v20 }
0x1370   : > { %20518 = vmatmul.mubr.f32.vlgmr.msra.gmra.mrb[170].mxu0 %v22786_v37  ;;  %20525 = vmatprep.subr.mxu0 %v22769_v14 }
0x1371   : > { %v16486_v16 = vadd.f32 %v16485_v54, %v16412_v41  ;;  %20526 = vmatpush3.msra.mxu0 %v16643_v57  ;;  %20527 = vmatprep.mubr.msk.f32.mxu0 %vm20989_vm0, %v22769_v14  ;;  %v16644_v42 = vand.u32 4294901760, %v16643_v57  ;;  %v17546_v54 = vsub.f32 %v17466_v23, %v17469_v29  ;;  %v17919_v0 = vand.u32 4294901760, %v17917_v34 }
0x1372   : > { %v16557_v13 = vpop.f32.mrb[168].mxu1  ;;  %20535 = vmatprep.subr.mxu0 %v22769_v14 }
0x1373   : > { %v16558_v61 = vadd.f32 %v16557_v13, %v16486_v16  ;;  %v16645_v50 = vsub.f32 %v16643_v57, %v16644_v42  ;;  %v20514_v9 = vpop.f32.mrb[169].mxu1  ;;  %v17547_v38 = vand.u32 4294901760, %v17546_v54  ;;  %v17996_v53 = vsub.f32 %v17917_v34, %v17919_v0 }
0x1374   : > { %20528 = vmatmul.mubr.f32.vlgmr.msra.gmra.mrb[172].mxu0 %v22787_v56 }
0x1375   : > { %20536 = vmatpush3.msra.mxu0 %v16644_v42  ;;  %v16646_v52 = vand.u32 4294901760, %v16645_v50  ;;  %20537 = vmatprep.mubr.msk.f32.mxu0 %vm20989_vm0, %v22769_v14  ;;  %v16561_v32 = vadd.f32 1.0, %v16558_v61  ;;  %v17548_v20 = vsub.f32 %v17546_v54, %v17547_v38 }
0x1376   : > { %20545 = vmatprep.subr.mxu0 %v22769_v14 }
0x1377   : > { %20521 = vmatpush3.msra.mxu1 %v16646_v52  ;;  %v16562_v22 = vmul.f32 %v16561_v32, %v22340_v21  ;;  %v17549_v57 = vand.u32 4294901760, %v17548_v20 }
0x1378   : > { %20523 = vmatmul.mubr.f32.vlgmr.msra.gmra.mrb[170].mxu1 %v22788_v55  ;;  %20530 = vmatprep.subr.mxu1 %v22769_v14 }
0x1379   : > { %20531 = vmatpush3.msra.mxu1 %v16566_v8  ;;  %20532 = vmatprep.mubr.msk.f32.mxu1 %vm20989_vm0, %v22769_v14 }
0x137a   : > { %20540 = vmatprep.subr.mxu1 %v22769_v14  ;;  %20538 = vmatmul.mubr.f32.vlgmr.msra.gmra.mrb[174].mxu0 %v22788_v55 }
0x137b   : > { %20547 = vmatprep.mubr.msk.f32.mxu0 %vm20989_vm0, %v22769_v14 }
0x137c   : > { %20533 = vmatmul.mubr.f32.vlgmr.msra.gmra.mrb[172].mxu1 %v22789_v33 }
0x137d   : > { %20541 = vmatpush3.msra.mxu1 %v16566_v8  ;;  %20542 = vmatprep.mubr.msk.f32.mxu1 %vm20989_vm0, %v22769_v14 }
0x137e   : > { %20550 = vmatprep.subr.mxu1 %v22769_v14 }
0x1380   : > { %20543 = vmatmul.mubr.f32.vlgmr.msra.gmra.mrb[174].mxu1 %v22788_v55 }
0x1381   : > { %20552 = vmatprep.mubr.msk.f32.mxu1 %vm20989_vm0, %v22769_v14 }
0x1443   : > { %v16637_v44 = vpop.f32.mrb[170].mxu0 }
0x1444   : > { %v20519_v12 = vpop.f32.mrb[171].mxu0  ;;  %v16638_v27 = vadd.f32 %v16637_v44, %v21449_v1 }
0x1447   : > { %v16787_v6 = vpop.f32.mrb[172].mxu0 }
0x1448   : > { %v20529_v40 = vpop.f32.mrb[173].mxu0 }
0x144b   : > { %v16713_v48 = vpop.f32.mrb[170].mxu1 }
0x144c   : > { %v16714_v3 = vadd.f32 %v16713_v48, %v16638_v27  ;;  %v20524_v18 = vpop.f32.mrb[171].mxu1 }
0x144d   : > { %v16935_v39 = vpop.f32.mrb[174].mxu0 }
0x144e   : > { %v16788_v45 = vadd.f32 %v16787_v6, %v16714_v3  ;;  %v20539_v5 = vpop.f32.mrb[175].mxu0 }
0x144f   : > { %v16861_v26 = vpop.f32.mrb[172].mxu1 }
0x1450   : > { %v16862_v36 = vadd.f32 %v16861_v26, %v16788_v45  ;;  %v20534_v43 = vpop.f32.mrb[173].mxu1  ;;  %v20909_v45 = vld [vmem:[%s21167_s25 + $0xc] sm:$0xf] }
0x1452   : > { %v16936_v49 = vadd.f32 %v16935_v39, %v16862_v36 }
0x1453   : > { %v17007_v19 = vpop.f32.mrb[174].mxu1 }
0x1454   : > { %v17008_v46 = vadd.f32 %v17007_v19, %v16936_v49  ;;  %v20544_v59 = vpop.f32.mrb[175].mxu1 }
0x1456   : > { %v17011_v25 = vadd.f32 %v17008_v46, %v16562_v22 }
0x1458   : > { %v17013_v60 = vsel %vm515_vm3, %v17011_v25, 0 }
0x1459   : > { %v17016_v10 = vand.u32 4294901760, %v17013_v60 }
0x145b   : > { %v17093_v28 = vsub.f32 %v17013_v60, %v17016_v10  ;;  %20546 = vmatpush3.msra.mxu0 %v17016_v10 }
0x145c   : > { %20548 = vmatmul.mubr.f32.vlgmr.msra.gmra.mrb[176].mxu0 %v21463_v35  ;;  %20555 = vmatprep.subr.mxu0 %v22769_v14 }
0x145d   : > { %20556 = vmatpush3.msra.mxu0 %v17093_v28  ;;  %20557 = vmatprep.mubr.msk.f32.mxu0 %vm20989_vm0, %v22769_v14  ;;  %v17094_v21 = vand.u32 4294901760, %v17093_v28 }
0x145e   : > { %20565 = vmatprep.subr.mxu0 %v22769_v14 }
0x145f   : > { %v17095_v51 = vsub.f32 %v17093_v28, %v17094_v21 }
0x1460   : > { %20558 = vmatmul.mubr.f32.vlgmr.msra.gmra.mrb[178].mxu0 %v21453_v11 }
0x1461   : > { %20566 = vmatpush3.msra.mxu0 %v17094_v21  ;;  %v17096_v8 = vand.u32 4294901760, %v17095_v51  ;;  %20567 = vmatprep.mubr.msk.f32.mxu0 %vm20989_vm0, %v22769_v14 }
0x1462   : > { %20575 = vmatprep.subr.mxu0 %v22769_v14 }
0x1463   : > { %20551 = vmatpush3.msra.mxu1 %v17096_v8 }
0x1464   : > { %20553 = vmatmul.mubr.f32.vlgmr.msra.gmra.mrb[176].mxu1 %v21447_v63  ;;  %20560 = vmatprep.subr.mxu1 %v22769_v14 }
0x1465   : > { %20568 = vmatmul.mubr.f32.vlgmr.msra.gmra.mrb[180].mxu0 %v21447_v63  ;;  %20561 = vmatpush3.msra.mxu1 %v17016_v10 }
0x1466   : > { %20576 = vmatpush3.msra.mxu0 %v17469_v29  ;;  %20562 = vmatprep.mubr.msk.f32.mxu1 %vm20989_vm0, %v22769_v14 }
0x1467   : > { %20570 = vmatprep.subr.mxu1 %v22769_v14  ;;  %20577 = vmatprep.mubr.msk.f32.mxu0 %vm20989_vm0, %v22769_v14 }
0x1468   : > { %20585 = vmatprep.subr.mxu0 %v22769_v14  ;;  %20563 = vmatmul.mubr.f32.vlgmr.msra.gmra.mrb[178].mxu1 %v21456_v24 }
0x1469   : > { %20571 = vmatpush3.msra.mxu1 %v17016_v10  ;;  %20578 = vmatmul.mubr.f32.vlgmr.msra.gmra.mrb[182].mxu0 %v21355_v15  ;;  %v17997_v15 = vand.u32 4294901760, %v17996_v53 }
0x146a   : > { %20586 = vmatpush3.msra.mxu0 %v17546_v54  ;;  %20572 = vmatprep.mubr.msk.f32.mxu1 %vm20989_vm0, %v22769_v14 }
0x146b   : > { %20580 = vmatprep.subr.mxu1 %v22769_v14  ;;  %20587 = vmatprep.mubr.msk.f32.mxu0 %vm20989_vm0, %v22769_v14 }
0x146c   : > { %20595 = vmatprep.subr.mxu0 %v22769_v14  ;;  %20573 = vmatmul.mubr.f32.vlgmr.msra.gmra.mrb[180].mxu1 %v21447_v63 }
0x146d   : > { %20581 = vmatpush3.msra.mxu1 %v17549_v57  ;;  %20588 = vmatmul.mubr.f32.vlgmr.msra.gmra.mrb[184].mxu0 %v21324_v7  ;;  %v17998_v7 = vsub.f32 %v17996_v53, %v17997_v15 }
0x146e   : > { %20596 = vmatpush3.msra.mxu0 %v17547_v38  ;;  %20582 = vmatprep.mubr.msk.f32.mxu1 %vm20989_vm0, %v22769_v14 }
0x146f   : > { %20590 = vmatprep.subr.mxu1 %v22769_v14  ;;  %20597 = vmatprep.mubr.msk.f32.mxu0 %vm20989_vm0, %v22769_v14  ;;  %v17999_v41 = vand.u32 4294901760, %v17998_v7 }
0x1470   : > { %20605 = vmatprep.subr.mxu0 %v22769_v14  ;;  %20583 = vmatmul.mubr.f32.vlgmr.msra.gmra.mrb[182].mxu1 %v21316_v4 }
0x1471   : > { %20591 = vmatpush3.msra.mxu1 %v17469_v29  ;;  %20598 = vmatmul.mubr.f32.vlgmr.msra.gmra.mrb[186].mxu0 %v21316_v4 }
0x1472   : > { %20606 = vmatpush3.msra.mxu0 %v17919_v0  ;;  %20592 = vmatprep.mubr.msk.f32.mxu1 %vm20989_vm0, %v22769_v14 }
0x1473   : > { %20600 = vmatprep.subr.mxu1 %v22769_v14  ;;  %20607 = vmatprep.mubr.msk.f32.mxu0 %vm20989_vm0, %v22769_v14 }
0x1474   : > { %20615 = vmatprep.subr.mxu0 %v22769_v14  ;;  %20593 = vmatmul.mubr.f32.vlgmr.msra.gmra.mrb[184].mxu1 %v22783_v62 }
0x1475   : > { %20601 = vmatpush3.msra.mxu1 %v17469_v29  ;;  %20608 = vmatmul.mubr.f32.vlgmr.msra.gmra.mrb[188].mxu0 %v22786_v37 }
0x1476   : > { %20616 = vmatpush3.msra.mxu0 %v17996_v53  ;;  %20602 = vmatprep.mubr.msk.f32.mxu1 %vm20989_vm0, %v22769_v14 }
0x1477   : > { %20610 = vmatprep.subr.mxu1 %v22769_v14  ;;  %20617 = vmatprep.mubr.msk.f32.mxu0 %vm20989_vm0, %v22769_v14 }
0x1478   : > { %20625 = vmatprep.subr.mxu0 %v22769_v14  ;;  %20603 = vmatmul.mubr.f32.vlgmr.msra.gmra.mrb[186].mxu1 %v21316_v4 }
0x1479   : > { %20611 = vmatpush3.msra.mxu1 %v17999_v41  ;;  %20618 = vmatmul.mubr.f32.vlgmr.msra.gmra.mrb[190].mxu0 %v22787_v56 }
0x147a   : > { %20626 = vmatpush3.msra.mxu0 %v17997_v15  ;;  %20612 = vmatprep.mubr.msk.f32.mxu1 %vm20989_vm0, %v22769_v14 }
0x147b   : > { %20620 = vmatprep.subr.mxu1 %v22769_v14  ;;  %20627 = vmatprep.mubr.msk.f32.mxu0 %vm20989_vm0, %v22769_v14 }
0x147c   : > { %20613 = vmatmul.mubr.f32.vlgmr.msra.gmra.mrb[188].mxu1 %v22788_v55  ;;  %20635 = vmatprep.subr.mxu0 %v22769_v14 }
0x147d   : > { %20621 = vmatpush3.msra.mxu1 %v17919_v0  ;;  %20622 = vmatprep.mubr.msk.f32.mxu1 %vm20989_vm0, %v22769_v14 }
0x147e   : > { %20630 = vmatprep.subr.mxu1 %v22769_v14  ;;  %20628 = vmatmul.mubr.f32.vlgmr.msra.gmra.mrb[192].mxu0 %v22788_v55 }
0x147f   : > { %20637 = vmatprep.mubr.msk.f32.mxu0 %vm20989_vm0, %v22769_v14 }
0x1480   : > { %20623 = vmatmul.mubr.f32.vlgmr.msra.gmra.mrb[190].mxu1 %v22789_v33 }
0x1481   : > { %20631 = vmatpush3.msra.mxu1 %v17919_v0  ;;  %20632 = vmatprep.mubr.msk.f32.mxu1 %vm20989_vm0, %v22769_v14 }
0x1482   : > { %20640 = vmatprep.subr.mxu1 %v22769_v14 }
0x1484   : > { %20633 = vmatmul.mubr.f32.vlgmr.msra.gmra.mrb[192].mxu1 %v22788_v55 }
0x1485   : > { %20642 = vmatprep.mubr.msk.f32.mxu1 %vm20989_vm0, %v22769_v14 }
0x152f   : > { %v17087_v4 = vpop.f32.mrb[176].mxu0 }
0x1530   : > { %v20549_v62 = vpop.f32.mrb[177].mxu0  ;;  %v17088_v16 = vadd.f32 %v17087_v4, %v22359_v58 }
0x1533   : > { %v17237_v47 = vpop.f32.mrb[178].mxu0 }
0x1534   : > { %v20559_v37 = vpop.f32.mrb[179].mxu0 }
0x1537   : > { %v17163_v42 = vpop.f32.mrb[176].mxu1 }
0x1538   : > { %v17164_v13 = vadd.f32 %v17163_v42, %v17088_v16  ;;  %v17385_v61 = vpop.f32.mrb[180].mxu0  ;;  %v20554_v50 = vpop.f32.mrb[177].mxu1 }
0x1539   : > { %v20569_v9 = vpop.f32.mrb[181].mxu0 }
0x153a   : > { %v17238_v56 = vadd.f32 %v17237_v47, %v17164_v13 }
0x153b   : > { %v17311_v52 = vpop.f32.mrb[178].mxu1 }
0x153c   : > { %v17312_v33 = vadd.f32 %v17311_v52, %v17238_v56  ;;  %v17540_v55 = vpop.f32.mrb[182].mxu0  ;;  %v20564_v44 = vpop.f32.mrb[179].mxu1 }
0x153d   : > { %v20579_v12 = vpop.f32.mrb[183].mxu0  ;;  %v17541_v39 = vadd.f32 %v17540_v55, %v22785_v17 }
0x153e   : > { %v17386_v6 = vadd.f32 %v17385_v61, %v17312_v33 }
0x153f   : > { %v17457_v40 = vpop.f32.mrb[180].mxu1 }
0x1540   : > { %v17458_v27 = vadd.f32 %v17457_v40, %v17386_v6  ;;  %v20574_v48 = vpop.f32.mrb[181].mxu1  ;;  %v17690_v3 = vpop.f32.mrb[184].mxu0 }
0x1541   : > { %v20589_v18 = vpop.f32.mrb[185].mxu0 }
0x1542   : > { %v17461_v5 = vadd.f32 %v20909_v45, %v17458_v27 }
0x1543   : > { %v17616_v26 = vpop.f32.mrb[182].mxu1 }
0x1544   : > { %18977 = vst.msk [vmem:[%s22421_s27 + $0xc] sm:$0xf] %vm488_vm1, %v17461_v5  ;;  %v17617_v32 = vadd.f32 %v17616_v26, %v17541_v39  ;;  %v17838_v36 = vpop.f32.mrb[186].mxu0  ;;  %v20584_v43 = vpop.f32.mrb[183].mxu1 }
0x1545   : > { %v20599_v49 = vpop.f32.mrb[187].mxu0 }
0x1546   : > { %v17691_v19 = vadd.f32 %v17690_v3, %v17617_v32  ;;  %v20910_v3 = vld [vmem:[%s21167_s25 + $0x1c] sm:$0xf] }
0x1547   : > { %v17764_v22 = vpop.f32.mrb[184].mxu1 }
0x1548   : > { %v17765_v46 = vadd.f32 %v17764_v22, %v17691_v19  ;;  %v17990_v59 = vpop.f32.mrb[188].mxu0  ;;  %v20594_v31 = vpop.f32.mrb[185].mxu1 }
0x1549   : > { %v20609_v25 = vpop.f32.mrb[189].mxu0  ;;  %v17991_v21 = vadd.f32 %v17990_v59, %v21449_v1 }
0x154a   : > { %v17839_v60 = vadd.f32 %v17838_v36, %v17765_v46 }
0x154b   : > { %v17910_v23 = vpop.f32.mrb[186].mxu1 }
0x154c   : > { %v17911_v10 = vadd.f32 %v17910_v23, %v17839_v60  ;;  %v20604_v28 = vpop.f32.mrb[187].mxu1  ;;  %v18140_v17 = vpop.f32.mrb[190].mxu0 }
0x154d   : > { %v20619_v29 = vpop.f32.mrb[191].mxu0 }
0x154e   : > { %v17914_v20 = vadd.f32 1.0, %v17911_v10 }
0x154f   : > { %v18066_v2 = vpop.f32.mrb[188].mxu1 }
0x1550   : > { %v18067_v51 = vadd.f32 %v18066_v2, %v17991_v21  ;;  %v20614_v54 = vpop.f32.mrb[189].mxu1  ;;  %v17915_v41 = vmul.f32 %v17914_v20, %v22344_v30 }
0x1551   : > { %v18288_v8 = vpop.f32.mrb[192].mxu0 }
0x1552   : > { %v18141_v34 = vadd.f32 %v18140_v17, %v18067_v51  ;;  %v20629_v38 = vpop.f32.mrb[193].mxu0 }
0x1553   : > { %v18214_v0 = vpop.f32.mrb[190].mxu1 }
0x1554   : > { %v18215_v53 = vadd.f32 %v18214_v0, %v18141_v34  ;;  %v20624_v57 = vpop.f32.mrb[191].mxu1 }
0x1556   : > { %v18289_v15 = vadd.f32 %v18288_v8, %v18215_v53 }
0x1557   : > { %v18360_v7 = vpop.f32.mrb[192].mxu1 }
0x1558   : > { %v18361_v4 = vadd.f32 %v18360_v7, %v18289_v15  ;;  %v20634_v62 = vpop.f32.mrb[193].mxu1 }
0x155a   : > { %v18364_v47 = vadd.f32 %v18361_v4, %v17915_v41 }
0x155c   : > { %v18366_v37 = vsel %vm515_vm3, %v18364_v47, 0 }
0x155d   : > { %v18369_v1 = vand.u32 4294901760, %v18366_v37 }
0x155f   : > { %v18446_v16 = vsub.f32 %v18366_v37, %v18369_v1  ;;  %20636 = vmatpush3.msra.mxu0 %v18369_v1 }
0x1560   : > { %20638 = vmatmul.mubr.f32.vlgmr.msra.gmra.mrb[194].mxu0 %v21463_v35  ;;  %20645 = vmatprep.subr.mxu0 %v22769_v14 }
0x1561   : > { %20646 = vmatpush3.msra.mxu0 %v18446_v16  ;;  %20647 = vmatprep.mubr.msk.f32.mxu0 %vm20989_vm0, %v22769_v14  ;;  %v18447_v42 = vand.u32 4294901760, %v18446_v16 }
0x1562   : > { %20655 = vmatprep.subr.mxu0 %v22769_v14 }
0x1563   : > { %v18448_v30 = vsub.f32 %v18446_v16, %v18447_v42 }
0x1564   : > { %20648 = vmatmul.mubr.f32.vlgmr.msra.gmra.mrb[196].mxu0 %v21453_v11 }
0x1565   : > { %20656 = vmatpush3.msra.mxu0 %v18447_v42  ;;  %v18449_v13 = vand.u32 4294901760, %v18448_v30  ;;  %20657 = vmatprep.mubr.msk.f32.mxu0 %vm20989_vm0, %v22769_v14 }
0x1567   : > { %20641 = vmatpush3.msra.mxu1 %v18449_v13 }
0x1568   : > { %20643 = vmatmul.mubr.f32.vlgmr.msra.gmra.mrb[194].mxu1 %v21447_v63  ;;  %20650 = vmatprep.subr.mxu1 %v22769_v14 }
0x1569   : > { %20651 = vmatpush3.msra.mxu1 %v18369_v1  ;;  %20652 = vmatprep.mubr.msk.f32.mxu1 %vm20989_vm0, %v22769_v14 }
0x156a   : > { %20660 = vmatprep.subr.mxu1 %v22769_v14  ;;  %20658 = vmatmul.mubr.f32.vlgmr.msra.gmra.mrb[198].mxu0 %v21447_v63 }
0x156c   : > { %20653 = vmatmul.mubr.f32.vlgmr.msra.gmra.mrb[196].mxu1 %v21456_v24 }
0x156d   : > { %20661 = vmatpush3.msra.mxu1 %v18369_v1  ;;  %20662 = vmatprep.mubr.msk.f32.mxu1 %vm20989_vm0, %v22769_v14 }
0x1570   : > { %20663 = vmatmul.mubr.f32.vlgmr.msra.gmra.mrb[198].mxu1 %v21447_v63 }
0x1633   : > { %v18440_v11 = vpop.f32.mrb[194].mxu0 }
0x1634   : > { %v20639_v35 = vpop.f32.mrb[195].mxu0  ;;  %v18441_v9 = vadd.f32 %v18440_v11, %v22359_v58 }
0x1637   : > { %v18590_v61 = vpop.f32.mrb[196].mxu0 }
0x1638   : > { %v20649_v50 = vpop.f32.mrb[197].mxu0 }
0x163b   : > { %v18516_v56 = vpop.f32.mrb[194].mxu1 }
0x163c   : > { %v18517_v52 = vadd.f32 %v18516_v56, %v18441_v9  ;;  %v20644_v33 = vpop.f32.mrb[195].mxu1 }
0x163d   : > { %v18738_v55 = vpop.f32.mrb[198].mxu0 }
0x163e   : > { %v18591_v24 = vadd.f32 %v18590_v61, %v18517_v52  ;;  %v20659_v44 = vpop.f32.mrb[199].mxu0 }
0x163f   : > { %v18664_v12 = vpop.f32.mrb[196].mxu1 }
0x1640   : > { %v18665_v6 = vadd.f32 %v18664_v12, %v18591_v24  ;;  %v20654_v14 = vpop.f32.mrb[197].mxu1 }
0x1642   : > { %v18739_v40 = vadd.f32 %v18738_v55, %v18665_v6 }
0x1643   : > { %v18810_v63 = vpop.f32.mrb[198].mxu1 }
0x1644   : > { %v18811_v27 = vadd.f32 %v18810_v63, %v18739_v40  ;;  %v20664_v48 = vpop.f32.mrb[199].mxu1 }
0x1646   : > { %v18814_v18 = vadd.f32 %v20910_v3, %v18811_v27 }
0x1648   : > { %18978 = vst.msk [vmem:[%s22421_s27 + $0x1c] sm:$0xf] %vm488_vm1, %v18814_v18 }
0x1649   : > { %s22790_s28 = sld [smem:[#allocation14_spill]]  ;;  %s18980_s17 = sshll.u32 %s20965_s20, 2 }
0x164a   : > { %s18849_s23 = sshll.u32 %s22421_s27, 4  ;;  %s22792_s26 = sld [smem:[#allocation40_spill]]  ;;  %s18850_s23 = int_to_ptr.vmem [resolvable:$true] %s18849_s23 }
0x164b   : > { %s20991_s16 = smov 256   ;;  %s20992_s29 = smov 512  }
0x164c   : > { %20762 = sst [smem:[#allocation9]] (%p21121_p9), %s20991_s16  ;;  %s20993_s14 = smov 4  }
0x164d   : > { %20763 = sst [smem:[#allocation9 + $0x1]] (%p21121_p9), %s20992_s29  ;;  %s20994_s20 = smov 64  }
0x164e   : > { %20764 = sst [smem:[#allocation9 + $0x2]] (%p21121_p9), %s20993_s14  ;;  %s20995_s27 = smov [#allocation8]  }
0x164f   : > { %s18981_s15 = sshll.u32 %s22790_s28, 4  ;;  %20765 = sst [smem:[#allocation9 + $0x3]] (%p21121_p9), %s20994_s20 }
0x1650   : > { %s18830_s13 = sadd.s32 %s18981_s15, %s18980_s17  ;;  %20766 = sst [smem:[#allocation9 + $0x4]] (%p21121_p9), %s20994_s20 }
0x1651   : > { %s18982_s30 = sshll.u32 %s18830_s13, 6  ;;  %20767 = sst [smem:[#allocation9 + $0x5]] (%p21121_p9), %s20993_s14 }
0x1652   : > { %s18832_s21 = scalar_lea.hbm %s22792_s26, %s18982_s30  ;;  %s20996_s28 = smov 0  }
0x1653   : > { %20768 = dma.general (%p21121_p9), %s18850_s23, 512, %s18832_s21, %s18818_s22, %s20995_s27, [#allocation9], %s20996_s28, 0  }
0x1654 PF: > { %s22793_s17 = sld [smem:[#allocation13_spill]]  ;;  %p20774_p3 = scmp.ge.s32.totalorder %s20981_s24, 2 }
0x1656   : > { %p20771_p4 = pnand %p20774_p3, %p21128_p12 }
0x165a   : > { %s18877_s13 = sand.u32 1, %s22793_s17  }
0x165b   : > { %s18878_s30 = scalar_lea.sflag [#allocation4], %s18877_s13 }
0x165c   : > { %20948 = dma.done.wait (!%p20771_p4), %s18878_s30, 512  }
0x165d   : > { %20950 = vsyncadd (!%p20771_p4), %s18878_s30, 4294966784  ;;  %s27_s24 = sadd.s32 1, %s20981_s24   ;;  %s22795_s25 = sld [smem:[#allocation21_spill]] }
0x165e   : > { %p24_p5 = scmp.ge.s32.totalorder %s27_s24, 6   ;;  %s22796_s20 = sld [smem:[#allocation15_spill]] }
0x165f   : > { %s22797_s21 = sld [smem:[#allocation16_spill]]  ;;  %s22798_s22 = sld [smem:[#allocation17_spill]] }
0x1660   : > { %s22799_s23 = sld [smem:[#allocation18_spill]]  ;;  %s22800_s17 = smov %s20957_s18 }
0x1661   : > { %s22801_s18 = smov %s20961_s19  ;;  %26 = sbr.rel (!%p24_p5) target bundleno = 9 (0x9), region = 133 }
0x1663   : > { %s22802_s19 = smov %s22795_s25 }
0x1668   :  { %18883 = vsyncpa [#allocation3], 1 }
0x1669   :  { %18885 = vsyncpa [#allocation3 + $0x1], 1 }
0x166a   :  { %18886 = vsyncpa [#allocation4], 1 }
0x166b   :  { %18888 = vsyncpa [#allocation4 + $0x1], 1 }

</bundles_post_ra>
